<compile_context>
chip_gen: v5e
topology: v5e:2x2
jax: 0.10.0
libtpu: 0.0.40
codegen_flags: <defaults>
</compile_context>

<pallas_src>
import numpy as np
import jax
import jax.numpy as jnp
from jax.experimental import pallas as pl
from jax.experimental.pallas import tpu as pltpu


# ----------------------------------------------------------------------------
# Fused Pallas kernel: the whole Extras chain for one batch element.
# ----------------------------------------------------------------------------
def _extras_kernel(x_ref,
                   w1a_ref, b1a_ref, sel1_ref, w1b_ref, b1b_ref,
                   w2a_ref, b2a_ref, sel2_ref, w2b_ref, b2b_ref,
                   w3a_ref, b3a_ref, sel3_ref, w3b_ref, b3b_ref,
                   s3_ref, s4_ref, s5_ref):
    f32 = jnp.float32
    bf16 = jnp.bfloat16

    def conv1x1_relu(h_bf16, w_ref, b_ref):
        # h_bf16: [M, Cin] bf16 ; w_ref: [Cin, Cout] bf16 ; b_ref: [1, Cout] f32
        acc = jnp.dot(h_bf16, w_ref[...], preferred_element_type=f32)
        return jnp.maximum(acc + b_ref[...], 0.0)

    def conv3x3_relu(h_bf16, sel_ref, w_ref, b_ref):
        # h_bf16: [M_in, Cin] bf16 (rows = flattened H*W of this stage's input)
        # sel_ref: [9, M_out, M_in] bf16 0/1 shift matrices (padding rows = 0)
        # w_ref  : [9, Cin, Cout] bf16 per-tap weights ; b_ref: [1, Cout] f32
        m_out = sel_ref.shape[1]
        c_out = w_ref.shape[2]
        acc = jnp.zeros((m_out, c_out), f32)
        for t in range(9):  # static unroll, 9 taps
            # Gather the (strided, zero-padded) shifted rows via a matmul (MXU).
            shifted = jnp.dot(sel_ref[t], h_bf16, preferred_element_type=f32)
            acc = acc + jnp.dot(shifted.astype(bf16), w_ref[t],
                                preferred_element_type=f32)
        return jnp.maximum(acc + b_ref[...], 0.0)

    x = x_ref[0]                                                   # [H*W, 512] bf16

    # unit_1: 1x1 (512->128) + 3x3 s2 p1 (128->256)
    h1 = conv1x1_relu(x, w1a_ref, b1a_ref).astype(bf16)            # [H*W, 128]
    s3 = conv3x3_relu(h1, sel1_ref, w1b_ref, b1b_ref)              # [M2, 256] f32
    # unit_2: 1x1 (256->64) + 3x3 s2 p1 (64->128)   (64-wide act never leaves VMEM)
    h2 = conv1x1_relu(s3.astype(bf16), w2a_ref, b2a_ref).astype(bf16)
    s4 = conv3x3_relu(h2, sel2_ref, w2b_ref, b2b_ref)              # [M3, 128] f32
    # unit_3: 1x1 (128->64) + 3x3 s1 p0 (64->128)
    h3 = conv1x1_relu(s4.astype(bf16), w3a_ref, b3a_ref).astype(bf16)
    s5 = conv3x3_relu(h3, sel3_ref, w3b_ref, b3b_ref)              # [M4, 128] f32

    s3_ref[0] = s3
    s4_ref[0] = s4
    s5_ref[0] = s5


# ----------------------------------------------------------------------------
# Host-side helpers (constants / one-time prep — not in the hot path)
# ----------------------------------------------------------------------------
def _conv_out(size, k, stride, pad):
    return (size + 2 * pad - k) // stride + 1


def _make_sel(H, W, k, stride, pad):
    """0/1 shift matrices: sel[t] @ x_flat == tap-t shifted (zero-padded) rows."""
    Ho, Wo = _conv_out(H, k, stride, pad), _conv_out(W, k, stride, pad)
    sel = np.zeros((k * k, Ho * Wo, H * W), np.float32)
    for i in range(k):
        for j in range(k):
            t = i * k + j
            for oh in range(Ho):
                for ow in range(Wo):
                    ih = oh * stride + i - pad
                    iw = ow * stride + j - pad
                    if 0 <= ih < H and 0 <= iw < W:
                        sel[t, oh * Wo + ow, ih * W + iw] = 1.0
    return sel


_SHAPES = [
    ("1a", 128, 512, 1, 1), ("1b", 256, 128, 3, 3),
    ("2a", 64, 256, 1, 1),  ("2b", 128, 64, 3, 3),
    ("3a", 64, 128, 1, 1),  ("3b", 128, 64, 3, 3),
]


def _kaiming_conv(key, cout, cin, kh, kw):
    # kaiming_normal_(mode='fan_out', nonlinearity='relu')
    fan_out = cout * kh * kw
    std = (2.0 / fan_out) ** 0.5
    return std * jax.random.normal(key, (cout, cin, kh, kw), jnp.float32)


def init_extras_params(key):
    keys = jax.random.split(key, len(_SHAPES))
    params = {}
    for k, (name, cout, cin, kh, kw) in zip(keys, _SHAPES):
        params["w" + name] = _kaiming_conv(k, cout, cin, kh, kw)   # OIHW (PyTorch)
        params["b" + name] = jnp.zeros((cout,), jnp.float32)
    return params


def prepare_params(params):
    """One-time layout prep (outside the jitted forward): OIHW -> matmul layout, bf16."""
    prep = {}
    for name, cout, cin, kh, kw in _SHAPES:
        w = params["w" + name]
        if kh == 1:
            prep["w" + name] = jnp.asarray(w[:, :, 0, 0].T, jnp.bfloat16)          # [Cin,Cout]
        else:
            wt = jnp.transpose(w, (2, 3, 1, 0)).reshape(kh * kw, cin, cout)
            prep["w" + name] = wt.astype(jnp.bfloat16)                             # [9,Cin,Cout]
        prep["b" + name] = params["b" + name].reshape(1, cout).astype(jnp.float32)
    return prep


# ----------------------------------------------------------------------------
# Extras.forward  (single fused pallas_call)
# ----------------------------------------------------------------------------
def extras_forward(prep, x_nchw):
    N, C, H, W = x_nchw.shape
    H2, W2 = _conv_out(H, 3, 2, 1), _conv_out(W, 3, 2, 1)    # after unit_1
    H3, W3 = _conv_out(H2, 3, 2, 1), _conv_out(W2, 3, 2, 1)  # after unit_2
    H4, W4 = _conv_out(H3, 3, 1, 0), _conv_out(W3, 3, 1, 0)  # after unit_3

    # NCHW -> per-image channels-last row matrix, bf16 MXU operands.
    x = jnp.transpose(x_nchw, (0, 2, 3, 1)).reshape(N, H * W, C).astype(jnp.bfloat16)

    # Shift/selection constants (depend only on static spatial shapes).
    sel1 = jnp.asarray(_make_sel(H, W, 3, 2, 1), jnp.bfloat16)      # [9, H2*W2, H*W]
    sel2 = jnp.asarray(_make_sel(H2, W2, 3, 2, 1), jnp.bfloat16)    # [9, H3*W3, H2*W2]
    sel3 = jnp.asarray(_make_sel(H3, W3, 3, 1, 0), jnp.bfloat16)    # [9, H4*W4, H3*W3]

    def shared(arr):  # full array, same block every grid step (stays in VMEM)
        z = (0,) * arr.ndim
        return pl.BlockSpec(arr.shape, lambda n, _z=z: _z)

    in_specs = [
        pl.BlockSpec((1, H * W, C), lambda n: (n, 0, 0)),
        shared(prep["w1a"]), shared(prep["b1a"]),
        shared(sel1), shared(prep["w1b"]), shared(prep["b1b"]),
        shared(prep["w2a"]), shared(prep["b2a"]),
        shared(sel2), shared(prep["w2b"]), shared(prep["b2b"]),
        shared(prep["w3a"]), shared(prep["b3a"]),
        shared(sel3), shared(prep["w3b"]), shared(prep["b3b"]),
    ]
    out_specs = (
        pl.BlockSpec((1, H2 * W2, 256), lambda n: (n, 0, 0)),
        pl.BlockSpec((1, H3 * W3, 128), lambda n: (n, 0, 0)),
        pl.BlockSpec((1, H4 * W4, 128), lambda n: (n, 0, 0)),
    )
    out_shape = (
        jax.ShapeDtypeStruct((N, H2 * W2, 256), jnp.float32),
        jax.ShapeDtypeStruct((N, H3 * W3, 128), jnp.float32),
        jax.ShapeDtypeStruct((N, H4 * W4, 128), jnp.float32),
    )

    s3f, s4f, s5f = pl.pallas_call(
        _extras_kernel,
        grid=(N,),                                   # batch axis -> both TCs on v7x
        in_specs=in_specs,
        out_specs=out_specs,
        out_shape=out_shape,
        compiler_params=pltpu.CompilerParams(dimension_semantics=("parallel",)),
    )(x,
      prep["w1a"], prep["b1a"], sel1, prep["w1b"], prep["b1b"],
      prep["w2a"], prep["b2a"], sel2, prep["w2b"], prep["b2b"],
      prep["w3a"], prep["b3a"], sel3, prep["w3b"], prep["b3b"])

    def to_nchw(t, Ho, Wo, Co):
        return jnp.transpose(t.reshape(N, Ho, Wo, Co), (0, 3, 1, 2))

    return (to_nchw(s3f, H2, W2, 256),
            to_nchw(s4f, H3, W3, 128),
            to_nchw(s5f, H4, W4, 128))


# ----------------------------------------------------------------------------
# Pure-JAX reference (f32, HIGHEST precision) for correctness check
# ----------------------------------------------------------------------------
def _ref_conv_relu(x_nchw, w, b, stride, padding):
    y = jax.lax.conv_general_dilated(
        x_nchw, w, (stride, stride),
        ((padding, padding), (padding, padding)),
        dimension_numbers=("NCHW", "OIHW", "NCHW"),
        precision=jax.lax.Precision.HIGHEST)
    return jax.nn.relu(y + b[None, :, None, None])


def extras_forward_ref(params, x_nchw):
    h = _ref_conv_relu(x_nchw, params["w1a"], params["b1a"], 1, 0)
    s3 = _ref_conv_relu(h, params["w1b"], params["b1b"], 2, 1)
    h = _ref_conv_relu(s3, params["w2a"], params["b2a"], 1, 0)
    s4 = _ref_conv_relu(h, params["w2b"], params["b2b"], 2, 1)
    h = _ref_conv_relu(s4, params["w3a"], params["b3a"], 1, 0)
    s5 = _ref_conv_relu(h, params["w3b"], params["b3b"], 1, 0)
    return s3, s4, s5


if __name__ == "__main__":
    root = jax.random.PRNGKey(0)
    kp, kx = jax.random.split(root)
    params = init_extras_params(kp)
    prep = prepare_params(params)      # one-time weight layout prep

    # Module requires 512 input channels; SSD-style 10x10 spatial.
    x = jax.random.normal(kx, (2, 512, 10, 10), jnp.float32)

    fwd = jax.jit(extras_forward)
    s3, s4, s5 = fwd(prep, x)
    jax.block_until_ready((s3, s4, s5))

    assert s3.shape == (2, 256, 5, 5), s3.shape
    assert s4.shape == (2, 128, 3, 3), s4.shape
    assert s5.shape == (2, 128, 1, 1), s5.shape

    r3, r4, r5 = extras_forward_ref(params, x)
    # bf16 MXU operands (f32 accumulation) vs all-f32 reference.
    np.testing.assert_allclose(np.asarray(s3), np.asarray(r3), rtol=3e-2, atol=3e-2)
    np.testing.assert_allclose(np.asarray(s4), np.asarray(r4), rtol=3e-2, atol=3e-2)
    np.testing.assert_allclose(np.asarray(s5), np.asarray(r5), rtol=3e-2, atol=3e-2)

    print("KERNEL_OK")
</pallas_src>

<mosaic_0001>
module attributes {stable_mosaic.version = 11 : i64} {
  func.func @_extras_kernel(%arg0: i32, %arg1: memref<1x100x512xbf16, #tpu.memory_space<vmem>>, %arg2: memref<512x128xbf16, #tpu.memory_space<vmem>>, %arg3: memref<1x128xf32, #tpu.memory_space<vmem>>, %arg4: memref<9x25x100xbf16, #tpu.memory_space<vmem>>, %arg5: memref<9x128x256xbf16, #tpu.memory_space<vmem>>, %arg6: memref<1x256xf32, #tpu.memory_space<vmem>>, %arg7: memref<256x64xbf16, #tpu.memory_space<vmem>>, %arg8: memref<1x64xf32, #tpu.memory_space<vmem>>, %arg9: memref<9x9x25xbf16, #tpu.memory_space<vmem>>, %arg10: memref<9x64x128xbf16, #tpu.memory_space<vmem>>, %arg11: memref<1x128xf32, #tpu.memory_space<vmem>>, %arg12: memref<128x64xbf16, #tpu.memory_space<vmem>>, %arg13: memref<1x64xf32, #tpu.memory_space<vmem>>, %arg14: memref<9x1x9xbf16, #tpu.memory_space<vmem>>, %arg15: memref<9x64x128xbf16, #tpu.memory_space<vmem>>, %arg16: memref<1x128xf32, #tpu.memory_space<vmem>>, %arg17: memref<1x25x256xf32, #tpu.memory_space<vmem>>, %arg18: memref<1x9x128xf32, #tpu.memory_space<vmem>>, %arg19: memref<1x1x128xf32, #tpu.memory_space<vmem>>) attributes {dimension_semantics = [#tpu.dimension_semantics<parallel>], iteration_bounds = array<i64: 2>, scalar_prefetch = 0 : i64, scratch_operands = 0 : i64, tpu.core_type = #tpu.core_type<tc>, window_params = [{transform_indices = @transform_0, window_bounds = array<i64: 1, 100, 512>}, {pipeline_mode = #tpu.pipeline_mode<synchronous>, transform_indices = @transform_1, window_bounds = array<i64: 512, 128>}, {pipeline_mode = #tpu.pipeline_mode<synchronous>, transform_indices = @transform_2, window_bounds = array<i64: 1, 128>}, {pipeline_mode = #tpu.pipeline_mode<synchronous>, transform_indices = @transform_3, window_bounds = array<i64: 9, 25, 100>}, {pipeline_mode = #tpu.pipeline_mode<synchronous>, transform_indices = @transform_4, window_bounds = array<i64: 9, 128, 256>}, {pipeline_mode = #tpu.pipeline_mode<synchronous>, transform_indices = @transform_5, window_bounds = array<i64: 1, 256>}, {pipeline_mode = #tpu.pipeline_mode<synchronous>, transform_indices = @transform_6, window_bounds = array<i64: 256, 64>}, {pipeline_mode = #tpu.pipeline_mode<synchronous>, transform_indices = @transform_7, window_bounds = array<i64: 1, 64>}, {pipeline_mode = #tpu.pipeline_mode<synchronous>, transform_indices = @transform_8, window_bounds = array<i64: 9, 9, 25>}, {pipeline_mode = #tpu.pipeline_mode<synchronous>, transform_indices = @transform_9, window_bounds = array<i64: 9, 64, 128>}, {pipeline_mode = #tpu.pipeline_mode<synchronous>, transform_indices = @transform_10, window_bounds = array<i64: 1, 128>}, {pipeline_mode = #tpu.pipeline_mode<synchronous>, transform_indices = @transform_11, window_bounds = array<i64: 128, 64>}, {pipeline_mode = #tpu.pipeline_mode<synchronous>, transform_indices = @transform_12, window_bounds = array<i64: 1, 64>}, {pipeline_mode = #tpu.pipeline_mode<synchronous>, transform_indices = @transform_13, window_bounds = array<i64: 9, 1, 9>}, {pipeline_mode = #tpu.pipeline_mode<synchronous>, transform_indices = @transform_14, window_bounds = array<i64: 9, 64, 128>}, {pipeline_mode = #tpu.pipeline_mode<synchronous>, transform_indices = @transform_15, window_bounds = array<i64: 1, 128>}, {transform_indices = @transform_16, window_bounds = array<i64: 1, 25, 256>}, {transform_indices = @transform_17, window_bounds = array<i64: 1, 9, 128>}, {transform_indices = @transform_18, window_bounds = array<i64: 1, 1, 128>}]} {
    %c0 = arith.constant 0 : index
    %c0_0 = arith.constant 0 : index
    %c0_1 = arith.constant 0 : index
    %0 = vector.load %arg1[%c0, %c0_0, %c0_1] : memref<1x100x512xbf16, #tpu.memory_space<vmem>>, vector<1x100x512xbf16>
    %1 = vector.shape_cast %0 : vector<1x100x512xbf16> to vector<100x512xbf16>
    %c0_2 = arith.constant 0 : index
    %c0_3 = arith.constant 0 : index
    %2 = vector.load %arg2[%c0_2, %c0_3] : memref<512x128xbf16, #tpu.memory_space<vmem>>, vector<512x128xbf16>
    %cst = arith.constant dense<0.000000e+00> : vector<100x128xf32>
    %3 = tpu.matmul %1, %2, %cst {dimension_numbers = #tpu.dot_dimension_numbers<[1], [0], [0], [1], [0, 0, 1, 1], [], []>} : vector<100x512xbf16>, vector<512x128xbf16>, vector<100x128xf32> -> vector<100x128xf32>
    %c0_4 = arith.constant 0 : index
    %c0_5 = arith.constant 0 : index
    %4 = vector.load %arg3[%c0_4, %c0_5] : memref<1x128xf32, #tpu.memory_space<vmem>>, vector<1x128xf32>
    %5 = vector.broadcast %4 : vector<1x128xf32> to vector<100x128xf32>
    %6 = arith.addf %3, %5 : vector<100x128xf32>
    %cst_6 = arith.constant 0.000000e+00 : f32
    %7 = vector.broadcast %cst_6 : f32 to vector<100x128xf32>
    %8 = arith.maximumf %6, %7 : vector<100x128xf32>
    %9 = arith.truncf %8 : vector<100x128xf32> to vector<100x128xbf16>
    %cst_7 = arith.constant 0.000000e+00 : f32
    %10 = vector.broadcast %cst_7 : f32 to vector<25x256xf32>
    %c0_8 = arith.constant 0 : index
    %c0_9 = arith.constant 0 : index
    %c0_10 = arith.constant 0 : index
    %11 = vector.load %arg4[%c0_8, %c0_9, %c0_10] : memref<9x25x100xbf16, #tpu.memory_space<vmem>>, vector<1x25x100xbf16>
    %12 = vector.shape_cast %11 : vector<1x25x100xbf16> to vector<25x100xbf16>
    %cst_11 = arith.constant dense<0.000000e+00> : vector<25x128xf32>
    %13 = tpu.matmul %12, %9, %cst_11 {dimension_numbers = #tpu.dot_dimension_numbers<[1], [0], [0], [1], [0, 0, 1, 1], [], []>} : vector<25x100xbf16>, vector<100x128xbf16>, vector<25x128xf32> -> vector<25x128xf32>
    %14 = arith.truncf %13 : vector<25x128xf32> to vector<25x128xbf16>
    %c0_12 = arith.constant 0 : index
    %c0_13 = arith.constant 0 : index
    %c0_14 = arith.constant 0 : index
    %15 = vector.load %arg5[%c0_12, %c0_13, %c0_14] : memref<9x128x256xbf16, #tpu.memory_space<vmem>>, vector<1x128x256xbf16>
    %16 = vector.shape_cast %15 : vector<1x128x256xbf16> to vector<128x256xbf16>
    %cst_15 = arith.constant dense<0.000000e+00> : vector<25x256xf32>
    %17 = tpu.matmul %14, %16, %cst_15 {dimension_numbers = #tpu.dot_dimension_numbers<[1], [0], [0], [1], [0, 0, 1, 1], [], []>} : vector<25x128xbf16>, vector<128x256xbf16>, vector<25x256xf32> -> vector<25x256xf32>
    %18 = arith.addf %10, %17 : vector<25x256xf32>
    %c1 = arith.constant 1 : index
    %c0_16 = arith.constant 0 : index
    %c0_17 = arith.constant 0 : index
    %19 = vector.load %arg4[%c1, %c0_16, %c0_17] : memref<9x25x100xbf16, #tpu.memory_space<vmem>>, vector<1x25x100xbf16>
    %20 = vector.shape_cast %19 : vector<1x25x100xbf16> to vector<25x100xbf16>
    %cst_18 = arith.constant dense<0.000000e+00> : vector<25x128xf32>
    %21 = tpu.matmul %20, %9, %cst_18 {dimension_numbers = #tpu.dot_dimension_numbers<[1], [0], [0], [1], [0, 0, 1, 1], [], []>} : vector<25x100xbf16>, vector<100x128xbf16>, vector<25x128xf32> -> vector<25x128xf32>
    %22 = arith.truncf %21 : vector<25x128xf32> to vector<25x128xbf16>
    %c1_19 = arith.constant 1 : index
    %c0_20 = arith.constant 0 : index
    %c0_21 = arith.constant 0 : index
    %23 = vector.load %arg5[%c1_19, %c0_20, %c0_21] : memref<9x128x256xbf16, #tpu.memory_space<vmem>>, vector<1x128x256xbf16>
    %24 = vector.shape_cast %23 : vector<1x128x256xbf16> to vector<128x256xbf16>
    %cst_22 = arith.constant dense<0.000000e+00> : vector<25x256xf32>
    %25 = tpu.matmul %22, %24, %cst_22 {dimension_numbers = #tpu.dot_dimension_numbers<[1], [0], [0], [1], [0, 0, 1, 1], [], []>} : vector<25x128xbf16>, vector<128x256xbf16>, vector<25x256xf32> -> vector<25x256xf32>
    %26 = arith.addf %18, %25 : vector<25x256xf32>
    %c2 = arith.constant 2 : index
    %c0_23 = arith.constant 0 : index
    %c0_24 = arith.constant 0 : index
    %27 = vector.load %arg4[%c2, %c0_23, %c0_24] : memref<9x25x100xbf16, #tpu.memory_space<vmem>>, vector<1x25x100xbf16>
    %28 = vector.shape_cast %27 : vector<1x25x100xbf16> to vector<25x100xbf16>
    %cst_25 = arith.constant dense<0.000000e+00> : vector<25x128xf32>
    %29 = tpu.matmul %28, %9, %cst_25 {dimension_numbers = #tpu.dot_dimension_numbers<[1], [0], [0], [1], [0, 0, 1, 1], [], []>} : vector<25x100xbf16>, vector<100x128xbf16>, vector<25x128xf32> -> vector<25x128xf32>
    %30 = arith.truncf %29 : vector<25x128xf32> to vector<25x128xbf16>
    %c2_26 = arith.constant 2 : index
    %c0_27 = arith.constant 0 : index
    %c0_28 = arith.constant 0 : index
    %31 = vector.load %arg5[%c2_26, %c0_27, %c0_28] : memref<9x128x256xbf16, #tpu.memory_space<vmem>>, vector<1x128x256xbf16>
    %32 = vector.shape_cast %31 : vector<1x128x256xbf16> to vector<128x256xbf16>
    %cst_29 = arith.constant dense<0.000000e+00> : vector<25x256xf32>
    %33 = tpu.matmul %30, %32, %cst_29 {dimension_numbers = #tpu.dot_dimension_numbers<[1], [0], [0], [1], [0, 0, 1, 1], [], []>} : vector<25x128xbf16>, vector<128x256xbf16>, vector<25x256xf32> -> vector<25x256xf32>
    %34 = arith.addf %26, %33 : vector<25x256xf32>
    %c3 = arith.constant 3 : index
    %c0_30 = arith.constant 0 : index
    %c0_31 = arith.constant 0 : index
    %35 = vector.load %arg4[%c3, %c0_30, %c0_31] : memref<9x25x100xbf16, #tpu.memory_space<vmem>>, vector<1x25x100xbf16>
    %36 = vector.shape_cast %35 : vector<1x25x100xbf16> to vector<25x100xbf16>
    %cst_32 = arith.constant dense<0.000000e+00> : vector<25x128xf32>
    %37 = tpu.matmul %36, %9, %cst_32 {dimension_numbers = #tpu.dot_dimension_numbers<[1], [0], [0], [1], [0, 0, 1, 1], [], []>} : vector<25x100xbf16>, vector<100x128xbf16>, vector<25x128xf32> -> vector<25x128xf32>
    %38 = arith.truncf %37 : vector<25x128xf32> to vector<25x128xbf16>
    %c3_33 = arith.constant 3 : index
    %c0_34 = arith.constant 0 : index
    %c0_35 = arith.constant 0 : index
    %39 = vector.load %arg5[%c3_33, %c0_34, %c0_35] : memref<9x128x256xbf16, #tpu.memory_space<vmem>>, vector<1x128x256xbf16>
    %40 = vector.shape_cast %39 : vector<1x128x256xbf16> to vector<128x256xbf16>
    %cst_36 = arith.constant dense<0.000000e+00> : vector<25x256xf32>
    %41 = tpu.matmul %38, %40, %cst_36 {dimension_numbers = #tpu.dot_dimension_numbers<[1], [0], [0], [1], [0, 0, 1, 1], [], []>} : vector<25x128xbf16>, vector<128x256xbf16>, vector<25x256xf32> -> vector<25x256xf32>
    %42 = arith.addf %34, %41 : vector<25x256xf32>
    %c4 = arith.constant 4 : index
    %c0_37 = arith.constant 0 : index
    %c0_38 = arith.constant 0 : index
    %43 = vector.load %arg4[%c4, %c0_37, %c0_38] : memref<9x25x100xbf16, #tpu.memory_space<vmem>>, vector<1x25x100xbf16>
    %44 = vector.shape_cast %43 : vector<1x25x100xbf16> to vector<25x100xbf16>
    %cst_39 = arith.constant dense<0.000000e+00> : vector<25x128xf32>
    %45 = tpu.matmul %44, %9, %cst_39 {dimension_numbers = #tpu.dot_dimension_numbers<[1], [0], [0], [1], [0, 0, 1, 1], [], []>} : vector<25x100xbf16>, vector<100x128xbf16>, vector<25x128xf32> -> vector<25x128xf32>
    %46 = arith.truncf %45 : vector<25x128xf32> to vector<25x128xbf16>
    %c4_40 = arith.constant 4 : index
    %c0_41 = arith.constant 0 : index
    %c0_42 = arith.constant 0 : index
    %47 = vector.load %arg5[%c4_40, %c0_41, %c0_42] : memref<9x128x256xbf16, #tpu.memory_space<vmem>>, vector<1x128x256xbf16>
    %48 = vector.shape_cast %47 : vector<1x128x256xbf16> to vector<128x256xbf16>
    %cst_43 = arith.constant dense<0.000000e+00> : vector<25x256xf32>
    %49 = tpu.matmul %46, %48, %cst_43 {dimension_numbers = #tpu.dot_dimension_numbers<[1], [0], [0], [1], [0, 0, 1, 1], [], []>} : vector<25x128xbf16>, vector<128x256xbf16>, vector<25x256xf32> -> vector<25x256xf32>
    %50 = arith.addf %42, %49 : vector<25x256xf32>
    %c5 = arith.constant 5 : index
    %c0_44 = arith.constant 0 : index
    %c0_45 = arith.constant 0 : index
    %51 = vector.load %arg4[%c5, %c0_44, %c0_45] : memref<9x25x100xbf16, #tpu.memory_space<vmem>>, vector<1x25x100xbf16>
    %52 = vector.shape_cast %51 : vector<1x25x100xbf16> to vector<25x100xbf16>
    %cst_46 = arith.constant dense<0.000000e+00> : vector<25x128xf32>
    %53 = tpu.matmul %52, %9, %cst_46 {dimension_numbers = #tpu.dot_dimension_numbers<[1], [0], [0], [1], [0, 0, 1, 1], [], []>} : vector<25x100xbf16>, vector<100x128xbf16>, vector<25x128xf32> -> vector<25x128xf32>
    %54 = arith.truncf %53 : vector<25x128xf32> to vector<25x128xbf16>
    %c5_47 = arith.constant 5 : index
    %c0_48 = arith.constant 0 : index
    %c0_49 = arith.constant 0 : index
    %55 = vector.load %arg5[%c5_47, %c0_48, %c0_49] : memref<9x128x256xbf16, #tpu.memory_space<vmem>>, vector<1x128x256xbf16>
    %56 = vector.shape_cast %55 : vector<1x128x256xbf16> to vector<128x256xbf16>
    %cst_50 = arith.constant dense<0.000000e+00> : vector<25x256xf32>
    %57 = tpu.matmul %54, %56, %cst_50 {dimension_numbers = #tpu.dot_dimension_numbers<[1], [0], [0], [1], [0, 0, 1, 1], [], []>} : vector<25x128xbf16>, vector<128x256xbf16>, vector<25x256xf32> -> vector<25x256xf32>
    %58 = arith.addf %50, %57 : vector<25x256xf32>
    %c6 = arith.constant 6 : index
    %c0_51 = arith.constant 0 : index
    %c0_52 = arith.constant 0 : index
    %59 = vector.load %arg4[%c6, %c0_51, %c0_52] : memref<9x25x100xbf16, #tpu.memory_space<vmem>>, vector<1x25x100xbf16>
    %60 = vector.shape_cast %59 : vector<1x25x100xbf16> to vector<25x100xbf16>
    %cst_53 = arith.constant dense<0.000000e+00> : vector<25x128xf32>
    %61 = tpu.matmul %60, %9, %cst_53 {dimension_numbers = #tpu.dot_dimension_numbers<[1], [0], [0], [1], [0, 0, 1, 1], [], []>} : vector<25x100xbf16>, vector<100x128xbf16>, vector<25x128xf32> -> vector<25x128xf32>
    %62 = arith.truncf %61 : vector<25x128xf32> to vector<25x128xbf16>
    %c6_54 = arith.constant 6 : index
    %c0_55 = arith.constant 0 : index
    %c0_56 = arith.constant 0 : index
    %63 = vector.load %arg5[%c6_54, %c0_55, %c0_56] : memref<9x128x256xbf16, #tpu.memory_space<vmem>>, vector<1x128x256xbf16>
    %64 = vector.shape_cast %63 : vector<1x128x256xbf16> to vector<128x256xbf16>
    %cst_57 = arith.constant dense<0.000000e+00> : vector<25x256xf32>
    %65 = tpu.matmul %62, %64, %cst_57 {dimension_numbers = #tpu.dot_dimension_numbers<[1], [0], [0], [1], [0, 0, 1, 1], [], []>} : vector<25x128xbf16>, vector<128x256xbf16>, vector<25x256xf32> -> vector<25x256xf32>
    %66 = arith.addf %58, %65 : vector<25x256xf32>
    %c7 = arith.constant 7 : index
    %c0_58 = arith.constant 0 : index
    %c0_59 = arith.constant 0 : index
    %67 = vector.load %arg4[%c7, %c0_58, %c0_59] : memref<9x25x100xbf16, #tpu.memory_space<vmem>>, vector<1x25x100xbf16>
    %68 = vector.shape_cast %67 : vector<1x25x100xbf16> to vector<25x100xbf16>
    %cst_60 = arith.constant dense<0.000000e+00> : vector<25x128xf32>
    %69 = tpu.matmul %68, %9, %cst_60 {dimension_numbers = #tpu.dot_dimension_numbers<[1], [0], [0], [1], [0, 0, 1, 1], [], []>} : vector<25x100xbf16>, vector<100x128xbf16>, vector<25x128xf32> -> vector<25x128xf32>
    %70 = arith.truncf %69 : vector<25x128xf32> to vector<25x128xbf16>
    %c7_61 = arith.constant 7 : index
    %c0_62 = arith.constant 0 : index
    %c0_63 = arith.constant 0 : index
    %71 = vector.load %arg5[%c7_61, %c0_62, %c0_63] : memref<9x128x256xbf16, #tpu.memory_space<vmem>>, vector<1x128x256xbf16>
    %72 = vector.shape_cast %71 : vector<1x128x256xbf16> to vector<128x256xbf16>
    %cst_64 = arith.constant dense<0.000000e+00> : vector<25x256xf32>
    %73 = tpu.matmul %70, %72, %cst_64 {dimension_numbers = #tpu.dot_dimension_numbers<[1], [0], [0], [1], [0, 0, 1, 1], [], []>} : vector<25x128xbf16>, vector<128x256xbf16>, vector<25x256xf32> -> vector<25x256xf32>
    %74 = arith.addf %66, %73 : vector<25x256xf32>
    %c8 = arith.constant 8 : index
    %c0_65 = arith.constant 0 : index
    %c0_66 = arith.constant 0 : index
    %75 = vector.load %arg4[%c8, %c0_65, %c0_66] : memref<9x25x100xbf16, #tpu.memory_space<vmem>>, vector<1x25x100xbf16>
    %76 = vector.shape_cast %75 : vector<1x25x100xbf16> to vector<25x100xbf16>
    %cst_67 = arith.constant dense<0.000000e+00> : vector<25x128xf32>
    %77 = tpu.matmul %76, %9, %cst_67 {dimension_numbers = #tpu.dot_dimension_numbers<[1], [0], [0], [1], [0, 0, 1, 1], [], []>} : vector<25x100xbf16>, vector<100x128xbf16>, vector<25x128xf32> -> vector<25x128xf32>
    %78 = arith.truncf %77 : vector<25x128xf32> to vector<25x128xbf16>
    %c8_68 = arith.constant 8 : index
    %c0_69 = arith.constant 0 : index
    %c0_70 = arith.constant 0 : index
    %79 = vector.load %arg5[%c8_68, %c0_69, %c0_70] : memref<9x128x256xbf16, #tpu.memory_space<vmem>>, vector<1x128x256xbf16>
    %80 = vector.shape_cast %79 : vector<1x128x256xbf16> to vector<128x256xbf16>
    %cst_71 = arith.constant dense<0.000000e+00> : vector<25x256xf32>
    %81 = tpu.matmul %78, %80, %cst_71 {dimension_numbers = #tpu.dot_dimension_numbers<[1], [0], [0], [1], [0, 0, 1, 1], [], []>} : vector<25x128xbf16>, vector<128x256xbf16>, vector<25x256xf32> -> vector<25x256xf32>
    %82 = arith.addf %74, %81 : vector<25x256xf32>
    %c0_72 = arith.constant 0 : index
    %c0_73 = arith.constant 0 : index
    %83 = vector.load %arg6[%c0_72, %c0_73] : memref<1x256xf32, #tpu.memory_space<vmem>>, vector<1x256xf32>
    %84 = vector.broadcast %83 : vector<1x256xf32> to vector<25x256xf32>
    %85 = arith.addf %82, %84 : vector<25x256xf32>
    %cst_74 = arith.constant 0.000000e+00 : f32
    %86 = vector.broadcast %cst_74 : f32 to vector<25x256xf32>
    %87 = arith.maximumf %85, %86 : vector<25x256xf32>
    %88 = arith.truncf %87 : vector<25x256xf32> to vector<25x256xbf16>
    %c0_75 = arith.constant 0 : index
    %c0_76 = arith.constant 0 : index
    %89 = vector.load %arg7[%c0_75, %c0_76] : memref<256x64xbf16, #tpu.memory_space<vmem>>, vector<256x64xbf16>
    %cst_77 = arith.constant dense<0.000000e+00> : vector<25x64xf32>
    %90 = tpu.matmul %88, %89, %cst_77 {dimension_numbers = #tpu.dot_dimension_numbers<[1], [0], [0], [1], [0, 0, 1, 1], [], []>} : vector<25x256xbf16>, vector<256x64xbf16>, vector<25x64xf32> -> vector<25x64xf32>
    %c0_78 = arith.constant 0 : index
    %c0_79 = arith.constant 0 : index
    %91 = vector.load %arg8[%c0_78, %c0_79] : memref<1x64xf32, #tpu.memory_space<vmem>>, vector<1x64xf32>
    %92 = vector.broadcast %91 : vector<1x64xf32> to vector<25x64xf32>
    %93 = arith.addf %90, %92 : vector<25x64xf32>
    %cst_80 = arith.constant 0.000000e+00 : f32
    %94 = vector.broadcast %cst_80 : f32 to vector<25x64xf32>
    %95 = arith.maximumf %93, %94 : vector<25x64xf32>
    %96 = arith.truncf %95 : vector<25x64xf32> to vector<25x64xbf16>
    %cst_81 = arith.constant 0.000000e+00 : f32
    %97 = vector.broadcast %cst_81 : f32 to vector<9x128xf32>
    %c0_82 = arith.constant 0 : index
    %c0_83 = arith.constant 0 : index
    %c0_84 = arith.constant 0 : index
    %98 = vector.load %arg9[%c0_82, %c0_83, %c0_84] : memref<9x9x25xbf16, #tpu.memory_space<vmem>>, vector<1x9x25xbf16>
    %99 = vector.shape_cast %98 : vector<1x9x25xbf16> to vector<9x25xbf16>
    %cst_85 = arith.constant dense<0.000000e+00> : vector<9x64xf32>
    %100 = tpu.matmul %99, %96, %cst_85 {dimension_numbers = #tpu.dot_dimension_numbers<[1], [0], [0], [1], [0, 0, 1, 1], [], []>} : vector<9x25xbf16>, vector<25x64xbf16>, vector<9x64xf32> -> vector<9x64xf32>
    %101 = arith.truncf %100 : vector<9x64xf32> to vector<9x64xbf16>
    %c0_86 = arith.constant 0 : index
    %c0_87 = arith.constant 0 : index
    %c0_88 = arith.constant 0 : index
    %102 = vector.load %arg10[%c0_86, %c0_87, %c0_88] : memref<9x64x128xbf16, #tpu.memory_space<vmem>>, vector<1x64x128xbf16>
    %103 = vector.shape_cast %102 : vector<1x64x128xbf16> to vector<64x128xbf16>
    %cst_89 = arith.constant dense<0.000000e+00> : vector<9x128xf32>
    %104 = tpu.matmul %101, %103, %cst_89 {dimension_numbers = #tpu.dot_dimension_numbers<[1], [0], [0], [1], [0, 0, 1, 1], [], []>} : vector<9x64xbf16>, vector<64x128xbf16>, vector<9x128xf32> -> vector<9x128xf32>
    %105 = arith.addf %97, %104 : vector<9x128xf32>
    %c1_90 = arith.constant 1 : index
    %c0_91 = arith.constant 0 : index
    %c0_92 = arith.constant 0 : index
    %106 = vector.load %arg9[%c1_90, %c0_91, %c0_92] : memref<9x9x25xbf16, #tpu.memory_space<vmem>>, vector<1x9x25xbf16>
    %107 = vector.shape_cast %106 : vector<1x9x25xbf16> to vector<9x25xbf16>
    %cst_93 = arith.constant dense<0.000000e+00> : vector<9x64xf32>
    %108 = tpu.matmul %107, %96, %cst_93 {dimension_numbers = #tpu.dot_dimension_numbers<[1], [0], [0], [1], [0, 0, 1, 1], [], []>} : vector<9x25xbf16>, vector<25x64xbf16>, vector<9x64xf32> -> vector<9x64xf32>
    %109 = arith.truncf %108 : vector<9x64xf32> to vector<9x64xbf16>
    %c1_94 = arith.constant 1 : index
    %c0_95 = arith.constant 0 : index
    %c0_96 = arith.constant 0 : index
    %110 = vector.load %arg10[%c1_94, %c0_95, %c0_96] : memref<9x64x128xbf16, #tpu.memory_space<vmem>>, vector<1x64x128xbf16>
    %111 = vector.shape_cast %110 : vector<1x64x128xbf16> to vector<64x128xbf16>
    %cst_97 = arith.constant dense<0.000000e+00> : vector<9x128xf32>
    %112 = tpu.matmul %109, %111, %cst_97 {dimension_numbers = #tpu.dot_dimension_numbers<[1], [0], [0], [1], [0, 0, 1, 1], [], []>} : vector<9x64xbf16>, vector<64x128xbf16>, vector<9x128xf32> -> vector<9x128xf32>
    %113 = arith.addf %105, %112 : vector<9x128xf32>
    %c2_98 = arith.constant 2 : index
    %c0_99 = arith.constant 0 : index
    %c0_100 = arith.constant 0 : index
    %114 = vector.load %arg9[%c2_98, %c0_99, %c0_100] : memref<9x9x25xbf16, #tpu.memory_space<vmem>>, vector<1x9x25xbf16>
    %115 = vector.shape_cast %114 : vector<1x9x25xbf16> to vector<9x25xbf16>
    %cst_101 = arith.constant dense<0.000000e+00> : vector<9x64xf32>
    %116 = tpu.matmul %115, %96, %cst_101 {dimension_numbers = #tpu.dot_dimension_numbers<[1], [0], [0], [1], [0, 0, 1, 1], [], []>} : vector<9x25xbf16>, vector<25x64xbf16>, vector<9x64xf32> -> vector<9x64xf32>
    %117 = arith.truncf %116 : vector<9x64xf32> to vector<9x64xbf16>
    %c2_102 = arith.constant 2 : index
    %c0_103 = arith.constant 0 : index
    %c0_104 = arith.constant 0 : index
    %118 = vector.load %arg10[%c2_102, %c0_103, %c0_104] : memref<9x64x128xbf16, #tpu.memory_space<vmem>>, vector<1x64x128xbf16>
    %119 = vector.shape_cast %118 : vector<1x64x128xbf16> to vector<64x128xbf16>
    %cst_105 = arith.constant dense<0.000000e+00> : vector<9x128xf32>
    %120 = tpu.matmul %117, %119, %cst_105 {dimension_numbers = #tpu.dot_dimension_numbers<[1], [0], [0], [1], [0, 0, 1, 1], [], []>} : vector<9x64xbf16>, vector<64x128xbf16>, vector<9x128xf32> -> vector<9x128xf32>
    %121 = arith.addf %113, %120 : vector<9x128xf32>
    %c3_106 = arith.constant 3 : index
    %c0_107 = arith.constant 0 : index
    %c0_108 = arith.constant 0 : index
    %122 = vector.load %arg9[%c3_106, %c0_107, %c0_108] : memref<9x9x25xbf16, #tpu.memory_space<vmem>>, vector<1x9x25xbf16>
    %123 = vector.shape_cast %122 : vector<1x9x25xbf16> to vector<9x25xbf16>
    %cst_109 = arith.constant dense<0.000000e+00> : vector<9x64xf32>
    %124 = tpu.matmul %123, %96, %cst_109 {dimension_numbers = #tpu.dot_dimension_numbers<[1], [0], [0], [1], [0, 0, 1, 1], [], []>} : vector<9x25xbf16>, vector<25x64xbf16>, vector<9x64xf32> -> vector<9x64xf32>
    %125 = arith.truncf %124 : vector<9x64xf32> to vector<9x64xbf16>
    %c3_110 = arith.constant 3 : index
    %c0_111 = arith.constant 0 : index
    %c0_112 = arith.constant 0 : index
    %126 = vector.load %arg10[%c3_110, %c0_111, %c0_112] : memref<9x64x128xbf16, #tpu.memory_space<vmem>>, vector<1x64x128xbf16>
    %127 = vector.shape_cast %126 : vector<1x64x128xbf16> to vector<64x128xbf16>
    %cst_113 = arith.constant dense<0.000000e+00> : vector<9x128xf32>
    %128 = tpu.matmul %125, %127, %cst_113 {dimension_numbers = #tpu.dot_dimension_numbers<[1], [0], [0], [1], [0, 0, 1, 1], [], []>} : vector<9x64xbf16>, vector<64x128xbf16>, vector<9x128xf32> -> vector<9x128xf32>
    %129 = arith.addf %121, %128 : vector<9x128xf32>
    %c4_114 = arith.constant 4 : index
    %c0_115 = arith.constant 0 : index
    %c0_116 = arith.constant 0 : index
    %130 = vector.load %arg9[%c4_114, %c0_115, %c0_116] : memref<9x9x25xbf16, #tpu.memory_space<vmem>>, vector<1x9x25xbf16>
    %131 = vector.shape_cast %130 : vector<1x9x25xbf16> to vector<9x25xbf16>
    %cst_117 = arith.constant dense<0.000000e+00> : vector<9x64xf32>
    %132 = tpu.matmul %131, %96, %cst_117 {dimension_numbers = #tpu.dot_dimension_numbers<[1], [0], [0], [1], [0, 0, 1, 1], [], []>} : vector<9x25xbf16>, vector<25x64xbf16>, vector<9x64xf32> -> vector<9x64xf32>
    %133 = arith.truncf %132 : vector<9x64xf32> to vector<9x64xbf16>
    %c4_118 = arith.constant 4 : index
    %c0_119 = arith.constant 0 : index
    %c0_120 = arith.constant 0 : index
    %134 = vector.load %arg10[%c4_118, %c0_119, %c0_120] : memref<9x64x128xbf16, #tpu.memory_space<vmem>>, vector<1x64x128xbf16>
    %135 = vector.shape_cast %134 : vector<1x64x128xbf16> to vector<64x128xbf16>
    %cst_121 = arith.constant dense<0.000000e+00> : vector<9x128xf32>
    %136 = tpu.matmul %133, %135, %cst_121 {dimension_numbers = #tpu.dot_dimension_numbers<[1], [0], [0], [1], [0, 0, 1, 1], [], []>} : vector<9x64xbf16>, vector<64x128xbf16>, vector<9x128xf32> -> vector<9x128xf32>
    %137 = arith.addf %129, %136 : vector<9x128xf32>
    %c5_122 = arith.constant 5 : index
    %c0_123 = arith.constant 0 : index
    %c0_124 = arith.constant 0 : index
    %138 = vector.load %arg9[%c5_122, %c0_123, %c0_124] : memref<9x9x25xbf16, #tpu.memory_space<vmem>>, vector<1x9x25xbf16>
    %139 = vector.shape_cast %138 : vector<1x9x25xbf16> to vector<9x25xbf16>
    %cst_125 = arith.constant dense<0.000000e+00> : vector<9x64xf32>
    %140 = tpu.matmul %139, %96, %cst_125 {dimension_numbers = #tpu.dot_dimension_numbers<[1], [0], [0], [1], [0, 0, 1, 1], [], []>} : vector<9x25xbf16>, vector<25x64xbf16>, vector<9x64xf32> -> vector<9x64xf32>
    %141 = arith.truncf %140 : vector<9x64xf32> to vector<9x64xbf16>
    %c5_126 = arith.constant 5 : index
    %c0_127 = arith.constant 0 : index
    %c0_128 = arith.constant 0 : index
    %142 = vector.load %arg10[%c5_126, %c0_127, %c0_128] : memref<9x64x128xbf16, #tpu.memory_space<vmem>>, vector<1x64x128xbf16>
    %143 = vector.shape_cast %142 : vector<1x64x128xbf16> to vector<64x128xbf16>
    %cst_129 = arith.constant dense<0.000000e+00> : vector<9x128xf32>
    %144 = tpu.matmul %141, %143, %cst_129 {dimension_numbers = #tpu.dot_dimension_numbers<[1], [0], [0], [1], [0, 0, 1, 1], [], []>} : vector<9x64xbf16>, vector<64x128xbf16>, vector<9x128xf32> -> vector<9x128xf32>
    %145 = arith.addf %137, %144 : vector<9x128xf32>
    %c6_130 = arith.constant 6 : index
    %c0_131 = arith.constant 0 : index
    %c0_132 = arith.constant 0 : index
    %146 = vector.load %arg9[%c6_130, %c0_131, %c0_132] : memref<9x9x25xbf16, #tpu.memory_space<vmem>>, vector<1x9x25xbf16>
    %147 = vector.shape_cast %146 : vector<1x9x25xbf16> to vector<9x25xbf16>
    %cst_133 = arith.constant dense<0.000000e+00> : vector<9x64xf32>
    %148 = tpu.matmul %147, %96, %cst_133 {dimension_numbers = #tpu.dot_dimension_numbers<[1], [0], [0], [1], [0, 0, 1, 1], [], []>} : vector<9x25xbf16>, vector<25x64xbf16>, vector<9x64xf32> -> vector<9x64xf32>
    %149 = arith.truncf %148 : vector<9x64xf32> to vector<9x64xbf16>
    %c6_134 = arith.constant 6 : index
    %c0_135 = arith.constant 0 : index
    %c0_136 = arith.constant 0 : index
    %150 = vector.load %arg10[%c6_134, %c0_135, %c0_136] : memref<9x64x128xbf16, #tpu.memory_space<vmem>>, vector<1x64x128xbf16>
    %151 = vector.shape_cast %150 : vector<1x64x128xbf16> to vector<64x128xbf16>
    %cst_137 = arith.constant dense<0.000000e+00> : vector<9x128xf32>
    %152 = tpu.matmul %149, %151, %cst_137 {dimension_numbers = #tpu.dot_dimension_numbers<[1], [0], [0], [1], [0, 0, 1, 1], [], []>} : vector<9x64xbf16>, vector<64x128xbf16>, vector<9x128xf32> -> vector<9x128xf32>
    %153 = arith.addf %145, %152 : vector<9x128xf32>
    %c7_138 = arith.constant 7 : index
    %c0_139 = arith.constant 0 : index
    %c0_140 = arith.constant 0 : index
    %154 = vector.load %arg9[%c7_138, %c0_139, %c0_140] : memref<9x9x25xbf16, #tpu.memory_space<vmem>>, vector<1x9x25xbf16>
    %155 = vector.shape_cast %154 : vector<1x9x25xbf16> to vector<9x25xbf16>
    %cst_141 = arith.constant dense<0.000000e+00> : vector<9x64xf32>
    %156 = tpu.matmul %155, %96, %cst_141 {dimension_numbers = #tpu.dot_dimension_numbers<[1], [0], [0], [1], [0, 0, 1, 1], [], []>} : vector<9x25xbf16>, vector<25x64xbf16>, vector<9x64xf32> -> vector<9x64xf32>
    %157 = arith.truncf %156 : vector<9x64xf32> to vector<9x64xbf16>
    %c7_142 = arith.constant 7 : index
    %c0_143 = arith.constant 0 : index
    %c0_144 = arith.constant 0 : index
    %158 = vector.load %arg10[%c7_142, %c0_143, %c0_144] : memref<9x64x128xbf16, #tpu.memory_space<vmem>>, vector<1x64x128xbf16>
    %159 = vector.shape_cast %158 : vector<1x64x128xbf16> to vector<64x128xbf16>
    %cst_145 = arith.constant dense<0.000000e+00> : vector<9x128xf32>
    %160 = tpu.matmul %157, %159, %cst_145 {dimension_numbers = #tpu.dot_dimension_numbers<[1], [0], [0], [1], [0, 0, 1, 1], [], []>} : vector<9x64xbf16>, vector<64x128xbf16>, vector<9x128xf32> -> vector<9x128xf32>
    %161 = arith.addf %153, %160 : vector<9x128xf32>
    %c8_146 = arith.constant 8 : index
    %c0_147 = arith.constant 0 : index
    %c0_148 = arith.constant 0 : index
    %162 = vector.load %arg9[%c8_146, %c0_147, %c0_148] : memref<9x9x25xbf16, #tpu.memory_space<vmem>>, vector<1x9x25xbf16>
    %163 = vector.shape_cast %162 : vector<1x9x25xbf16> to vector<9x25xbf16>
    %cst_149 = arith.constant dense<0.000000e+00> : vector<9x64xf32>
    %164 = tpu.matmul %163, %96, %cst_149 {dimension_numbers = #tpu.dot_dimension_numbers<[1], [0], [0], [1], [0, 0, 1, 1], [], []>} : vector<9x25xbf16>, vector<25x64xbf16>, vector<9x64xf32> -> vector<9x64xf32>
    %165 = arith.truncf %164 : vector<9x64xf32> to vector<9x64xbf16>
    %c8_150 = arith.constant 8 : index
    %c0_151 = arith.constant 0 : index
    %c0_152 = arith.constant 0 : index
    %166 = vector.load %arg10[%c8_150, %c0_151, %c0_152] : memref<9x64x128xbf16, #tpu.memory_space<vmem>>, vector<1x64x128xbf16>
    %167 = vector.shape_cast %166 : vector<1x64x128xbf16> to vector<64x128xbf16>
    %cst_153 = arith.constant dense<0.000000e+00> : vector<9x128xf32>
    %168 = tpu.matmul %165, %167, %cst_153 {dimension_numbers = #tpu.dot_dimension_numbers<[1], [0], [0], [1], [0, 0, 1, 1], [], []>} : vector<9x64xbf16>, vector<64x128xbf16>, vector<9x128xf32> -> vector<9x128xf32>
    %169 = arith.addf %161, %168 : vector<9x128xf32>
    %c0_154 = arith.constant 0 : index
    %c0_155 = arith.constant 0 : index
    %170 = vector.load %arg11[%c0_154, %c0_155] : memref<1x128xf32, #tpu.memory_space<vmem>>, vector<1x128xf32>
    %171 = vector.broadcast %170 : vector<1x128xf32> to vector<9x128xf32>
    %172 = arith.addf %169, %171 : vector<9x128xf32>
    %cst_156 = arith.constant 0.000000e+00 : f32
    %173 = vector.broadcast %cst_156 : f32 to vector<9x128xf32>
    %174 = arith.maximumf %172, %173 : vector<9x128xf32>
    %175 = arith.truncf %174 : vector<9x128xf32> to vector<9x128xbf16>
    %c0_157 = arith.constant 0 : index
    %c0_158 = arith.constant 0 : index
    %176 = vector.load %arg12[%c0_157, %c0_158] : memref<128x64xbf16, #tpu.memory_space<vmem>>, vector<128x64xbf16>
    %cst_159 = arith.constant dense<0.000000e+00> : vector<9x64xf32>
    %177 = tpu.matmul %175, %176, %cst_159 {dimension_numbers = #tpu.dot_dimension_numbers<[1], [0], [0], [1], [0, 0, 1, 1], [], []>} : vector<9x128xbf16>, vector<128x64xbf16>, vector<9x64xf32> -> vector<9x64xf32>
    %c0_160 = arith.constant 0 : index
    %c0_161 = arith.constant 0 : index
    %178 = vector.load %arg13[%c0_160, %c0_161] : memref<1x64xf32, #tpu.memory_space<vmem>>, vector<1x64xf32>
    %179 = vector.broadcast %178 : vector<1x64xf32> to vector<9x64xf32>
    %180 = arith.addf %177, %179 : vector<9x64xf32>
    %cst_162 = arith.constant 0.000000e+00 : f32
    %181 = vector.broadcast %cst_162 : f32 to vector<9x64xf32>
    %182 = arith.maximumf %180, %181 : vector<9x64xf32>
    %183 = arith.truncf %182 : vector<9x64xf32> to vector<9x64xbf16>
    %cst_163 = arith.constant 0.000000e+00 : f32
    %184 = vector.broadcast %cst_163 : f32 to vector<1x128xf32>
    %c0_164 = arith.constant 0 : index
    %c0_165 = arith.constant 0 : index
    %c0_166 = arith.constant 0 : index
    %185 = vector.load %arg14[%c0_164, %c0_165, %c0_166] : memref<9x1x9xbf16, #tpu.memory_space<vmem>>, vector<1x1x9xbf16>
    %186 = vector.shape_cast %185 : vector<1x1x9xbf16> to vector<1x9xbf16>
    %cst_167 = arith.constant dense<0.000000e+00> : vector<1x64xf32>
    %187 = tpu.matmul %186, %183, %cst_167 {dimension_numbers = #tpu.dot_dimension_numbers<[1], [0], [0], [1], [0, 0, 1, 1], [], []>} : vector<1x9xbf16>, vector<9x64xbf16>, vector<1x64xf32> -> vector<1x64xf32>
    %188 = arith.truncf %187 : vector<1x64xf32> to vector<1x64xbf16>
    %c0_168 = arith.constant 0 : index
    %c0_169 = arith.constant 0 : index
    %c0_170 = arith.constant 0 : index
    %189 = vector.load %arg15[%c0_168, %c0_169, %c0_170] : memref<9x64x128xbf16, #tpu.memory_space<vmem>>, vector<1x64x128xbf16>
    %190 = vector.shape_cast %189 : vector<1x64x128xbf16> to vector<64x128xbf16>
    %cst_171 = arith.constant dense<0.000000e+00> : vector<1x128xf32>
    %191 = tpu.matmul %188, %190, %cst_171 {dimension_numbers = #tpu.dot_dimension_numbers<[1], [0], [0], [1], [0, 0, 1, 1], [], []>} : vector<1x64xbf16>, vector<64x128xbf16>, vector<1x128xf32> -> vector<1x128xf32>
    %192 = arith.addf %184, %191 : vector<1x128xf32>
    %c1_172 = arith.constant 1 : index
    %c0_173 = arith.constant 0 : index
    %c0_174 = arith.constant 0 : index
    %193 = vector.load %arg14[%c1_172, %c0_173, %c0_174] : memref<9x1x9xbf16, #tpu.memory_space<vmem>>, vector<1x1x9xbf16>
    %194 = vector.shape_cast %193 : vector<1x1x9xbf16> to vector<1x9xbf16>
    %cst_175 = arith.constant dense<0.000000e+00> : vector<1x64xf32>
    %195 = tpu.matmul %194, %183, %cst_175 {dimension_numbers = #tpu.dot_dimension_numbers<[1], [0], [0], [1], [0, 0, 1, 1], [], []>} : vector<1x9xbf16>, vector<9x64xbf16>, vector<1x64xf32> -> vector<1x64xf32>
    %196 = arith.truncf %195 : vector<1x64xf32> to vector<1x64xbf16>
    %c1_176 = arith.constant 1 : index
    %c0_177 = arith.constant 0 : index
    %c0_178 = arith.constant 0 : index
    %197 = vector.load %arg15[%c1_176, %c0_177, %c0_178] : memref<9x64x128xbf16, #tpu.memory_space<vmem>>, vector<1x64x128xbf16>
    %198 = vector.shape_cast %197 : vector<1x64x128xbf16> to vector<64x128xbf16>
    %cst_179 = arith.constant dense<0.000000e+00> : vector<1x128xf32>
    %199 = tpu.matmul %196, %198, %cst_179 {dimension_numbers = #tpu.dot_dimension_numbers<[1], [0], [0], [1], [0, 0, 1, 1], [], []>} : vector<1x64xbf16>, vector<64x128xbf16>, vector<1x128xf32> -> vector<1x128xf32>
    %200 = arith.addf %192, %199 : vector<1x128xf32>
    %c2_180 = arith.constant 2 : index
    %c0_181 = arith.constant 0 : index
    %c0_182 = arith.constant 0 : index
    %201 = vector.load %arg14[%c2_180, %c0_181, %c0_182] : memref<9x1x9xbf16, #tpu.memory_space<vmem>>, vector<1x1x9xbf16>
    %202 = vector.shape_cast %201 : vector<1x1x9xbf16> to vector<1x9xbf16>
    %cst_183 = arith.constant dense<0.000000e+00> : vector<1x64xf32>
    %203 = tpu.matmul %202, %183, %cst_183 {dimension_numbers = #tpu.dot_dimension_numbers<[1], [0], [0], [1], [0, 0, 1, 1], [], []>} : vector<1x9xbf16>, vector<9x64xbf16>, vector<1x64xf32> -> vector<1x64xf32>
    %204 = arith.truncf %203 : vector<1x64xf32> to vector<1x64xbf16>
    %c2_184 = arith.constant 2 : index
    %c0_185 = arith.constant 0 : index
    %c0_186 = arith.constant 0 : index
    %205 = vector.load %arg15[%c2_184, %c0_185, %c0_186] : memref<9x64x128xbf16, #tpu.memory_space<vmem>>, vector<1x64x128xbf16>
    %206 = vector.shape_cast %205 : vector<1x64x128xbf16> to vector<64x128xbf16>
    %cst_187 = arith.constant dense<0.000000e+00> : vector<1x128xf32>
    %207 = tpu.matmul %204, %206, %cst_187 {dimension_numbers = #tpu.dot_dimension_numbers<[1], [0], [0], [1], [0, 0, 1, 1], [], []>} : vector<1x64xbf16>, vector<64x128xbf16>, vector<1x128xf32> -> vector<1x128xf32>
    %208 = arith.addf %200, %207 : vector<1x128xf32>
    %c3_188 = arith.constant 3 : index
    %c0_189 = arith.constant 0 : index
    %c0_190 = arith.constant 0 : index
    %209 = vector.load %arg14[%c3_188, %c0_189, %c0_190] : memref<9x1x9xbf16, #tpu.memory_space<vmem>>, vector<1x1x9xbf16>
    %210 = vector.shape_cast %209 : vector<1x1x9xbf16> to vector<1x9xbf16>
    %cst_191 = arith.constant dense<0.000000e+00> : vector<1x64xf32>
    %211 = tpu.matmul %210, %183, %cst_191 {dimension_numbers = #tpu.dot_dimension_numbers<[1], [0], [0], [1], [0, 0, 1, 1], [], []>} : vector<1x9xbf16>, vector<9x64xbf16>, vector<1x64xf32> -> vector<1x64xf32>
    %212 = arith.truncf %211 : vector<1x64xf32> to vector<1x64xbf16>
    %c3_192 = arith.constant 3 : index
    %c0_193 = arith.constant 0 : index
    %c0_194 = arith.constant 0 : index
    %213 = vector.load %arg15[%c3_192, %c0_193, %c0_194] : memref<9x64x128xbf16, #tpu.memory_space<vmem>>, vector<1x64x128xbf16>
    %214 = vector.shape_cast %213 : vector<1x64x128xbf16> to vector<64x128xbf16>
    %cst_195 = arith.constant dense<0.000000e+00> : vector<1x128xf32>
    %215 = tpu.matmul %212, %214, %cst_195 {dimension_numbers = #tpu.dot_dimension_numbers<[1], [0], [0], [1], [0, 0, 1, 1], [], []>} : vector<1x64xbf16>, vector<64x128xbf16>, vector<1x128xf32> -> vector<1x128xf32>
    %216 = arith.addf %208, %215 : vector<1x128xf32>
    %c4_196 = arith.constant 4 : index
    %c0_197 = arith.constant 0 : index
    %c0_198 = arith.constant 0 : index
    %217 = vector.load %arg14[%c4_196, %c0_197, %c0_198] : memref<9x1x9xbf16, #tpu.memory_space<vmem>>, vector<1x1x9xbf16>
    %218 = vector.shape_cast %217 : vector<1x1x9xbf16> to vector<1x9xbf16>
    %cst_199 = arith.constant dense<0.000000e+00> : vector<1x64xf32>
    %219 = tpu.matmul %218, %183, %cst_199 {dimension_numbers = #tpu.dot_dimension_numbers<[1], [0], [0], [1], [0, 0, 1, 1], [], []>} : vector<1x9xbf16>, vector<9x64xbf16>, vector<1x64xf32> -> vector<1x64xf32>
    %220 = arith.truncf %219 : vector<1x64xf32> to vector<1x64xbf16>
    %c4_200 = arith.constant 4 : index
    %c0_201 = arith.constant 0 : index
    %c0_202 = arith.constant 0 : index
    %221 = vector.load %arg15[%c4_200, %c0_201, %c0_202] : memref<9x64x128xbf16, #tpu.memory_space<vmem>>, vector<1x64x128xbf16>
    %222 = vector.shape_cast %221 : vector<1x64x128xbf16> to vector<64x128xbf16>
    %cst_203 = arith.constant dense<0.000000e+00> : vector<1x128xf32>
    %223 = tpu.matmul %220, %222, %cst_203 {dimension_numbers = #tpu.dot_dimension_numbers<[1], [0], [0], [1], [0, 0, 1, 1], [], []>} : vector<1x64xbf16>, vector<64x128xbf16>, vector<1x128xf32> -> vector<1x128xf32>
    %224 = arith.addf %216, %223 : vector<1x128xf32>
    %c5_204 = arith.constant 5 : index
    %c0_205 = arith.constant 0 : index
    %c0_206 = arith.constant 0 : index
    %225 = vector.load %arg14[%c5_204, %c0_205, %c0_206] : memref<9x1x9xbf16, #tpu.memory_space<vmem>>, vector<1x1x9xbf16>
    %226 = vector.shape_cast %225 : vector<1x1x9xbf16> to vector<1x9xbf16>
    %cst_207 = arith.constant dense<0.000000e+00> : vector<1x64xf32>
    %227 = tpu.matmul %226, %183, %cst_207 {dimension_numbers = #tpu.dot_dimension_numbers<[1], [0], [0], [1], [0, 0, 1, 1], [], []>} : vector<1x9xbf16>, vector<9x64xbf16>, vector<1x64xf32> -> vector<1x64xf32>
    %228 = arith.truncf %227 : vector<1x64xf32> to vector<1x64xbf16>
    %c5_208 = arith.constant 5 : index
    %c0_209 = arith.constant 0 : index
    %c0_210 = arith.constant 0 : index
    %229 = vector.load %arg15[%c5_208, %c0_209, %c0_210] : memref<9x64x128xbf16, #tpu.memory_space<vmem>>, vector<1x64x128xbf16>
    %230 = vector.shape_cast %229 : vector<1x64x128xbf16> to vector<64x128xbf16>
    %cst_211 = arith.constant dense<0.000000e+00> : vector<1x128xf32>
    %231 = tpu.matmul %228, %230, %cst_211 {dimension_numbers = #tpu.dot_dimension_numbers<[1], [0], [0], [1], [0, 0, 1, 1], [], []>} : vector<1x64xbf16>, vector<64x128xbf16>, vector<1x128xf32> -> vector<1x128xf32>
    %232 = arith.addf %224, %231 : vector<1x128xf32>
    %c6_212 = arith.constant 6 : index
    %c0_213 = arith.constant 0 : index
    %c0_214 = arith.constant 0 : index
    %233 = vector.load %arg14[%c6_212, %c0_213, %c0_214] : memref<9x1x9xbf16, #tpu.memory_space<vmem>>, vector<1x1x9xbf16>
    %234 = vector.shape_cast %233 : vector<1x1x9xbf16> to vector<1x9xbf16>
    %cst_215 = arith.constant dense<0.000000e+00> : vector<1x64xf32>
    %235 = tpu.matmul %234, %183, %cst_215 {dimension_numbers = #tpu.dot_dimension_numbers<[1], [0], [0], [1], [0, 0, 1, 1], [], []>} : vector<1x9xbf16>, vector<9x64xbf16>, vector<1x64xf32> -> vector<1x64xf32>
    %236 = arith.truncf %235 : vector<1x64xf32> to vector<1x64xbf16>
    %c6_216 = arith.constant 6 : index
    %c0_217 = arith.constant 0 : index
    %c0_218 = arith.constant 0 : index
    %237 = vector.load %arg15[%c6_216, %c0_217, %c0_218] : memref<9x64x128xbf16, #tpu.memory_space<vmem>>, vector<1x64x128xbf16>
    %238 = vector.shape_cast %237 : vector<1x64x128xbf16> to vector<64x128xbf16>
    %cst_219 = arith.constant dense<0.000000e+00> : vector<1x128xf32>
    %239 = tpu.matmul %236, %238, %cst_219 {dimension_numbers = #tpu.dot_dimension_numbers<[1], [0], [0], [1], [0, 0, 1, 1], [], []>} : vector<1x64xbf16>, vector<64x128xbf16>, vector<1x128xf32> -> vector<1x128xf32>
    %240 = arith.addf %232, %239 : vector<1x128xf32>
    %c7_220 = arith.constant 7 : index
    %c0_221 = arith.constant 0 : index
    %c0_222 = arith.constant 0 : index
    %241 = vector.load %arg14[%c7_220, %c0_221, %c0_222] : memref<9x1x9xbf16, #tpu.memory_space<vmem>>, vector<1x1x9xbf16>
    %242 = vector.shape_cast %241 : vector<1x1x9xbf16> to vector<1x9xbf16>
    %cst_223 = arith.constant dense<0.000000e+00> : vector<1x64xf32>
    %243 = tpu.matmul %242, %183, %cst_223 {dimension_numbers = #tpu.dot_dimension_numbers<[1], [0], [0], [1], [0, 0, 1, 1], [], []>} : vector<1x9xbf16>, vector<9x64xbf16>, vector<1x64xf32> -> vector<1x64xf32>
    %244 = arith.truncf %243 : vector<1x64xf32> to vector<1x64xbf16>
    %c7_224 = arith.constant 7 : index
    %c0_225 = arith.constant 0 : index
    %c0_226 = arith.constant 0 : index
    %245 = vector.load %arg15[%c7_224, %c0_225, %c0_226] : memref<9x64x128xbf16, #tpu.memory_space<vmem>>, vector<1x64x128xbf16>
    %246 = vector.shape_cast %245 : vector<1x64x128xbf16> to vector<64x128xbf16>
    %cst_227 = arith.constant dense<0.000000e+00> : vector<1x128xf32>
    %247 = tpu.matmul %244, %246, %cst_227 {dimension_numbers = #tpu.dot_dimension_numbers<[1], [0], [0], [1], [0, 0, 1, 1], [], []>} : vector<1x64xbf16>, vector<64x128xbf16>, vector<1x128xf32> -> vector<1x128xf32>
    %248 = arith.addf %240, %247 : vector<1x128xf32>
    %c8_228 = arith.constant 8 : index
    %c0_229 = arith.constant 0 : index
    %c0_230 = arith.constant 0 : index
    %249 = vector.load %arg14[%c8_228, %c0_229, %c0_230] : memref<9x1x9xbf16, #tpu.memory_space<vmem>>, vector<1x1x9xbf16>
    %250 = vector.shape_cast %249 : vector<1x1x9xbf16> to vector<1x9xbf16>
    %cst_231 = arith.constant dense<0.000000e+00> : vector<1x64xf32>
    %251 = tpu.matmul %250, %183, %cst_231 {dimension_numbers = #tpu.dot_dimension_numbers<[1], [0], [0], [1], [0, 0, 1, 1], [], []>} : vector<1x9xbf16>, vector<9x64xbf16>, vector<1x64xf32> -> vector<1x64xf32>
    %252 = arith.truncf %251 : vector<1x64xf32> to vector<1x64xbf16>
    %c8_232 = arith.constant 8 : index
    %c0_233 = arith.constant 0 : index
    %c0_234 = arith.constant 0 : index
    %253 = vector.load %arg15[%c8_232, %c0_233, %c0_234] : memref<9x64x128xbf16, #tpu.memory_space<vmem>>, vector<1x64x128xbf16>
    %254 = vector.shape_cast %253 : vector<1x64x128xbf16> to vector<64x128xbf16>
    %cst_235 = arith.constant dense<0.000000e+00> : vector<1x128xf32>
    %255 = tpu.matmul %252, %254, %cst_235 {dimension_numbers = #tpu.dot_dimension_numbers<[1], [0], [0], [1], [0, 0, 1, 1], [], []>} : vector<1x64xbf16>, vector<64x128xbf16>, vector<1x128xf32> -> vector<1x128xf32>
    %256 = arith.addf %248, %255 : vector<1x128xf32>
    %c0_236 = arith.constant 0 : index
    %c0_237 = arith.constant 0 : index
    %257 = vector.load %arg16[%c0_236, %c0_237] : memref<1x128xf32, #tpu.memory_space<vmem>>, vector<1x128xf32>
    %258 = arith.addf %256, %257 : vector<1x128xf32>
    %cst_238 = arith.constant 0.000000e+00 : f32
    %259 = vector.broadcast %cst_238 : f32 to vector<1x128xf32>
    %260 = arith.maximumf %258, %259 : vector<1x128xf32>
    %c0_239 = arith.constant 0 : index
    %c0_240 = arith.constant 0 : index
    %c0_241 = arith.constant 0 : index
    %261 = vector.load %arg17[%c0_239, %c0_240, %c0_241] : memref<1x25x256xf32, #tpu.memory_space<vmem>>, vector<1x25x256xf32>
    %262 = vector.shape_cast %261 : vector<1x25x256xf32> to vector<25x256xf32>
    %263 = vector.shape_cast %87 : vector<25x256xf32> to vector<1x25x256xf32>
    tpu.vector_store %arg17[%c0_239, %c0_240, %c0_241], %263 {strides = array<i32>} : memref<1x25x256xf32, #tpu.memory_space<vmem>>, vector<1x25x256xf32>,
    %c0_242 = arith.constant 0 : index
    %c0_243 = arith.constant 0 : index
    %c0_244 = arith.constant 0 : index
    %264 = vector.load %arg18[%c0_242, %c0_243, %c0_244] : memref<1x9x128xf32, #tpu.memory_space<vmem>>, vector<1x9x128xf32>
    %265 = vector.shape_cast %264 : vector<1x9x128xf32> to vector<9x128xf32>
    %266 = vector.shape_cast %174 : vector<9x128xf32> to vector<1x9x128xf32>
    tpu.vector_store %arg18[%c0_242, %c0_243, %c0_244], %266 {strides = array<i32>} : memref<1x9x128xf32, #tpu.memory_space<vmem>>, vector<1x9x128xf32>,
    %c0_245 = arith.constant 0 : index
    %c0_246 = arith.constant 0 : index
    %c0_247 = arith.constant 0 : index
    %267 = vector.load %arg19[%c0_245, %c0_246, %c0_247] : memref<1x1x128xf32, #tpu.memory_space<vmem>>, vector<1x1x128xf32>
    %268 = vector.shape_cast %267 : vector<1x1x128xf32> to vector<1x128xf32>
    %269 = vector.shape_cast %260 : vector<1x128xf32> to vector<1x1x128xf32>
    tpu.vector_store %arg19[%c0_245, %c0_246, %c0_247], %269 {strides = array<i32>} : memref<1x1x128xf32, #tpu.memory_space<vmem>>, vector<1x1x128xf32>,
    return
  }
  func.func @transform_0(%arg0: i32) -> (i32, i32, i32) {
    %c0_i32 = arith.constant 0 : i32
    %c0_i32_0 = arith.constant 0 : i32
    %c0_i32_1 = arith.constant 0 : i32
    return %arg0, %c0_i32, %c0_i32_0 : i32, i32, i32
  }
  func.func @transform_1(%arg0: i32) -> (i32, i32) {
    %c0_i32 = arith.constant 0 : i32
    %c0_i32_0 = arith.constant 0 : i32
    %c0_i32_1 = arith.constant 0 : i32
    return %c0_i32, %c0_i32_0 : i32, i32
  }
  func.func @transform_2(%arg0: i32) -> (i32, i32) {
    %c0_i32 = arith.constant 0 : i32
    %c0_i32_0 = arith.constant 0 : i32
    %c0_i32_1 = arith.constant 0 : i32
    return %c0_i32, %c0_i32_0 : i32, i32
  }
  func.func @transform_3(%arg0: i32) -> (i32, i32, i32) {
    %c0_i32 = arith.constant 0 : i32
    %c0_i32_0 = arith.constant 0 : i32
    %c0_i32_1 = arith.constant 0 : i32
    %c0_i32_2 = arith.constant 0 : i32
    return %c0_i32, %c0_i32_0, %c0_i32_1 : i32, i32, i32
  }
  func.func @transform_4(%arg0: i32) -> (i32, i32, i32) {
    %c0_i32 = arith.constant 0 : i32
    %c0_i32_0 = arith.constant 0 : i32
    %c0_i32_1 = arith.constant 0 : i32
    %c0_i32_2 = arith.constant 0 : i32
    return %c0_i32, %c0_i32_0, %c0_i32_1 : i32, i32, i32
  }
  func.func @transform_5(%arg0: i32) -> (i32, i32) {
    %c0_i32 = arith.constant 0 : i32
    %c0_i32_0 = arith.constant 0 : i32
    %c0_i32_1 = arith.constant 0 : i32
    return %c0_i32, %c0_i32_0 : i32, i32
  }
  func.func @transform_6(%arg0: i32) -> (i32, i32) {
    %c0_i32 = arith.constant 0 : i32
    %c0_i32_0 = arith.constant 0 : i32
    %c0_i32_1 = arith.constant 0 : i32
    return %c0_i32, %c0_i32_0 : i32, i32
  }
  func.func @transform_7(%arg0: i32) -> (i32, i32) {
    %c0_i32 = arith.constant 0 : i32
    %c0_i32_0 = arith.constant 0 : i32
    %c0_i32_1 = arith.constant 0 : i32
    return %c0_i32, %c0_i32_0 : i32, i32
  }
  func.func @transform_8(%arg0: i32) -> (i32, i32, i32) {
    %c0_i32 = arith.constant 0 : i32
    %c0_i32_0 = arith.constant 0 : i32
    %c0_i32_1 = arith.constant 0 : i32
    %c0_i32_2 = arith.constant 0 : i32
    return %c0_i32, %c0_i32_0, %c0_i32_1 : i32, i32, i32
  }
  func.func @transform_9(%arg0: i32) -> (i32, i32, i32) {
    %c0_i32 = arith.constant 0 : i32
    %c0_i32_0 = arith.constant 0 : i32
    %c0_i32_1 = arith.constant 0 : i32
    %c0_i32_2 = arith.constant 0 : i32
    return %c0_i32, %c0_i32_0, %c0_i32_1 : i32, i32, i32
  }
  func.func @transform_10(%arg0: i32) -> (i32, i32) {
    %c0_i32 = arith.constant 0 : i32
    %c0_i32_0 = arith.constant 0 : i32
    %c0_i32_1 = arith.constant 0 : i32
    return %c0_i32, %c0_i32_0 : i32, i32
  }
  func.func @transform_11(%arg0: i32) -> (i32, i32) {
    %c0_i32 = arith.constant 0 : i32
    %c0_i32_0 = arith.constant 0 : i32
    %c0_i32_1 = arith.constant 0 : i32
    return %c0_i32, %c0_i32_0 : i32, i32
  }
  func.func @transform_12(%arg0: i32) -> (i32, i32) {
    %c0_i32 = arith.constant 0 : i32
    %c0_i32_0 = arith.constant 0 : i32
    %c0_i32_1 = arith.constant 0 : i32
    return %c0_i32, %c0_i32_0 : i32, i32
  }
  func.func @transform_13(%arg0: i32) -> (i32, i32, i32) {
    %c0_i32 = arith.constant 0 : i32
    %c0_i32_0 = arith.constant 0 : i32
    %c0_i32_1 = arith.constant 0 : i32
    %c0_i32_2 = arith.constant 0 : i32
    return %c0_i32, %c0_i32_0, %c0_i32_1 : i32, i32, i32
  }
  func.func @transform_14(%arg0: i32) -> (i32, i32, i32) {
    %c0_i32 = arith.constant 0 : i32
    %c0_i32_0 = arith.constant 0 : i32
    %c0_i32_1 = arith.constant 0 : i32
    %c0_i32_2 = arith.constant 0 : i32
    return %c0_i32, %c0_i32_0, %c0_i32_1 : i32, i32, i32
  }
  func.func @transform_15(%arg0: i32) -> (i32, i32) {
    %c0_i32 = arith.constant 0 : i32
    %c0_i32_0 = arith.constant 0 : i32
    %c0_i32_1 = arith.constant 0 : i32
    return %c0_i32, %c0_i32_0 : i32, i32
  }
  func.func @transform_16(%arg0: i32) -> (i32, i32, i32) {
    %c0_i32 = arith.constant 0 : i32
    %c0_i32_0 = arith.constant 0 : i32
    %c0_i32_1 = arith.constant 0 : i32
    return %arg0, %c0_i32, %c0_i32_0 : i32, i32, i32
  }
  func.func @transform_17(%arg0: i32) -> (i32, i32, i32) {
    %c0_i32 = arith.constant 0 : i32
    %c0_i32_0 = arith.constant 0 : i32
    %c0_i32_1 = arith.constant 0 : i32
    return %arg0, %c0_i32, %c0_i32_0 : i32, i32, i32
  }
  func.func @transform_18(%arg0: i32) -> (i32, i32, i32) {
    %c0_i32 = arith.constant 0 : i32
    %c0_i32_0 = arith.constant 0 : i32
    %c0_i32_1 = arith.constant 0 : i32
    return %arg0, %c0_i32, %c0_i32_0 : i32, i32, i32
  }
}

</mosaic_0001>

<bundles_post_ra>
// kernel: extras_forward.1
= control target key start
LH: loop header
LB: loop body
LE: loop exit
PB: predicated region body
PF: predicated region fallthrough
CT: control target
= control target key end

     0   :  { %s8837_s0 = inlined_call_operand.vmem [shape: bf16[2,100,512], index: 0, kind: input, shape index: {}]   ;;  %s8838_s1 = inlined_call_operand.vmem [shape: bf16[512,128], index: 1, kind: input, shape index: {}]   ;;  %s8839_s2 = inlined_call_operand.vmem [shape: f32[1,128], index: 2, kind: input, shape index: {}]   ;;  %s8840_s3 = inlined_call_operand.vmem [shape: bf16[9,25,100], index: 3, kind: input, shape index: {}]   ;;  %s8841_s4 = inlined_call_operand.vmem [shape: bf16[9,128,256], index: 4, kind: input, shape index: {}]   ;;  %s8842_s5 = inlined_call_operand.vmem [shape: f32[1,256], index: 5, kind: input, shape index: {}]   ;;  %s8843_s6 = inlined_call_operand.vmem [shape: bf16[256,64], index: 6, kind: input, shape index: {}]   ;;  %s8844_s7 = inlined_call_operand.vmem [shape: f32[1,64], index: 7, kind: input, shape index: {}]   ;;  %s8845_s8 = inlined_call_operand.vmem [shape: bf16[9,9,25], index: 8, kind: input, shape index: {}]   ;;  %s8846_s9 = inlined_call_operand.vmem [shape: bf16[9,64,128], index: 9, kind: input, shape index: {}]   ;;  %s8847_s10 = inlined_call_operand.vmem [shape: f32[1,128], index: 10, kind: input, shape index: {}]   ;;  %s8848_s11 = inlined_call_operand.vmem [shape: bf16[128,64], index: 11, kind: input, shape index: {}]   ;;  %s8849_s12 = inlined_call_operand.vmem [shape: f32[1,64], index: 12, kind: input, shape index: {}]   ;;  %s8850_s13 = inlined_call_operand.hbm [shape: bf16[9,1,9], index: 13, kind: input, shape index: {}]   ;;  %s8851_s14 = inlined_call_operand.vmem [shape: bf16[9,64,128], index: 14, kind: input, shape index: {}]   ;;  %s8852_s15 = inlined_call_operand.vmem [shape: f32[1,128], index: 15, kind: input, shape index: {}]   ;;  %s8853_s16 = inlined_call_operand.vmem [shape: f32[2,25,256], index: 16, kind: output, shape index: {0}]   ;;  %s8854_s17 = inlined_call_operand.vmem [shape: f32[2,9,128], index: 17, kind: output, shape index: {1}]   ;;  %s8855_s18 = inlined_call_operand.hbm [shape: f32[2,1,128], index: 18, kind: output, shape index: {2}]  }
   0x1   :  { %8865 = sst [smem:[#allocation15_spill]] %s8837_s0 }
   0x2   :  { %8866 = sst [smem:[#allocation16_spill]] %s8838_s1 }
   0x3   :  { %8867 = sst [smem:[#allocation17_spill]] %s8839_s2 }
   0x4   :  { %8868 = sst [smem:[#allocation18_spill]] %s8850_s13 }
   0x5   :  { %8869 = sst [smem:[#allocation19_spill]] %s8852_s15 }
   0x6   :  { %24 = vsyncpa [#allocation3], 0 }
   0x7   :  { %25 = vsyncpa [#allocation4], 0 }
   0x8   :  { %27 = vsyncpa [#allocation4 + $0x1], 0  ;;  %s6905_s27 = smov 0   ;;  %s6907_s28 = smov 0  }
   0x9   :  { %s6909_s29 = smov 0   ;;  %s6911_s30 = smov 0  }
   0xa LB: > { %8870 = sst [smem:[#allocation8_spill]] %s6792_s27  ;;  %s6926_s0 = sadd.s32 4294967295, %s6804_s30   ;;  %s6804_s30 = sphi %s6911_s30, %s8888_s30   ;;  %s6800_s29 = sphi %s6909_s29, %s8890_s29   ;;  %s6796_s28 = sphi %s6907_s28, %s8892_s28   ;;  %s6792_s27 = sphi %s6905_s27, %s8891_s27  }
   0xb   : > { %8871 = sst [smem:[#allocation9_spill]] %s6800_s29  ;;  %s4662_s19 = sadd.s32 4294967294, %s6804_s30  }
   0xc   : > { %8872 = sst [smem:[#allocation10_spill]] %s6804_s30  ;;  %s6930_s1 = sadd.s32 1, %s6804_s30  }
   0xd   : > { %8873 = sst [smem:[#allocation11_spill]] %s6930_s1  ;;  %s433_s20 = sadd.s32 1, %s6800_s29 }
   0xe   : > { %s430_s21 = ssub.s32 %s6804_s30, %s6930_s1  ;;  %p443_p0 = scmp.ne.s32.totalorder %s6800_s29, %s6796_s28 }
   0xf   : > { %p431_p1 = scmp.eq.s32.totalorder %s430_s21, 0  ;;  %p444_p2 = scmp.eq.s32.totalorder %s6926_s0, 1 }
  0x10   : > { %p449_p3 = scmp.ne.s32.totalorder %s6796_s28, %s6792_s27  ;;  %p450_p4 = scmp.eq.s32.totalorder %s4662_s19, 1 }
  0x11   : > { %s6941_s22 = scalar_select %p431_p1, %s6800_s29, %s433_s20  }
  0x12   : > { %p6943_p5 = por %p444_p2, %p443_p0  ;;  %p6947_p6 = por %p450_p4, %p449_p3 }
  0x13   : > { %8874 = sst [smem:[#allocation12_spill]] %s6941_s22  ;;  %p4663_p7 = scmp.ge.s32.totalorder %s6804_s30, 1 }
  0x14   : > { %s8875_s2 = scalar_select %p6943_p5, 1, 0 }
  0x15   : > { %s8877_s23 = scalar_select %p6947_p6, 1, 0 }
  0x16   : > { %8876 = sst [smem:[#allocation13_spill]] %s8875_s2  ;;  %p457_p8 = scmp.lt.s32.totalorder %s6804_s30, 3 }
  0x17   : > { %8878 = sst [smem:[#allocation14_spill]] %s8877_s23  ;;  %p6665_p9 = scmp.eq.s32.totalorder %s6926_s0, 0 }
  0x18   : > { %p458_p10 = pnand %p4663_p7, %p457_p8  ;;  %s8879_s13 = sld [smem:[#allocation18_spill]] }
  0x19   : > { %s6806_s19 = smov [#allocation2]   ;;  %s6807_s21 = smov 16  }
  0x1a   : > { %p6657_p11 = pneg %p458_p10  ;;  %s506_s20 = sshll.u32 %s6806_s19, 4  ;;  %s507_s20 = int_to_ptr.vmem [resolvable:$true] %s506_s20 }
  0x1b   : > { %s6808_s22 = smov 1   ;;  %536 = sbr.rel (%p458_p10) target bundleno = 2312 (0x908), region = 84 }
  0x1c   : > { %p6658_p12 = pnand %p6665_p9, %p6657_p11 }
  0x1e   : > { %s504_s26 = sshll.u32 %s8879_s13, 4  ;;  %s505_s26 = int_to_ptr.hbm [resolvable:$true] %s504_s26 }
  0x1f   : > { %6660 = dma.hbm_to_vmem [thread:$0]  (!%p6658_p12), %s505_s26, 144, %s507_s20, [#allocation3], %s6807_s21, %s6807_s21, %s6808_s22  }
  0x20   : > { %6783 = dma.done.wait (%p6665_p9), [#allocation3], 144  }
  0x21   : > { %6785 = vsyncadd (%p6665_p9), [#allocation3], 4294967152  ;;  %s8880_s25 = sld [smem:[#allocation16_spill]]  ;;  %p600_p13 = scmp.lt.s32.totalorder %s6926_s0, 1  ;;  %vm1249_vm0 = vcmask 1041408   ;;  %vm1242_vm1 = vcmask 818176  }
  0x22   : > { %s8881_s2 = sld [smem:[#allocation15_spill]]  ;;  %vm3093_vm2 = vcmask 1043456   ;;  %vm3094_vm3 = vcmask 1044480   ;;  %vm3089_vm4 = vcmask 203776   ;;  %vm3182_vm5 = vcmask 523264   ;;  %s598_s27 = sand.u32 1, %s6796_s28  }
  0x23   : > { %s7019_s22 = scalar_select %p600_p13, %s6926_s0, 1  ;;  %vm3882_vm6 = vcmask 72704  }
  0x24   : > { %s8882_s20 = sld [smem:[#allocation17_spill]]  ;;  %s599_s29 = scalar_lea.vmem [#allocation5], %s598_s27 }
  0x25   : > { %s6650_s19 = smul.u32 208, %s7019_s22  ;;  %s6325_s21 = sshll.u32 %s7019_s22, 6 }
  0x26   : > { %s4527_s13 = scalar_lea.sflag [#allocation4], %s598_s27 }
  0x27   : > { %v6358_v0 = vld [vmem:[%s8880_s25 + $0x38] sm:$0xff]  ;;  %v6357_v4 = vld [vmem:[%s8880_s25 + $0x30] sm:$0xff]  ;;  %v6356_v8 = vld [vmem:[%s8880_s25 + $0x28] sm:$0xff] }
  0x28   : > { %v6366_v1 = vld [vmem:[%s8880_s25 + $0x78] sm:$0xff]  ;;  %1036 = vmatpush.bf16.msra.mxu0 %v6358_v0  ;;  %v6365_v5 = vld [vmem:[%s8880_s25 + $0x70] sm:$0xff]  ;;  %v6364_v9 = vld [vmem:[%s8880_s25 + $0x68] sm:$0xff]  ;;  %s7049_s15 = scalar_lea.vmem %s8881_s2, %s6650_s19  ;;  %s8416_s19 = scalar_lea.vmem %s8853_s16, %s6325_s21 }
  0x29   : > { %v6374_v2 = vld [vmem:[%s8880_s25 + $0xb8] sm:$0xff]  ;;  %1079 = vmatpush.bf16.msra.mxu1 %v6366_v1  ;;  %v6373_v6 = vld [vmem:[%s8880_s25 + $0xb0] sm:$0xff]  ;;  %v6372_v10 = vld [vmem:[%s8880_s25 + $0xa8] sm:$0xff]  ;;  %s6326_s2 = sshll.u32 %s7019_s22, 4 }
  0x2a   : > { %v6382_v3 = vld [vmem:[%s8880_s25 + $0xf8] sm:$0xff]  ;;  %1122 = vmatpush.bf16.msra.mxu2 %v6374_v2  ;;  %v6381_v7 = vld [vmem:[%s8880_s25 + $0xf0] sm:$0xff]  ;;  %v6380_v11 = vld [vmem:[%s8880_s25 + $0xe8] sm:$0xff]  ;;  %s614_s24 = scalar_lea.vmem %s8854_s17, %s6326_s2  ;;  %s8883_s2 = sld [smem:[#allocation19_spill]] }
  0x2b   : > { %1165 = vmatpush.bf16.msra.mxu3 %v6382_v3  ;;  %v6355_v12 = vld [vmem:[%s8880_s25 + $0x20] sm:$0xff]  ;;  %v6354_v16 = vld [vmem:[%s8880_s25 + $0x18] sm:$0xff]  ;;  %v6353_v20 = vld [vmem:[%s8880_s25 + $0x10] sm:$0xff] }
  0x2c   : > { %1037 = vmatpush.bf16.msra.mxu0 %v6357_v4  ;;  %v6363_v13 = vld [vmem:[%s8880_s25 + $0x60] sm:$0xff]  ;;  %v6362_v17 = vld [vmem:[%s8880_s25 + $0x58] sm:$0xff]  ;;  %v6361_v21 = vld [vmem:[%s8880_s25 + $0x50] sm:$0xff] }
  0x2d   : > { %1080 = vmatpush.bf16.msra.mxu1 %v6365_v5  ;;  %v6371_v14 = vld [vmem:[%s8880_s25 + $0xa0] sm:$0xff]  ;;  %v6370_v18 = vld [vmem:[%s8880_s25 + $0x98] sm:$0xff]  ;;  %v6369_v22 = vld [vmem:[%s8880_s25 + $0x90] sm:$0xff] }
  0x2e   : > { %1123 = vmatpush.bf16.msra.mxu2 %v6373_v6  ;;  %v6379_v15 = vld [vmem:[%s8880_s25 + $0xe0] sm:$0xff]  ;;  %v6378_v19 = vld [vmem:[%s8880_s25 + $0xd8] sm:$0xff]  ;;  %v6377_v23 = vld [vmem:[%s8880_s25 + $0xd0] sm:$0xff] }
  0x2f   : > { %1166 = vmatpush.bf16.msra.mxu3 %v6381_v7  ;;  %v6352_v24 = vld [vmem:[%s8880_s25 + $0x8] sm:$0xff]  ;;  %v6351_v28 = vld [vmem:[%s8880_s25] sm:$0xff]  ;;  %v6329_v33 = vld [vmem:[%s7049_s15 + $0xc] sm:$0xf0] }
  0x30   : > { %1038 = vmatpush.bf16.msra.mxu0 %v6356_v8  ;;  %v6360_v25 = vld [vmem:[%s8880_s25 + $0x48] sm:$0xff]  ;;  %v6359_v29 = vld [vmem:[%s8880_s25 + $0x40] sm:$0xff]  ;;  %v4677_v35 = vld [vmem:[%s7049_s15 + $0x10] sm:$0xf0] }
  0x31   : > { %1081 = vmatpush.bf16.msra.mxu1 %v6364_v9  ;;  %v6368_v26 = vld [vmem:[%s8880_s25 + $0x88] sm:$0xff]  ;;  %v6367_v30 = vld [vmem:[%s8880_s25 + $0x80] sm:$0xff]  ;;  %v6330_v37 = vld [vmem:[%s7049_s15 + $0x14] sm:$0xf0] }
  0x32   : > { %1124 = vmatpush.bf16.msra.mxu2 %v6372_v10  ;;  %v6376_v27 = vld [vmem:[%s8880_s25 + $0xc8] sm:$0xff]  ;;  %v6375_v31 = vld [vmem:[%s8880_s25 + $0xc0] sm:$0xff]  ;;  %v4685_v39 = vld [vmem:[%s7049_s15 + $0x18] sm:$0xf0] }
  0x33   : > { %1167 = vmatpush.bf16.msra.mxu3 %v6380_v11  ;;  %v4675_v32 = vld [vmem:[%s7049_s15] sm:$0xf]  ;;  %v6327_v34 = vld [vmem:[%s7049_s15 + $0x4] sm:$0xf]  ;;  %v4683_v36 = vld [vmem:[%s7049_s15 + $0x8] sm:$0xf] }
  0x34   : > { %1039 = vmatpush.bf16.msra.mxu0 %v6355_v12  ;;  %v6328_v38 = vld [vmem:[%s7049_s15 + $0xc] sm:$0xf]  ;;  %v4676_v40 = vor.u32 %v6329_v33, %v4675_v32  ;;  %v4680_v41 = vor.u32 %v6327_v34, %v4677_v35  ;;  %v4684_v42 = vor.u32 %v6330_v37, %v4683_v36  ;;  %v4691_v44 = vld [vmem:[%s7049_s15 + $0x20] sm:$0xf]  ;;  %v6333_v45 = vld [vmem:[%s7049_s15 + $0x2c] sm:$0xf0] }
  0x35   : > { %1082 = vmatpush.bf16.msra.mxu1 %v6363_v13  ;;  %v4688_v43 = vor.u32 %v6328_v38, %v4685_v39  ;;  %v6331_v46 = vld [vmem:[%s7049_s15 + $0x24] sm:$0xf]  ;;  %v4693_v47 = vld [vmem:[%s7049_s15 + $0x30] sm:$0xf0]  ;;  %v4699_v48 = vld [vmem:[%s7049_s15 + $0x28] sm:$0xf]  ;;  %v4692_v52 = vor.u32 %v6333_v45, %v4691_v44 }
  0x36   : > { %1125 = vmatpush.bf16.msra.mxu2 %v6371_v14  ;;  %v6334_v49 = vld [vmem:[%s7049_s15 + $0x34] sm:$0xf0]  ;;  %v6332_v50 = vld [vmem:[%s7049_s15 + $0x2c] sm:$0xf]  ;;  %v4701_v51 = vld [vmem:[%s7049_s15 + $0x38] sm:$0xf0]  ;;  %v4696_v53 = vor.u32 %v6331_v46, %v4693_v47 }
  0x37   : > { %1168 = vmatpush.bf16.msra.mxu3 %v6379_v15  ;;  %v4700_v54 = vor.u32 %v6334_v49, %v4699_v48  ;;  %v4704_v55 = vor.u32 %v6332_v50, %v4701_v51  ;;  %v4707_v56 = vld [vmem:[%s7049_s15 + $0x40] sm:$0xf]  ;;  %v6337_v57 = vld [vmem:[%s7049_s15 + $0x4c] sm:$0xf0]  ;;  %v6335_v58 = vld [vmem:[%s7049_s15 + $0x44] sm:$0xf] }
  0x38   : > { %1040 = vmatpush.bf16.msra.mxu0 %v6354_v16  ;;  %v4709_v59 = vld [vmem:[%s7049_s15 + $0x50] sm:$0xf0]  ;;  %v4715_v60 = vld [vmem:[%s7049_s15 + $0x48] sm:$0xf]  ;;  %v6338_v61 = vld [vmem:[%s7049_s15 + $0x54] sm:$0xf0]  ;;  %v4708_v0 = vor.u32 %v6337_v57, %v4707_v56 }
  0x39   : > { %1083 = vmatpush.bf16.msra.mxu1 %v6362_v17  ;;  %v6336_v62 = vld [vmem:[%s7049_s15 + $0x4c] sm:$0xf]  ;;  %v4717_v63 = vld [vmem:[%s7049_s15 + $0x58] sm:$0xf0]  ;;  %v4712_v1 = vor.u32 %v6335_v58, %v4709_v59  ;;  %v4716_v2 = vor.u32 %v6338_v61, %v4715_v60  ;;  %v4723_v4 = vld [vmem:[%s7049_s15 + $0x60] sm:$0xf] }
  0x3a   : > { %1126 = vmatpush.bf16.msra.mxu2 %v6370_v18  ;;  %v4720_v3 = vor.u32 %v6336_v62, %v4717_v63  ;;  %v6341_v5 = vld [vmem:[%s7049_s15 + $0x6c] sm:$0xf0]  ;;  %v6339_v6 = vld [vmem:[%s7049_s15 + $0x64] sm:$0xf]  ;;  %v4725_v7 = vld [vmem:[%s7049_s15 + $0x70] sm:$0xf0] }
  0x3b   : > { %1169 = vmatpush.bf16.msra.mxu3 %v6378_v19  ;;  %v4731_v8 = vld [vmem:[%s7049_s15 + $0x68] sm:$0xf]  ;;  %v6342_v9 = vld [vmem:[%s7049_s15 + $0x74] sm:$0xf0]  ;;  %v6340_v10 = vld [vmem:[%s7049_s15 + $0x6c] sm:$0xf]  ;;  %v4724_v12 = vor.u32 %v6341_v5, %v4723_v4  ;;  %v4728_v13 = vor.u32 %v6339_v6, %v4725_v7 }
  0x3c   : > { %1041 = vmatpush.bf16.msra.mxu0 %v6353_v20  ;;  %v4733_v11 = vld [vmem:[%s7049_s15 + $0x78] sm:$0xf0]  ;;  %v4732_v14 = vor.u32 %v6342_v9, %v4731_v8  ;;  %v4739_v16 = vld [vmem:[%s7049_s15 + $0x80] sm:$0xf]  ;;  %v6345_v17 = vld [vmem:[%s7049_s15 + $0x8c] sm:$0xf0] }
  0x3d   : > { %1084 = vmatpush.bf16.msra.mxu1 %v6361_v21  ;;  %v4736_v15 = vor.u32 %v6340_v10, %v4733_v11  ;;  %v6343_v18 = vld [vmem:[%s7049_s15 + $0x84] sm:$0xf]  ;;  %v4741_v19 = vld [vmem:[%s7049_s15 + $0x90] sm:$0xf0]  ;;  %v4747_v20 = vld [vmem:[%s7049_s15 + $0x88] sm:$0xf] }
  0x3e   : > { %1127 = vmatpush.bf16.msra.mxu2 %v6369_v22  ;;  %v6346_v21 = vld [vmem:[%s7049_s15 + $0x94] sm:$0xf0]  ;;  %v6344_v22 = vld [vmem:[%s7049_s15 + $0x8c] sm:$0xf]  ;;  %v4763_v32 = vld [vmem:[%s7049_s15 + $0xa8] sm:$0xf] }
  0x3f   : > { %1170 = vmatpush.bf16.msra.mxu3 %v6377_v23  ;;  %v4749_v23 = vld [vmem:[%s7049_s15 + $0x98] sm:$0xf0]  ;;  %v6350_v33 = vld [vmem:[%s7049_s15 + $0xb4] sm:$0xf0]  ;;  %v6348_v34 = vld [vmem:[%s7049_s15 + $0xac] sm:$0xf] }
  0x40   : > { %1042 = vmatpush.bf16.msra.mxu0 %v6352_v24  ;;  %v4740_v24 = vor.u32 %v6345_v17, %v4739_v16  ;;  %v4765_v35 = vld [vmem:[%s7049_s15 + $0xb8] sm:$0xf0]  ;;  %v4764_v38 = vor.u32 %v6350_v33, %v4763_v32  ;;  %v7122_v50 = vld [vmem:[%s8882_s20] ss:$0 sm:$0xff]  ;;  %s6758_s20 = scalar_lea.hbm %s8855_s18, 2 }
  0x41   : > { %1085 = vmatpush.bf16.msra.mxu1 %v6360_v25  ;;  %v4744_v25 = vor.u32 %v6343_v18, %v4741_v19  ;;  %v4768_v39 = vor.u32 %v6348_v34, %v4765_v35 }
  0x42   : > { %1128 = vmatpush.bf16.msra.mxu2 %v6368_v26  ;;  %v4748_v26 = vor.u32 %v6346_v21, %v4747_v20 }
  0x43   : > { %1171 = vmatpush.bf16.msra.mxu3 %v6376_v27  ;;  %v4752_v27 = vor.u32 %v6344_v22, %v4749_v23 }
  0x44   : > { %1043 = vmatpush.bf16.msra.mxu0 %v6351_v28  ;;  %v4755_v28 = vld [vmem:[%s7049_s15 + $0xa0] sm:$0xf] }
  0x45   : > { %1086 = vmatpush.bf16.msra.mxu1 %v6359_v29  ;;  %v6349_v29 = vld [vmem:[%s7049_s15 + $0xac] sm:$0xf0] }
  0x46   : > { %1129 = vmatpush.bf16.msra.mxu2 %v6367_v30  ;;  %v6347_v30 = vld [vmem:[%s7049_s15 + $0xa4] sm:$0xf]  ;;  %v4756_v36 = vor.u32 %v6349_v29, %v4755_v28 }
  0x47   : > { %1172 = vmatpush.bf16.msra.mxu3 %v6375_v31  ;;  %1044 = vmatmul.bf16.vlgmr.msra.gmra.mxu0 %v4676_v40  ;;  %v4757_v31 = vld [vmem:[%s7049_s15 + $0xb0] sm:$0xf0]  ;;  %v640_v40 = vld [vmem:[%s7049_s15 + $0xc0] sm:$0x33] }
  0x48   : > { %1087 = vmatmul.bf16.vlgmr.msra.gmra.mxu1 %v4680_v41  ;;  %v4760_v37 = vor.u32 %v6347_v30, %v4757_v31  ;;  %v641_v41 = vld [vmem:[%s7049_s15 + $0xc8] sm:$0x33]  ;;  %v4987_v30 = vld [vmem:[%s8841_s4 + $0xe0] sm:$0xf]  ;;  %s4541_s15 = scalar_lea.hbm %s8855_s18, %s6926_s0 }
  0x49   : > { %1130 = vmatmul.bf16.vlgmr.msra.gmra.mxu2 %v4684_v42  ;;  %v784_v42 = vunpack.c.l.b16 %v640_v40  ;;  %v786_v44 = vunpack.c.l.b16 %v641_v41  ;;  %v787_v45 = vunpack.c.h.b16 %v641_v41  ;;  %v6416_v31 = vld [vmem:[%s8841_s4 + $0xe4] sm:$0xf0]  ;;  %s4545_s22 = sshll.u32 %s4541_s15, 4  ;;  %s4546_s22 = int_to_ptr.hbm [resolvable:$true] %s4545_s22 }
  0x4a   : > { %1173 = vmatmul.bf16.vlgmr.msra.gmra.mxu3 %v4688_v43  ;;  %v785_v43 = vunpack.c.h.b16 %v640_v40  ;;  %v4988_v32 = vor.u32 %v6416_v31, %v4987_v30  ;;  %v4971_v40 = vld [vmem:[%s8841_s4 + $0xc0] sm:$0xf]  ;;  %v6412_v41 = vld [vmem:[%s8841_s4 + $0xc4] sm:$0xf0]  ;;  %s6752_s1 = sshra.s32 %s4546_s22, 4  ;;  %s6753_s1 = int_to_ptr.hbm [resolvable:$true] %s6752_s1 }
  0x4b   : > { %v812_v46 = vpack.c.b16 %v784_v42, %v784_v42  ;;  %v814_v48 = vpack.c.b16 %v786_v44, %v786_v44  ;;  %v815_v49 = vpack.c.b16 %v787_v45, %v787_v45  ;;  %v4972_v42 = vor.u32 %v6412_v41, %v4971_v40  ;;  %s6754_s0 = scalar_lea.hbm %s6753_s1, 1  ;;  %p6759_p3 = scmp.lt.s32.totalorder %s6753_s1, %s8855_s18 }
  0x4c   : > { %v813_v47 = vpack.c.b16 %v785_v43, %v785_v43  ;;  %p6755_p0 = scmp.ne.s32.totalorder %s6753_s1, %s6754_s0  ;;  %p6760_p4 = scmp.lt.s32.totalorder %s6758_s20, %s6754_s0 }
  0x4e   : > { %p6756_p1 = pnand %p6755_p0, %p6943_p5  ;;  %p6761_p7 = por %p6760_p4, %p6759_p3 }
  0x50   : > { %p6757_p2 = pneg %p6756_p1 }
  0x52   : > { %p6762_p8 = pnand %p6761_p7, %p6757_p2 }
  0x57   : > { %1049 = vmatmul.bf16.gmra.mxu0 %v4692_v52 }
  0x58   : > { %1092 = vmatmul.bf16.gmra.mxu1 %v4696_v53 }
  0x59   : > { %1135 = vmatmul.bf16.gmra.mxu2 %v4700_v54 }
  0x5a   : > { %1178 = vmatmul.bf16.gmra.mxu3 %v4704_v55 }
  0x67   : > { %1054 = vmatmul.bf16.gmra.mxu0 %v4708_v0 }
  0x68   : > { %1097 = vmatmul.bf16.gmra.mxu1 %v4712_v1 }
  0x69   : > { %1140 = vmatmul.bf16.gmra.mxu2 %v4716_v2 }
  0x6a   : > { %1183 = vmatmul.bf16.gmra.mxu3 %v4720_v3 }
  0x77   : > { %1059 = vmatmul.bf16.gmra.mxu0 %v4724_v12 }
  0x78   : > { %1102 = vmatmul.bf16.gmra.mxu1 %v4728_v13 }
  0x79   : > { %1145 = vmatmul.bf16.gmra.mxu2 %v4732_v14 }
  0x7a   : > { %1188 = vmatmul.bf16.gmra.mxu3 %v4736_v15 }
  0x87   : > { %1064 = vmatmul.bf16.gmra.mxu0 %v4740_v24 }
  0x88   : > { %1107 = vmatmul.bf16.gmra.mxu1 %v4744_v25 }
  0x89   : > { %1150 = vmatmul.bf16.gmra.mxu2 %v4748_v26  ;;  %v4995_v26 = vld [vmem:[%s8841_s4 + $0xf0] sm:$0xf] }
  0x8a   : > { %1193 = vmatmul.bf16.gmra.mxu3 %v4752_v27  ;;  %v6418_v27 = vld [vmem:[%s8841_s4 + $0xf4] sm:$0xf0] }
  0x8b   : > { %v4996_v28 = vor.u32 %v6418_v27, %v4995_v26 }
  0x8d   : > { %1429 = vmatpush.bf16.msrb.mxu2 %v4996_v28 }
  0x91   : > { %1430 = vmatpush.bf16.msrb.mxu2 %v4988_v32 }
  0x97   : > { %1069 = vmatmul.bf16.gmra.mxu0 %v4756_v36 }
  0x98   : > { %1112 = vmatmul.bf16.gmra.mxu1 %v4760_v37  ;;  %v4979_v37 = vld [vmem:[%s8841_s4 + $0xd0] sm:$0xf] }
  0x99   : > { %1155 = vmatmul.bf16.gmra.mxu2 %v4764_v38  ;;  %v6414_v38 = vld [vmem:[%s8841_s4 + $0xd4] sm:$0xf0] }
  0x9a   : > { %1198 = vmatmul.bf16.gmra.mxu3 %v4768_v39  ;;  %v4980_v39 = vor.u32 %v6414_v38, %v4979_v37 }
  0x9c   : > { %1431 = vmatpush.bf16.msrb.mxu2 %v4980_v39 }
  0xa0   : > { %1432 = vmatpush.bf16.msrb.mxu2 %v4972_v42 }
  0xa7   : > { %1074 = vmatmul.bf16.gmra.mxu0 %v812_v46 }
  0xa8   : > { %1117 = vmatmul.bf16.gmra.mxu1 %v813_v47  ;;  %v4963_v47 = vld [vmem:[%s8841_s4 + $0xb0] sm:$0xf] }
  0xa9   : > { %1160 = vmatmul.bf16.gmra.mxu2 %v814_v48  ;;  %v6410_v48 = vld [vmem:[%s8841_s4 + $0xb4] sm:$0xf0] }
  0xaa   : > { %1203 = vmatmul.bf16.gmra.mxu3 %v815_v49  ;;  %v4964_v49 = vor.u32 %v6410_v48, %v4963_v47 }
  0xac   : > { %1433 = vmatpush.bf16.msrb.mxu2 %v4964_v49 }
  0xc4   : > { %v1045_v51 = vpop.f32.mrf.mxu0 }
  0xc5   : > { %v1088_v52 = vpop.f32.mrf.mxu1  ;;  %v1046_v53 = vadd.f32 %v7122_v50, %v1045_v51  ;;  %v4955_v51 = vld [vmem:[%s8841_s4 + $0xa0] sm:$0xf] }
  0xc7   : > { %v1089_v54 = vadd.f32 %v1088_v52, %v1046_v53  ;;  %v6408_v52 = vld [vmem:[%s8841_s4 + $0xa4] sm:$0xf0] }
  0xc8   : > { %v4956_v53 = vor.u32 %v6408_v52, %v4955_v51 }
  0xca   : > { %1434 = vmatpush.bf16.msrb.mxu2 %v4956_v53 }
  0xcc   : > { %v1131_v55 = vpop.f32.mrf.mxu2  ;;  %v7125_v58 = vpop.f32.mrf.mxu0 }
  0xcd   : > { %v1174_v56 = vpop.f32.mrf.mxu3  ;;  %v1132_v57 = vadd.f32 %v1131_v55, %v1089_v54  ;;  %v7127_v59 = vpop.f32.mrf.mxu1 }
  0xcf   : > { %v7129_v60 = vadd.f32 %v1174_v56, %v1132_v57 }
  0xd4   : > { %v7131_v61 = vpop.f32.mrf.mxu2  ;;  %v1050_v63 = vpop.f32.mrf.mxu0 }
  0xd5   : > { %v7133_v62 = vpop.f32.mrf.mxu3  ;;  %v1093_v0 = vpop.f32.mrf.mxu1  ;;  %v1051_v1 = vadd.f32 %v7122_v50, %v1050_v63  ;;  %v4947_v63 = vld [vmem:[%s8841_s4 + $0x90] sm:$0xf] }
  0xd7   : > { %v1094_v2 = vadd.f32 %v1093_v0, %v1051_v1  ;;  %v6406_v0 = vld [vmem:[%s8841_s4 + $0x94] sm:$0xf0] }
  0xd8   : > { %v4948_v1 = vor.u32 %v6406_v0, %v4947_v63 }
  0xda   : > { %1435 = vmatpush.bf16.msrb.mxu2 %v4948_v1 }
  0xdc   : > { %v1136_v3 = vpop.f32.mrf.mxu2  ;;  %v7136_v6 = vpop.f32.mrf.mxu0 }
  0xdd   : > { %v1179_v4 = vpop.f32.mrf.mxu3  ;;  %v1137_v5 = vadd.f32 %v1136_v3, %v1094_v2  ;;  %v7138_v7 = vpop.f32.mrf.mxu1  ;;  %v4939_v2 = vld [vmem:[%s8841_s4 + $0x80] sm:$0xf]  ;;  %v6404_v3 = vld [vmem:[%s8841_s4 + $0x84] sm:$0xf0] }
  0xdf   : > { %v7140_v8 = vadd.f32 %v1179_v4, %v1137_v5  ;;  %v4940_v4 = vor.u32 %v6404_v3, %v4939_v2 }
  0xe1   : > { %1436 = vmatpush.bf16.msrb.mxu2 %v4940_v4 }
  0xe4   : > { %v7142_v9 = vpop.f32.mrf.mxu2  ;;  %v1055_v11 = vpop.f32.mrf.mxu0 }
  0xe5   : > { %v7144_v10 = vpop.f32.mrf.mxu3  ;;  %v1098_v12 = vpop.f32.mrf.mxu1  ;;  %v1056_v13 = vadd.f32 %v7122_v50, %v1055_v11 }
  0xe7   : > { %v1099_v14 = vadd.f32 %v1098_v12, %v1056_v13 }
  0xec   : > { %v1141_v15 = vpop.f32.mrf.mxu2  ;;  %v7147_v18 = vpop.f32.mrf.mxu0 }
  0xed   : > { %v1184_v16 = vpop.f32.mrf.mxu3  ;;  %v1142_v17 = vadd.f32 %v1141_v15, %v1099_v14  ;;  %v7149_v19 = vpop.f32.mrf.mxu1 }
  0xef   : > { %v7151_v20 = vadd.f32 %v1184_v16, %v1142_v17 }
  0xf4   : > { %v7153_v21 = vpop.f32.mrf.mxu2  ;;  %v1060_v23 = vpop.f32.mrf.mxu0 }
  0xf5   : > { %v7155_v22 = vpop.f32.mrf.mxu3  ;;  %v1103_v24 = vpop.f32.mrf.mxu1  ;;  %v1061_v25 = vadd.f32 %v7122_v50, %v1060_v23 }
  0xf7   : > { %v7164_v29 = vadd.f32 %v1103_v24, %v1061_v25 }
  0xfc   : > { %v7172_v33 = vpop.f32.mrf.mxu2  ;;  %v1062_v35 = vpop.f32.mrf.mxu0 }
  0xfd   : > { %v7174_v34 = vpop.f32.mrf.mxu3  ;;  %v7176_v36 = vpop.f32.mrf.mxu1  ;;  %v1063_v51 = vadd.f32 %v7122_v50, %v1062_v35 }
  0xff   : > { %v1106_v3 = vadd.f32 %v7176_v36, %v1063_v51  ;;  %v1147_v36 = vadd.f32 %v7172_v33, %v7164_v29 }
 0x101   : > { %v1190_v33 = vadd.f32 %v7174_v34, %v1147_v36  ;;  %v5051_v36 = vld [vmem:[%s8841_s4 + $0x60] sm:$0xf] }
 0x104   : > { %v7190_v43 = vpop.f32.mrf.mxu2  ;;  %v1065_v45 = vpop.f32.mrf.mxu0 }
 0x105   : > { %v7192_v44 = vpop.f32.mrf.mxu3  ;;  %v1108_v46 = vpop.f32.mrf.mxu1  ;;  %v1066_v32 = vadd.f32 %v7122_v50, %v1065_v45  ;;  %v1058_v45 = vadd.f32 %v7122_v50, %v7147_v18 }
 0x107   : > { %v1109_v52 = vadd.f32 %v1108_v46, %v1066_v32  ;;  %v1101_v18 = vadd.f32 %v7149_v19, %v1058_v45  ;;  %v1048_v19 = vadd.f32 %v7122_v50, %v7125_v58  ;;  %v1214_v58 = vmax.f32 %v1190_v33, 0.0  ;;  %v5035_v33 = vld [vmem:[%s8841_s4 + $0x40] sm:$0xf] }
 0x10c   : > { %v1151_v54 = vpop.f32.mrf.mxu2  ;;  %v1067_v56 = vpop.f32.mrf.mxu0 }
 0x10d   : > { %v1194_v55 = vpop.f32.mrf.mxu3  ;;  %v1110_v57 = vpop.f32.mrf.mxu1  ;;  %v1068_v37 = vadd.f32 %v7122_v50, %v1067_v56  ;;  %v1152_v4 = vadd.f32 %v1151_v54, %v1109_v52  ;;  %v6391_v52 = vld [vmem:[%s8841_s4 + $0x34] sm:$0xf] }
 0x10f   : > { %v1111_v53 = vadd.f32 %v1110_v57, %v1068_v37  ;;  %v1195_v54 = vadd.f32 %v1194_v55, %v1152_v4  ;;  %v6397_v37 = vld [vmem:[%s8841_s4 + $0x64] sm:$0xf] }
 0x111   : > { %v1216_v55 = vmax.f32 %v1195_v54, 0.0 }
 0x114   : > { %v1153_v5 = vpop.f32.mrf.mxu2  ;;  %v1070_v12 = vpop.f32.mrf.mxu0 }
 0x115   : > { %v1196_v11 = vpop.f32.mrf.mxu3  ;;  %v1113_v13 = vpop.f32.mrf.mxu1  ;;  %v1071_v27 = vadd.f32 %v7122_v50, %v1070_v12  ;;  %v1154_v1 = vadd.f32 %v1153_v5, %v1111_v53  ;;  %v1053_v5 = vadd.f32 %v7122_v50, %v7136_v6  ;;  %v5029_v53 = vld [vmem:[%s8841_s4 + $0x38] sm:$0xf0] }
 0x116   : > { %v5032_v45 = vor.u32 %v6391_v52, %v5029_v53  ;;  %v6417_v52 = vld [vmem:[%s8841_s4 + $0xf4] sm:$0xf]  ;;  %v4997_v53 = vld [vmem:[%s8841_s4 + $0xf8] sm:$0xf0] }
 0x117   : > { %v1114_v38 = vadd.f32 %v1113_v13, %v1071_v27  ;;  %v1096_v29 = vadd.f32 %v7138_v7, %v1053_v5  ;;  %v5059_v5 = vld [vmem:[%s8841_s4 + $0x70] sm:$0xf] }
 0x11c   : > { %v1156_v14 = vpop.f32.mrf.mxu2  ;;  %v1072_v16 = vpop.f32.mrf.mxu0 }
 0x11d   : > { %v1199_v15 = vpop.f32.mrf.mxu3  ;;  %v1115_v17 = vpop.f32.mrf.mxu1  ;;  %v1073_v28 = vadd.f32 %v7122_v50, %v1072_v16  ;;  %v1157_v63 = vadd.f32 %v1156_v14, %v1114_v38  ;;  %v1149_v16 = vadd.f32 %v7190_v43, %v1106_v3  ;;  %v1144_v43 = vadd.f32 %v7153_v21, %v1101_v18  ;;  %v5053_v38 = vld [vmem:[%s8841_s4 + $0x68] sm:$0xf0]  ;;  %v6400_v18 = vld [vmem:[%s8841_s4 + $0x74] sm:$0xf0] }
 0x11e   : > { %v1139_v21 = vadd.f32 %v7142_v9, %v1096_v29  ;;  %v5021_v3 = vld [vmem:[%s8841_s4 + $0x28] sm:$0xf0]  ;;  %v5060_v54 = vor.u32 %v6400_v18, %v5059_v5  ;;  %v6425_v18 = vld [vmem:[%s8841_s4 + $0x124] sm:$0xf] }
 0x11f   : > { %v1116_v39 = vadd.f32 %v1115_v17, %v1073_v28  ;;  %v1200_v12 = vadd.f32 %v1199_v15, %v1157_v63  ;;  %v1197_v17 = vadd.f32 %v1196_v11, %v1154_v1  ;;  %v1192_v11 = vadd.f32 %v7192_v44, %v1149_v16  ;;  %v4903_v63 = vld [vmem:[%s8840_s3 + $0x8] sm:$0xf]  ;;  %v4917_v1 = vld [vmem:[%s8840_s3 + $0x18] sm:$0xf]  ;;  %v6387_v16 = vld [vmem:[%s8841_s4 + $0x14] sm:$0xf] }
 0x120   : > { %v1187_v44 = vadd.f32 %v7155_v22, %v1144_v43  ;;  %v1182_v34 = vadd.f32 %v7144_v10, %v1139_v21  ;;  %v1212_v22 = vmax.f32 %v7151_v20, 0.0 }
 0x121   : > { %v1218_v15 = vmax.f32 %v1200_v12, 0.0  ;;  %v1217_v6 = vmax.f32 %v1197_v17, 0.0  ;;  %v5013_v17 = vld [vmem:[%s8841_s4 + $0x18] sm:$0xf0] }
 0x122   : > { %v1211_v27 = vmax.f32 %v1182_v34, 0.0 }
 0x124   : > { %v1158_v23 = vpop.f32.mrf.mxu2  ;;  %v1075_v25 = vpop.f32.mrf.mxu0 }
 0x125   : > { %v1201_v24 = vpop.f32.mrf.mxu3  ;;  %v1118_v26 = vpop.f32.mrf.mxu1  ;;  %v1076_v30 = vadd.f32 %v7122_v50, %v1075_v25  ;;  %v1159_v40 = vadd.f32 %v1158_v23, %v1116_v39  ;;  %v7251_v25 = vpack.c.bf16 %v1217_v6, %v1216_v55  ;;  %v1091_v50 = vadd.f32 %v7127_v59, %v1048_v19  ;;  %v6401_v39 = vld [vmem:[%s8840_s3 + $0x10] sm:$0xff]  ;;  %v6396_v19 = vld [vmem:[%s8841_s4 + $0x54] sm:$0xf0]  ;;  %v6394_v55 = vld [vmem:[%s8841_s4 + $0x44] sm:$0xf0] }
 0x126   : > { %v5043_v6 = vld [vmem:[%s8841_s4 + $0x50] sm:$0xf]  ;;  %v5036_v21 = vor.u32 %v6394_v55, %v5035_v33  ;;  %v6403_v33 = vld [vmem:[%s8841_s4 + $0x84] sm:$0xf]  ;;  %v4941_v55 = vld [vmem:[%s8841_s4 + $0x88] sm:$0xf0] }
 0x127   : > { %v1119_v31 = vadd.f32 %v1118_v26, %v1076_v30  ;;  %v1202_v2 = vadd.f32 %v1201_v24, %v1159_v40  ;;  %v1215_v24 = vmax.f32 %v1192_v11, 0.0  ;;  %v1134_v7 = vadd.f32 %v7131_v61, %v1091_v50  ;;  %v6399_v30 = vld [vmem:[%s8841_s4 + $0x74] sm:$0xf] }
 0x128   : > { %v1213_v26 = vmax.f32 %v1187_v44, 0.0  ;;  %v1210_v61 = vmax.f32 %v7140_v8, 0.0  ;;  %v5056_v40 = vor.u32 %v6397_v37, %v5053_v38  ;;  %v5044_v29 = vor.u32 %v6396_v19, %v5043_v6  ;;  %v5027_v44 = vld [vmem:[%s8841_s4 + $0x30] sm:$0xf]  ;;  %v5147_v37 = vld [vmem:[%s8841_s4 + $0x168] sm:$0xf0] }
 0x129   : > { %v1219_v35 = vmax.f32 %v1202_v2, 0.0  ;;  %v7259_v9 = vpack.c.bf16 %v1215_v24, %v1214_v58  ;;  %v1177_v59 = vadd.f32 %v7133_v62, %v1134_v7  ;;  %v5061_v62 = vld [vmem:[%s8841_s4 + $0x78] sm:$0xf0]  ;;  %v6392_v24 = vld [vmem:[%s8841_s4 + $0x34] sm:$0xf0] }
 0x12a   : > { %v7266_v28 = vpack.c.bf16 %v1213_v26, %v1212_v22  ;;  %v7272_v20 = vpack.c.bf16 %v1211_v27, %v1210_v61  ;;  %v5064_v8 = vor.u32 %v6399_v30, %v5061_v62  ;;  %v6402_v2 = vld [vmem:[%s8840_s3 + $0x18] sm:$0x10]  ;;  %v5028_v50 = vor.u32 %v6392_v24, %v5027_v44  ;;  %v5019_v58 = vld [vmem:[%s8841_s4 + $0x20] sm:$0xf]  ;;  %v6390_v7 = vld [vmem:[%s8841_s4 + $0x24] sm:$0xf0] }
 0x12b   : > { %v7240_v23 = vpack.c.bf16 %v1219_v35, %v1218_v15  ;;  %v1209_v10 = vmax.f32 %v1177_v59, 0.0  ;;  %v4918_v12 = vor.u32 %v6402_v2, %v4917_v1  ;;  %v5016_v35 = vor.u32 %v6387_v16, %v5013_v17  ;;  %v6398_v15 = vld [vmem:[%s8841_s4 + $0x64] sm:$0xf0]  ;;  %v5011_v26 = vld [vmem:[%s8841_s4 + $0x10] sm:$0xf] }
 0x12c   : > { %v1161_v41 = vpop.f32.mrf.mxu2  ;;  %v1077_v48 = vpop.f32.mrf.mxu0  ;;  %v5052_v11 = vor.u32 %v6398_v15, %v5051_v36  ;;  %v5020_v34 = vor.u32 %v6390_v7, %v5019_v58  ;;  %v6388_v22 = vld [vmem:[%s8841_s4 + $0x14] sm:$0xf0]  ;;  %v5003_v27 = vld [vmem:[%s8841_s4] sm:$0xf]  ;;  %v6386_v61 = vld [vmem:[%s8841_s4 + $0x4] sm:$0xf0] }
 0x12d   : > { %v1204_v42 = vpop.f32.mrf.mxu3  ;;  %v1162_v47 = vadd.f32 %v1161_v41, %v1119_v31  ;;  %v1120_v49 = vpop.f32.mrf.mxu1  ;;  %v1208_v31 = vmax.f32 %v7129_v60, 0.0  ;;  %v6383_v60 = vld [vmem:[%s8840_s3] sm:$0xff]  ;;  %v6395_v41 = vld [vmem:[%s8841_s4 + $0x54] sm:$0xf]  ;;  %v5012_v59 = vor.u32 %v6388_v22, %v5011_v26  ;;  %v5155_v30 = vld [vmem:[%s8841_s4 + $0x178] sm:$0xf0]  ;;  %v5004_v62 = vor.u32 %v6386_v61, %v5003_v27 }
 0x12e   : > { %v6393_v48 = vld [vmem:[%s8841_s4 + $0x44] sm:$0xf]  ;;  %v5037_v49 = vld [vmem:[%s8841_s4 + $0x48] sm:$0xf0]  ;;  %v6409_v16 = vld [vmem:[%s8841_s4 + $0xb4] sm:$0xf] }
 0x12f   : > { %v1205_v0 = vadd.f32 %v1204_v42, %v1162_v47  ;;  %v7284_v32 = vpack.c.bf16 %v1209_v10, %v1208_v31  ;;  %v5045_v42 = vld [vmem:[%s8841_s4 + $0x58] sm:$0xf0]  ;;  %v5040_v51 = vor.u32 %v6393_v48, %v5037_v49  ;;  %v6435_v10 = vld [vmem:[%s8841_s4 + $0x174] sm:$0xf]  ;;  %v4989_v1 = vld [vmem:[%s8841_s4 + $0xe8] sm:$0xf0] }
 0x130   : > { %v5048_v47 = vor.u32 %v6395_v41, %v5045_v42  ;;  %v5158_v31 = vor.u32 %v6435_v10, %v5155_v30  ;;  %v6429_v41 = vld [vmem:[%s8841_s4 + $0x144] sm:$0xf]  ;;  %v5131_v42 = vld [vmem:[%s8841_s4 + $0x148] sm:$0xf0]  ;;  %v6427_v48 = vld [vmem:[%s8841_s4 + $0x134] sm:$0xf] }
 0x131   : > { %v1220_v56 = vmax.f32 %v1205_v0, 0.0  ;;  %v6384_v0 = vld [vmem:[%s8840_s3 + $0x8] sm:$0x10]  ;;  %v5123_v49 = vld [vmem:[%s8841_s4 + $0x138] sm:$0xf0] }
 0x132   : > { %v4904_v4 = vor.u32 %v6384_v0, %v4903_v63  ;;  %v5000_v63 = vor.u32 %v6417_v52, %v4997_v53  ;;  %v6415_v0 = vld [vmem:[%s8841_s4 + $0xe4] sm:$0xf]  ;;  %v4965_v17 = vld [vmem:[%s8841_s4 + $0xb8] sm:$0xf0]  ;;  %v5115_v36 = vld [vmem:[%s8841_s4 + $0x128] sm:$0xf0] }
 0x133   : > { %v1227_v13 = vpack.c.bf16 %v1220_v56, %v1220_v56  ;;  %v6389_v56 = vld [vmem:[%s8841_s4 + $0x24] sm:$0xf]  ;;  %v4992_v2 = vor.u32 %v6415_v0, %v4989_v1  ;;  %v5118_v15 = vor.u32 %v6425_v18, %v5115_v36  ;;  %v4949_v6 = vld [vmem:[%s8841_s4 + $0x98] sm:$0xf0]  ;;  %v5099_v24 = vld [vmem:[%s8841_s4 + $0x108] sm:$0xf0] }
 0x134   : > { %v1163_v46 = vpop.f32.mrf.mxu2  ;;  %1448 = vmatpush.bf16.msrb.mxu3 %v5000_v63  ;;  %v6421_v44 = vld [vmem:[%s8841_s4 + $0x104] sm:$0xf]  ;;  %v6450_v52 = vld [vmem:[%s8841_s4 + $0x1d4] sm:$0xf0]  ;;  %v5137_v63 = vld [vmem:[%s8841_s4 + $0x150] sm:$0xf] }
 0x135   : > { %v1206_v57 = vpop.f32.mrf.mxu3  ;;  %v7230_v14 = vsel %vm1249_vm0, %v1227_v13, 0  ;;  %v5024_v13 = vor.u32 %v6389_v56, %v5021_v3  ;;  %v6385_v46 = vld [vmem:[%s8841_s4 + $0x4] sm:$0xf]  ;;  %v4981_v56 = vld [vmem:[%s8841_s4 + $0xd8] sm:$0xf0] }
 0x136   : > { %1254 = vmatpush.bf16.msrb.mxu0 %v7230_v14  ;;  %1312 = vmatpush.bf16.msrb.mxu1 %v7230_v14  ;;  %v5005_v57 = vld [vmem:[%s8841_s4 + $0x8] sm:$0xf0]  ;;  %v6432_v0 = vld [vmem:[%s8841_s4 + $0x154] sm:$0xf0] }
 0x137   : > { %1607 = vmatpush.bf16.msra.mxu2 %v7230_v14  ;;  %v5008_v43 = vor.u32 %v6385_v46, %v5005_v57  ;;  %v6407_v46 = vld [vmem:[%s8841_s4 + $0xa4] sm:$0xf]  ;;  %v4957_v57 = vld [vmem:[%s8841_s4 + $0xa8] sm:$0xf0]  ;;  %v6446_v18 = vld [vmem:[%s8841_s4 + $0x1b4] sm:$0xf0] }
 0x138   : > { %1449 = vmatpush.bf16.msrb.mxu3 %v4992_v2  ;;  %v4960_v5 = vor.u32 %v6407_v46, %v4957_v57  ;;  %v5138_v2 = vor.u32 %v6432_v0, %v5137_v63  ;;  %v6465_v63 = vld [vmem:[%s8841_s4 + $0x244] sm:$0xf]  ;;  %v5319_v0 = vld [vmem:[%s8841_s4 + $0x248] sm:$0xf0] }
 0x13a   : > { %1255 = vmatpush.bf16.msrb.mxu0 %v7240_v23  ;;  %1313 = vmatpush.bf16.msrb.mxu1 %v7240_v23 }
 0x13b   : > { %1608 = vmatpush.bf16.msra.mxu2 %v7240_v23 }
 0x13e   : > { %1256 = vmatpush.bf16.msrb.mxu0 %v7251_v25  ;;  %1314 = vmatpush.bf16.msrb.mxu1 %v7251_v25 }
 0x13f   : > { %1609 = vmatpush.bf16.msra.mxu2 %v7251_v25 }
 0x142   : > { %1257 = vmatpush.bf16.msrb.mxu0 %v7259_v9  ;;  %1315 = vmatpush.bf16.msrb.mxu1 %v7259_v9 }
 0x143   : > { %1610 = vmatpush.bf16.msra.mxu2 %v7259_v9 }
 0x146   : > { %1258 = vmatpush.bf16.msrb.mxu0 %v7266_v28  ;;  %1316 = vmatpush.bf16.msrb.mxu1 %v7266_v28 }
 0x147   : > { %1611 = vmatpush.bf16.msra.mxu2 %v7266_v28 }
 0x14a   : > { %1259 = vmatpush.bf16.msrb.mxu0 %v7272_v20  ;;  %1317 = vmatpush.bf16.msrb.mxu1 %v7272_v20 }
 0x14b   : > { %1612 = vmatpush.bf16.msra.mxu2 %v7272_v20 }
 0x14e   : > { %1260 = vmatpush.bf16.msrb.mxu0 %v7284_v32  ;;  %1318 = vmatpush.bf16.msrb.mxu1 %v7284_v32 }
 0x14f   : > { %1613 = vmatpush.bf16.msra.mxu2 %v7284_v32 }
 0x151   : > { %4905 = vmatmul.msk.bf16.vlgmr.msrb.gmra.mxu0 %vm1242_vm1, %v6383_v60  ;;  %4919 = vmatmul.msk.bf16.vlgmr.msrb.gmra.mxu1 %vm1242_vm1, %v6401_v39  ;;  %v6431_v60 = vld [vmem:[%s8841_s4 + $0x154] sm:$0xf]  ;;  %v5139_v39 = vld [vmem:[%s8841_s4 + $0x158] sm:$0xf0] }
 0x152   : > { %1566 = vmatpush.bf16.msra.mxu1 %v5064_v8  ;;  %1547 = vmatpush.bf16.msra.mxu0 %v5060_v54  ;;  %v6433_v8 = vld [vmem:[%s8841_s4 + $0x164] sm:$0xf]  ;;  %v6423_v54 = vld [vmem:[%s8841_s4 + $0x114] sm:$0xf] }
 0x153   : > { %v5150_v38 = vor.u32 %v6433_v8, %v5147_v37  ;;  %v5247_v8 = vld [vmem:[%s8841_s4 + $0x1f0] sm:$0xf]  ;;  %v6454_v37 = vld [vmem:[%s8841_s4 + $0x1f4] sm:$0xf0] }
 0x156   : > { %1567 = vmatpush.bf16.msra.mxu1 %v5056_v40  ;;  %1548 = vmatpush.bf16.msra.mxu0 %v5052_v11  ;;  %v5142_v40 = vor.u32 %v6431_v60, %v5139_v39  ;;  %v6405_v11 = vld [vmem:[%s8841_s4 + $0x94] sm:$0xf]  ;;  %v5248_v60 = vor.u32 %v6454_v37, %v5247_v8  ;;  %v6452_v39 = vld [vmem:[%s8841_s4 + $0x1e4] sm:$0xf0]  ;;  %v5335_v8 = vld [vmem:[%s8841_s4 + $0x268] sm:$0xf0] }
 0x157   : > { %v5097_v37 = vld [vmem:[%s8841_s4 + $0x100] sm:$0xf] }
 0x15a   : > { %1568 = vmatpush.bf16.msra.mxu1 %v5048_v47  ;;  %1549 = vmatpush.bf16.msra.mxu0 %v5044_v29  ;;  %v5134_v47 = vor.u32 %v6429_v41, %v5131_v42  ;;  %v4952_v29 = vor.u32 %v6405_v11, %v4949_v6  ;;  %v6436_v41 = vld [vmem:[%s8841_s4 + $0x174] sm:$0xf0]  ;;  %v6444_v6 = vld [vmem:[%s8841_s4 + $0x1a4] sm:$0xf0] }
 0x15e   : > { %1569 = vmatpush.bf16.msra.mxu1 %v5040_v51  ;;  %1550 = vmatpush.bf16.msra.mxu0 %v5036_v21  ;;  %v5126_v51 = vor.u32 %v6427_v48, %v5123_v49  ;;  %v4944_v21 = vor.u32 %v6403_v33, %v4941_v55  ;;  %v6434_v49 = vld [vmem:[%s8841_s4 + $0x164] sm:$0xf0]  ;;  %v6428_v33 = vld [vmem:[%s8841_s4 + $0x134] sm:$0xf0] }
 0x161   : > { %4906 = vmatmul.msk.bf16.gmra.mxu0 %vm1242_vm1, %v4904_v4  ;;  %4920 = vmatmul.msk.bf16.gmra.mxu1 %vm1242_vm1, %v4918_v12  ;;  %v6411_v4 = vld [vmem:[%s8841_s4 + $0xc4] sm:$0xf]  ;;  %v4973_v12 = vld [vmem:[%s8841_s4 + $0xc8] sm:$0xf0] }
 0x162   : > { %1570 = vmatpush.bf16.msra.mxu1 %v5032_v45  ;;  %1551 = vmatpush.bf16.msra.mxu0 %v5028_v50  ;;  %v6413_v45 = vld [vmem:[%s8841_s4 + $0xd4] sm:$0xf]  ;;  %v5102_v50 = vor.u32 %v6421_v44, %v5099_v24  ;;  %v6442_v44 = vld [vmem:[%s8841_s4 + $0x194] sm:$0xf0] }
 0x163   : > { %v4984_v3 = vor.u32 %v6413_v45, %v4981_v56  ;;  %v5223_v45 = vld [vmem:[%s8841_s4 + $0x1c0] sm:$0xf]  ;;  %v6448_v56 = vld [vmem:[%s8841_s4 + $0x1c4] sm:$0xf0] }
 0x165   : > { %1450 = vmatpush.bf16.msrb.mxu3 %v4984_v3  ;;  %v6419_v3 = vld [vmem:[%s8840_s3 + $0x20] sm:$0xff] }
 0x166   : > { %1571 = vmatpush.bf16.msra.mxu1 %v5024_v13  ;;  %1552 = vmatpush.bf16.msra.mxu0 %v5020_v34  ;;  %v4976_v13 = vor.u32 %v6411_v4, %v4973_v12  ;;  %v6437_v4 = vld [vmem:[%s8840_s3 + $0x30] sm:$0xff]  ;;  %v5224_v12 = vor.u32 %v6448_v56, %v5223_v45  ;;  %v5233_v45 = vld [vmem:[%s8841_s4 + $0x1d8] sm:$0xf0] }
 0x169   : > { %1451 = vmatpush.bf16.msrb.mxu3 %v4976_v13  ;;  %v5075_v13 = vld [vmem:[%s8840_s3 + $0x28] sm:$0xf] }
 0x16a   : > { %1572 = vmatpush.bf16.msra.mxu1 %v5016_v35  ;;  %1553 = vmatpush.bf16.msra.mxu0 %v5012_v59  ;;  %v4968_v35 = vor.u32 %v6409_v16, %v4965_v17  ;;  %v6420_v16 = vld [vmem:[%s8840_s3 + $0x28] sm:$0x10]  ;;  %v5169_v17 = vld [vmem:[%s8840_s3 + $0x38] sm:$0xf] }
 0x16b   : > { %v5076_v46 = vor.u32 %v6420_v16, %v5075_v13  ;;  %v6447_v13 = vld [vmem:[%s8841_s4 + $0x1c4] sm:$0xf]  ;;  %v5225_v16 = vld [vmem:[%s8841_s4 + $0x1c8] sm:$0xf0] }
 0x16d   : > { %1452 = vmatpush.bf16.msrb.mxu3 %v4968_v35  ;;  %v6438_v35 = vld [vmem:[%s8840_s3 + $0x38] sm:$0x10] }
 0x16e   : > { %1573 = vmatpush.bf16.msra.mxu1 %v5008_v43  ;;  %1554 = vmatpush.bf16.msra.mxu0 %v5004_v62  ;;  %v5107_v43 = vld [vmem:[%s8841_s4 + $0x118] sm:$0xf0]  ;;  %v5170_v57 = vor.u32 %v6438_v35, %v5169_v17  ;;  %v5228_v17 = vor.u32 %v6447_v13, %v5225_v16  ;;  %v5341_v16 = vld [vmem:[%s8841_s4 + $0x270] sm:$0xf] }
 0x16f   : > { %v5110_v19 = vor.u32 %v6423_v54, %v5107_v43  ;;  %v5129_v54 = vld [vmem:[%s8841_s4 + $0x140] sm:$0xf] }
 0x170   : > { %v5207_v43 = vld [vmem:[%s8841_s4 + $0x1a0] sm:$0xf] }
 0x171   : > { %1453 = vmatpush.bf16.msrb.mxu3 %v4960_v5  ;;  %v5215_v5 = vld [vmem:[%s8841_s4 + $0x1b0] sm:$0xf] }
 0x172   : > { %1792 = vmatpush.bf16.msrb.mxu1 %v7230_v14  ;;  %1743 = vmatpush.bf16.msrb.mxu0 %v5158_v31  ;;  %v5216_v36 = vor.u32 %v6446_v18, %v5215_v5  ;;  %v5303_v5 = vld [vmem:[%s8841_s4 + $0x228] sm:$0xf0]  ;;  %v6445_v18 = vld [vmem:[%s8841_s4 + $0x1b4] sm:$0xf] }
 0x175   : > { %1454 = vmatpush.bf16.msrb.mxu3 %v4952_v29  ;;  %v5121_v29 = vld [vmem:[%s8841_s4 + $0x130] sm:$0xf] }
 0x176   : > { %1793 = vmatpush.bf16.msrb.mxu1 %v7240_v23  ;;  %1744 = vmatpush.bf16.msrb.mxu0 %v5150_v38  ;;  %v5239_v38 = vld [vmem:[%s8841_s4 + $0x1e0] sm:$0xf]  ;;  %v5122_v55 = vor.u32 %v6428_v33, %v5121_v29  ;;  %v6443_v29 = vld [vmem:[%s8841_s4 + $0x1a4] sm:$0xf]  ;;  %v5209_v33 = vld [vmem:[%s8841_s4 + $0x1a8] sm:$0xf0] }
 0x177   : > { %v5240_v48 = vor.u32 %v6452_v39, %v5239_v38  ;;  %v6453_v39 = vld [vmem:[%s8841_s4 + $0x1f4] sm:$0xf] }
 0x179   : > { %1455 = vmatpush.bf16.msrb.mxu3 %v4944_v21  ;;  %v5199_v21 = vld [vmem:[%s8841_s4 + $0x190] sm:$0xf] }
 0x17a   : > { %1794 = vmatpush.bf16.msrb.mxu1 %v7251_v25  ;;  %1745 = vmatpush.bf16.msrb.mxu0 %v5142_v40  ;;  %v5153_v40 = vld [vmem:[%s8841_s4 + $0x170] sm:$0xf]  ;;  %v5200_v24 = vor.u32 %v6442_v44, %v5199_v21  ;;  %v5212_v21 = vor.u32 %v6443_v29, %v5209_v33  ;;  %v6474_v29 = vld [vmem:[%s8840_s3 + $0x58] sm:$0x10] }
 0x17b   : > { %v5154_v42 = vor.u32 %v6436_v41, %v5153_v40  ;;  %v5249_v40 = vld [vmem:[%s8841_s4 + $0x1f8] sm:$0xf0] }
 0x17d   : > { %1724 = vmatpush.bf16.msra.mxu3 %v5154_v42  ;;  %v5252_v42 = vor.u32 %v6453_v39, %v5249_v40 }
 0x17e   : > { %1795 = vmatpush.bf16.msrb.mxu1 %v7259_v9  ;;  %1746 = vmatpush.bf16.msrb.mxu0 %v5134_v47  ;;  %v5145_v47 = vld [vmem:[%s8841_s4 + $0x160] sm:$0xf] }
 0x17f   : > { %v5146_v53 = vor.u32 %v6434_v49, %v5145_v47  ;;  %v6467_v47 = vld [vmem:[%s8841_s4 + $0x254] sm:$0xf] }
 0x181   : > { %1725 = vmatpush.bf16.msra.mxu3 %v5146_v53 }
 0x182   : > { %1796 = vmatpush.bf16.msrb.mxu1 %v7266_v28  ;;  %1747 = vmatpush.bf16.msrb.mxu0 %v5126_v51  ;;  %v5231_v51 = vld [vmem:[%s8841_s4 + $0x1d0] sm:$0xf] }
 0x183   : > { %v5232_v1 = vor.u32 %v6450_v52, %v5231_v51  ;;  %v6451_v51 = vld [vmem:[%s8841_s4 + $0x1e4] sm:$0xf]  ;;  %v5241_v52 = vld [vmem:[%s8841_s4 + $0x1e8] sm:$0xf0] }
 0x184   : > { %v5244_v53 = vor.u32 %v6451_v51, %v5241_v52 }
 0x185   : > { %1726 = vmatpush.bf16.msra.mxu3 %v5138_v2  ;;  %v5322_v2 = vor.u32 %v6465_v63, %v5319_v0 }
 0x186   : > { %1797 = vmatpush.bf16.msrb.mxu1 %v7272_v20  ;;  %1748 = vmatpush.bf16.msrb.mxu0 %v5118_v15  ;;  %v6430_v15 = vld [vmem:[%s8841_s4 + $0x144] sm:$0xf0] }
 0x187   : > { %v5130_v11 = vor.u32 %v6430_v15, %v5129_v54  ;;  %v5217_v54 = vld [vmem:[%s8841_s4 + $0x1b8] sm:$0xf0] }
 0x188   : > { %v5220_v15 = vor.u32 %v6445_v18, %v5217_v54  ;;  %v5325_v18 = vld [vmem:[%s8841_s4 + $0x250] sm:$0xf] }
 0x189   : > { %1727 = vmatpush.bf16.msra.mxu3 %v5130_v11  ;;  %v5295_v11 = vld [vmem:[%s8841_s4 + $0x218] sm:$0xf0] }
 0x18a   : > { %1798 = vmatpush.bf16.msrb.mxu1 %v7284_v32  ;;  %1749 = vmatpush.bf16.msrb.mxu0 %v5110_v19  ;;  %v5208_v19 = vor.u32 %v6444_v6, %v5207_v43  ;;  %v6459_v43 = vld [vmem:[%s8841_s4 + $0x214] sm:$0xf] }
 0x18d   : > { %1728 = vmatpush.bf16.msra.mxu3 %v5122_v55 }
 0x18e   : > { %1750 = vmatpush.bf16.msrb.mxu0 %v5102_v50  ;;  %v5113_v50 = vld [vmem:[%s8841_s4 + $0x120] sm:$0xf] }
 0x1ce   : > { %v1262_v58 = vpop.f32.mrf.mxu0  ;;  %v1320_v7 = vpop.f32.mrf.mxu1 }
 0x1d6   : > { %v1264_v34 = vpop.f32.mrf.mxu0  ;;  %v1322_v26 = vpop.f32.mrf.mxu1 }
 0x1d7   : > { %v1272_v22 = vpack.c.bf16 %v1264_v34, %v1262_v58  ;;  %v1330_v59 = vpack.c.bf16 %v1322_v26, %v1320_v7  ;;  %v6426_v58 = vld [vmem:[%s8841_s4 + $0x124] sm:$0xf0]  ;;  %v5191_v7 = vld [vmem:[%s8841_s4 + $0x180] sm:$0xf] }
 0x1d8   : > { %v5114_v34 = vor.u32 %v6426_v58, %v5113_v50  ;;  %v6440_v26 = vld [vmem:[%s8841_s4 + $0x184] sm:$0xf0]  ;;  %v6457_v50 = vld [vmem:[%s8841_s4 + $0x204] sm:$0xf]  ;;  %v5287_v58 = vld [vmem:[%s8841_s4 + $0x208] sm:$0xf0] }
 0x1d9   : > { %1437 = vmatmul.bf16.vlgmr.msrb.gmra.mxu2 %v1330_v59  ;;  %1555 = vmatmul.bf16.vlgmr.msra.gmra.mxu0 %v1272_v22 }
 0x1da   : > { %1574 = vmatmul.bf16.vlgmr.msra.gmra.mxu1 %v1272_v22  ;;  %1977 = vmatpush.bf16.msra.mxu0 %v7230_v14  ;;  %v5192_v22 = vor.u32 %v6440_v26, %v5191_v7 }
 0x1db   : > { %1456 = vmatmul.bf16.vlgmr.msrb.gmra.mxu3 %v1330_v59  ;;  %1909 = vmatpush.bf16.msrb.mxu2 %v5248_v60  ;;  %v6471_v59 = vld [vmem:[%s8841_s4 + $0x274] sm:$0xf]  ;;  %v6422_v60 = vld [vmem:[%s8841_s4 + $0x104] sm:$0xf0] }
 0x1dc   : > { %1729 = vmatpush.bf16.msra.mxu3 %v5114_v34  ;;  %v5098_v41 = vor.u32 %v6422_v60, %v5097_v37  ;;  %v5290_v34 = vor.u32 %v6457_v50, %v5287_v58  ;;  %v5301_v58 = vld [vmem:[%s8841_s4 + $0x220] sm:$0xf] }
 0x1de   : > { %1978 = vmatpush.bf16.msra.mxu0 %v7240_v23  ;;  %v1267_v27 = vpop.f32.mrf.mxu0  ;;  %v1325_v61 = vpop.f32.mrf.mxu1 }
 0x1df   : > { %1910 = vmatpush.bf16.msrb.mxu2 %v5240_v48  ;;  %v5327_v48 = vld [vmem:[%s8841_s4 + $0x258] sm:$0xf0] }
 0x1e0   : > { %v5330_v49 = vor.u32 %v6467_v47, %v5327_v48 }
 0x1e2   : > { %1979 = vmatpush.bf16.msra.mxu0 %v7251_v25 }
 0x1e3   : > { %1911 = vmatpush.bf16.msrb.mxu2 %v5232_v1  ;;  %v6449_v1 = vld [vmem:[%s8841_s4 + $0x1d4] sm:$0xf] }
 0x1e4   : > { %v5236_v56 = vor.u32 %v6449_v1, %v5233_v45 }
 0x1e6   : > { %1980 = vmatpush.bf16.msra.mxu0 %v7259_v9  ;;  %v1269_v10 = vpop.f32.mrf.mxu0  ;;  %v1327_v30 = vpop.f32.mrf.mxu1 }
 0x1e7   : > { %v1331_v62 = vpack.c.bf16 %v1327_v30, %v1325_v61  ;;  %v1273_v31 = vpack.c.bf16 %v1269_v10, %v1267_v27  ;;  %1912 = vmatpush.bf16.msrb.mxu2 %v5224_v12  ;;  %v5343_v27 = vld [vmem:[%s8841_s4 + $0x278] sm:$0xf0]  ;;  %v5105_v10 = vld [vmem:[%s8841_s4 + $0x110] sm:$0xf]  ;;  %v6424_v30 = vld [vmem:[%s8841_s4 + $0x114] sm:$0xf0] }
 0x1e8   : > { %v5346_v61 = vor.u32 %v6471_v59, %v5343_v27  ;;  %v5201_v59 = vld [vmem:[%s8841_s4 + $0x198] sm:$0xf0] }
 0x1e9   : > { %1442 = vmatmul.bf16.gmra.mxu2 %v1331_v62  ;;  %1560 = vmatmul.bf16.gmra.mxu0 %v1273_v31 }
 0x1ea   : > { %1579 = vmatmul.bf16.gmra.mxu1 %v1273_v31  ;;  %1981 = vmatpush.bf16.msra.mxu0 %v7266_v28  ;;  %v6469_v31 = vld [vmem:[%s8841_s4 + $0x264] sm:$0xf] }
 0x1eb   : > { %1461 = vmatmul.bf16.gmra.mxu3 %v1331_v62  ;;  %1913 = vmatpush.bf16.msrb.mxu2 %v5216_v36  ;;  %v5106_v62 = vor.u32 %v6424_v30, %v5105_v10  ;;  %v5338_v38 = vor.u32 %v6469_v31, %v5335_v8  ;;  %v6439_v10 = vld [vmem:[%s8841_s4 + $0x184] sm:$0xf]  ;;  %v5193_v30 = vld [vmem:[%s8841_s4 + $0x188] sm:$0xf0] }
 0x1ed   : > { %1730 = vmatpush.bf16.msra.mxu3 %v5106_v62  ;;  %v5196_v62 = vor.u32 %v6439_v10, %v5193_v30  ;;  %v5285_v30 = vld [vmem:[%s8841_s4 + $0x200] sm:$0xf] }
 0x1ee   : > { %1982 = vmatpush.bf16.msra.mxu0 %v7272_v20 }
 0x1ef   : > { %1914 = vmatpush.bf16.msrb.mxu2 %v5208_v19  ;;  %v5298_v19 = vor.u32 %v6459_v43, %v5295_v11  ;;  %v6466_v43 = vld [vmem:[%s8841_s4 + $0x244] sm:$0xf0] }
 0x1f1   : > { %1731 = vmatpush.bf16.msra.mxu3 %v5098_v41 }
 0x1f2   : > { %1983 = vmatpush.bf16.msra.mxu0 %v7284_v32 }
 0x1f3   : > { %1915 = vmatpush.bf16.msrb.mxu2 %v5200_v24 }
 0x1f5   : > { %1928 = vmatpush.bf16.msrb.mxu3 %v5252_v42 }
 0x1f7   : > { %1916 = vmatpush.bf16.msrb.mxu2 %v5192_v22  ;;  %v6441_v22 = vld [vmem:[%s8841_s4 + $0x194] sm:$0xf] }
 0x1f8   : > { %v5204_v27 = vor.u32 %v6441_v22, %v5201_v59  ;;  %v5293_v59 = vld [vmem:[%s8841_s4 + $0x210] sm:$0xf] }
 0x1f9   : > { %5077 = vmatmul.msk.bf16.vlgmr.msra.gmra.mxu2 %vm1242_vm1, %v6419_v3  ;;  %1929 = vmatpush.bf16.msrb.mxu3 %v5244_v53  ;;  %v6463_v3 = vld [vmem:[%s8841_s4 + $0x234] sm:$0xf] }
 0x1fa   : > { %5171 = vmatmul.msk.bf16.vlgmr.msrb.gmra.mxu1 %vm1242_vm1, %v6437_v4  ;;  %v5311_v4 = vld [vmem:[%s8841_s4 + $0x238] sm:$0xf0] }
 0x1fb   : > { %2113 = vmatpush.bf16.msra.mxu2 %v5346_v61  ;;  %v5314_v12 = vor.u32 %v6463_v3, %v5311_v4  ;;  %v6455_v3 = vld [vmem:[%s8840_s3 + $0x40] sm:$0xff]  ;;  %v5263_v4 = vld [vmem:[%s8840_s3 + $0x48] sm:$0xf] }
 0x1fd   : > { %1930 = vmatpush.bf16.msrb.mxu3 %v5236_v56 }
 0x1ff   : > { %2114 = vmatpush.bf16.msra.mxu2 %v5338_v38 }
 0x201   : > { %1931 = vmatpush.bf16.msrb.mxu3 %v5228_v17  ;;  %v6472_v17 = vld [vmem:[%s8841_s4 + $0x274] sm:$0xf0] }
 0x203   : > { %2115 = vmatpush.bf16.msra.mxu2 %v5330_v49 }
 0x205   : > { %1932 = vmatpush.bf16.msrb.mxu3 %v5220_v15  ;;  %v5317_v15 = vld [vmem:[%s8841_s4 + $0x240] sm:$0xf] }
 0x206   : > { %v5318_v11 = vor.u32 %v6466_v43, %v5317_v15  ;;  %v5397_v15 = vld [vmem:[%s8841_s4 + $0x2a8] sm:$0xf0]  ;;  %v5411_v43 = vld [vmem:[%s8841_s4 + $0x2c0] sm:$0xf] }
 0x207   : > { %2116 = vmatpush.bf16.msra.mxu2 %v5322_v2 }
 0x209   : > { %5078 = vmatmul.msk.bf16.gmra.mxu2 %vm1242_vm1, %v5076_v46  ;;  %1933 = vmatpush.bf16.msrb.mxu3 %v5212_v21  ;;  %v5309_v21 = vld [vmem:[%s8841_s4 + $0x230] sm:$0xf] }
 0x20a   : > { %5172 = vmatmul.msk.bf16.gmra.mxu1 %vm1242_vm1, %v5170_v57  ;;  %v6461_v57 = vld [vmem:[%s8841_s4 + $0x224] sm:$0xf] }
 0x20b   : > { %2117 = vmatpush.bf16.msra.mxu2 %v5314_v12  ;;  %v5306_v36 = vor.u32 %v6461_v57, %v5303_v5  ;;  %v6456_v12 = vld [vmem:[%s8840_s3 + $0x48] sm:$0x10]  ;;  %v6470_v57 = vld [vmem:[%s8841_s4 + $0x264] sm:$0xf0] }
 0x20c   : > { %v5264_v13 = vor.u32 %v6456_v12, %v5263_v4  ;;  %v5427_v4 = vld [vmem:[%s8841_s4 + $0x2e0] sm:$0xf]  ;;  %v6488_v12 = vld [vmem:[%s8841_s4 + $0x2e4] sm:$0xf0] }
 0x20d   : > { %1934 = vmatpush.bf16.msrb.mxu3 %v5204_v27  ;;  %v6460_v27 = vld [vmem:[%s8841_s4 + $0x214] sm:$0xf0] }
 0x20e   : > { %v5294_v10 = vor.u32 %v6460_v27, %v5293_v59 }
 0x20f   : > { %2118 = vmatpush.bf16.msra.mxu2 %v5306_v36  ;;  %v6468_v36 = vld [vmem:[%s8841_s4 + $0x254] sm:$0xf0] }
 0x210   : > { %v5326_v54 = vor.u32 %v6468_v36, %v5325_v18 }
 0x211   : > { %1935 = vmatpush.bf16.msrb.mxu3 %v5196_v62  ;;  %v6458_v62 = vld [vmem:[%s8841_s4 + $0x204] sm:$0xf0] }
 0x213   : > { %2119 = vmatpush.bf16.msra.mxu2 %v5298_v19  ;;  %v5357_v19 = vld [vmem:[%s8840_s3 + $0x58] sm:$0xf] }
 0x214   : > { %v5358_v33 = vor.u32 %v6474_v29, %v5357_v19  ;;  %v6484_v29 = vld [vmem:[%s8841_s4 + $0x2c4] sm:$0xf0] }
 0x217   : > { %2120 = vmatpush.bf16.msra.mxu2 %v5290_v34  ;;  %v6462_v34 = vld [vmem:[%s8841_s4 + $0x224] sm:$0xf0] }
 0x218   : > { %v5302_v22 = vor.u32 %v6462_v34, %v5301_v58  ;;  %v5403_v58 = vld [vmem:[%s8841_s4 + $0x2b0] sm:$0xf]  ;;  %v6482_v34 = vld [vmem:[%s8841_s4 + $0x2b4] sm:$0xf0] }
 0x219   : > { %v5404_v59 = vor.u32 %v6482_v34, %v5403_v58 }
 0x256   : > { %v1556_v35 = vpop.f32.mrf.mxu0 }
 0x257   : > { %v1575_v46 = vpop.f32.mrf.mxu1 }
 0x25c   : > { %v1438_v6 = vpop.f32.mrf.mxu2 }
 0x25d   : > { %v7707_v55 = vadd.f32 %v1556_v35, %v1438_v6  ;;  %v5333_v35 = vld [vmem:[%s8841_s4 + $0x260] sm:$0xf]  ;;  %v6473_v6 = vld [vmem:[%s8840_s3 + $0x50] sm:$0xff] }
 0x25e   : > { %v1457_v44 = vpop.f32.mrf.mxu3  ;;  %v7719_v26 = vpop.f32.mrf.mxu0  ;;  %v5334_v5 = vor.u32 %v6470_v57, %v5333_v35  ;;  %v5419_v57 = vld [vmem:[%s8841_s4 + $0x2d0] sm:$0xf] }
 0x25f   : > { %v7709_v24 = vpop.f32.mrf.mxu1  ;;  %v7717_v7 = vadd.f32 %v1575_v46, %v1457_v44  ;;  %v5342_v46 = vor.u32 %v6472_v17, %v5341_v16  ;;  %v6464_v44 = vld [vmem:[%s8841_s4 + $0x234] sm:$0xf0]  ;;  %v6481_v16 = vld [vmem:[%s8841_s4 + $0x2b4] sm:$0xf]  ;;  %v5405_v17 = vld [vmem:[%s8841_s4 + $0x2b8] sm:$0xf0] }
 0x260   : > { %v5310_v50 = vor.u32 %v6464_v44, %v5309_v21  ;;  %v6477_v21 = vld [vmem:[%s8841_s4 + $0x294] sm:$0xf]  ;;  %v5389_v44 = vld [vmem:[%s8841_s4 + $0x298] sm:$0xf0] }
 0x261   : > { %2094 = vmatpush.bf16.msra.mxu1 %v5342_v46  ;;  %v5408_v46 = vor.u32 %v6481_v16, %v5405_v17  ;;  %v5523_v16 = vld [vmem:[%s8841_s4 + $0x368] sm:$0xf0] }
 0x264   : > { %v7727_v61 = vpop.f32.mrf.mxu2 }
 0x265   : > { %2095 = vmatpush.bf16.msra.mxu1 %v5334_v5  ;;  %v6486_v5 = vld [vmem:[%s8841_s4 + $0x2d4] sm:$0xf0] }
 0x266   : > { %v7735_v31 = vpop.f32.mrf.mxu3  ;;  %v1561_v37 = vpop.f32.mrf.mxu0  ;;  %v5420_v18 = vor.u32 %v6486_v5, %v5419_v57  ;;  %v6503_v5 = vld [vmem:[%s8841_s4 + $0x354] sm:$0xf] }
 0x267   : > { %v1580_v8 = vpop.f32.mrf.mxu1 }
 0x269   : > { %2096 = vmatpush.bf16.msra.mxu1 %v5326_v54  ;;  %v6479_v54 = vld [vmem:[%s8841_s4 + $0x2a4] sm:$0xf] }
 0x26a   : > { %v5400_v19 = vor.u32 %v6479_v54, %v5397_v15  ;;  %v6501_v54 = vld [vmem:[%s8841_s4 + $0x344] sm:$0xf]  ;;  %v5507_v15 = vld [vmem:[%s8841_s4 + $0x348] sm:$0xf0] }
 0x26c   : > { %v1443_v38 = vpop.f32.mrf.mxu2 }
 0x26d   : > { %v7737_v60 = vadd.f32 %v1561_v37, %v1443_v38  ;;  %2097 = vmatpush.bf16.msra.mxu1 %v5318_v11  ;;  %v6489_v37 = vld [vmem:[%s8841_s4 + $0x2f4] sm:$0xf]  ;;  %v5437_v38 = vld [vmem:[%s8841_s4 + $0x2f8] sm:$0xf0] }
 0x26e   : > { %v1462_v39 = vpop.f32.mrf.mxu3 }
 0x26f   : > { %v7739_v40 = vpop.f32.mrf.mxu1  ;;  %v7741_v41 = vadd.f32 %v1580_v8, %v1462_v39  ;;  %v5286_v8 = vor.u32 %v6458_v62, %v5285_v30  ;;  %v5440_v39 = vor.u32 %v6489_v37, %v5437_v38  ;;  %v6475_v30 = vld [vmem:[%s8841_s4 + $0x284] sm:$0xf]  ;;  %v5381_v62 = vld [vmem:[%s8841_s4 + $0x288] sm:$0xf0]  ;;  %v6480_v37 = vld [vmem:[%s8841_s4 + $0x2a4] sm:$0xf0] }
 0x271   : > { %2098 = vmatpush.bf16.msra.mxu1 %v5310_v50 }
 0x274   : > { %v7743_v42 = vpop.f32.mrf.mxu2 }
 0x275   : > { %2099 = vmatpush.bf16.msra.mxu1 %v5302_v22 }
 0x276   : > { %v7873_v35 = vpop.f32.mrf.mxu3 }
 0x277   : > { %v1800_v47 = vpop.f32.mrf.mxu1 }
 0x279   : > { %2100 = vmatpush.bf16.msra.mxu1 %v5294_v10 }
 0x27c   : > { %v1615_v48 = vpop.f32.mrf.mxu2 }
 0x27d   : > { %2101 = vmatpush.bf16.msra.mxu1 %v5286_v8  ;;  %v5384_v8 = vor.u32 %v6475_v30, %v5381_v62  ;;  %v5483_v30 = vld [vmem:[%s8841_s4 + $0x318] sm:$0xf0] }
 0x27f   : > { %v1802_v49 = vpop.f32.mrf.mxu1 }
 0x280   : > { %v1810_v51 = vpack.c.bf16 %v1802_v49, %v1800_v47  ;;  %v6487_v47 = vld [vmem:[%s8841_s4 + $0x2e4] sm:$0xf] }
 0x281   : > { %2298 = vmatpush.bf16.msrb.mxu1 %v5440_v39 }
 0x282   : > { %1917 = vmatmul.bf16.vlgmr.msrb.gmra.mxu2 %v1810_v51 }
 0x283   : > { %2347 = vmatpush.bf16.msrb.mxu2 %v7230_v14 }
 0x284   : > { %v1617_v52 = vpop.f32.mrf.mxu2 }
 0x285   : > { %v1625_v53 = vpack.c.bf16 %v1617_v52, %v1615_v48  ;;  %v5429_v48 = vld [vmem:[%s8841_s4 + $0x2e8] sm:$0xf0]  ;;  %v5421_v52 = vld [vmem:[%s8841_s4 + $0x2d8] sm:$0xf0] }
 0x286   : > { %v5432_v49 = vor.u32 %v6487_v47, %v5429_v48  ;;  %v5387_v48 = vld [vmem:[%s8841_s4 + $0x290] sm:$0xf] }
 0x287   : > { %2348 = vmatpush.bf16.msrb.mxu2 %v7240_v23  ;;  %1732 = vmatmul.bf16.vlgmr.msra.gmra.mxu3 %v1625_v53  ;;  %v1805_v63 = vpop.f32.mrf.mxu1 }
 0x288   : > { %1751 = vmatmul.bf16.vlgmr.msrb.gmra.mxu0 %v1625_v53  ;;  %2162 = vmatpush.bf16.msra.mxu3 %v7230_v14 }
 0x289   : > { %2299 = vmatpush.bf16.msrb.mxu1 %v5432_v49  ;;  %v6478_v49 = vld [vmem:[%s8841_s4 + $0x294] sm:$0xf0] }
 0x28b   : > { %2349 = vmatpush.bf16.msrb.mxu2 %v7251_v25 }
 0x28c   : > { %2163 = vmatpush.bf16.msra.mxu3 %v7240_v23  ;;  %v1620_v0 = vpop.f32.mrf.mxu2 }
 0x28f   : > { %2350 = vmatpush.bf16.msrb.mxu2 %v7259_v9  ;;  %v1807_v1 = vpop.f32.mrf.mxu1 }
 0x290   : > { %2164 = vmatpush.bf16.msra.mxu3 %v7251_v25  ;;  %v1811_v2 = vpack.c.bf16 %v1807_v1, %v1805_v63  ;;  %v5435_v63 = vld [vmem:[%s8841_s4 + $0x2f0] sm:$0xf] }
 0x292   : > { %1922 = vmatmul.bf16.gmra.mxu2 %v1811_v2 }
 0x293   : > { %2351 = vmatpush.bf16.msrb.mxu2 %v7266_v28 }
 0x294   : > { %2165 = vmatpush.bf16.msra.mxu3 %v7259_v9  ;;  %v1622_v45 = vpop.f32.mrf.mxu2 }
 0x295   : > { %v1626_v56 = vpack.c.bf16 %v1622_v45, %v1620_v0  ;;  %v6490_v0 = vld [vmem:[%s8841_s4 + $0x2f4] sm:$0xf0]  ;;  %v6483_v45 = vld [vmem:[%s8841_s4 + $0x2c4] sm:$0xf] }
 0x296   : > { %v5436_v1 = vor.u32 %v6490_v0, %v5435_v63  ;;  %v6476_v63 = vld [vmem:[%s8841_s4 + $0x284] sm:$0xf0] }
 0x297   : > { %2352 = vmatpush.bf16.msrb.mxu2 %v7272_v20  ;;  %1737 = vmatmul.bf16.gmra.mxu3 %v1626_v56 }
 0x298   : > { %1756 = vmatmul.bf16.gmra.mxu0 %v1626_v56  ;;  %2166 = vmatpush.bf16.msra.mxu3 %v7266_v28  ;;  %v5413_v56 = vld [vmem:[%s8841_s4 + $0x2c8] sm:$0xf0] }
 0x299   : > { %2279 = vmatpush.bf16.msrb.mxu0 %v5436_v1 }
 0x29b   : > { %2353 = vmatpush.bf16.msrb.mxu2 %v7284_v32 }
 0x29c   : > { %2167 = vmatpush.bf16.msra.mxu3 %v7272_v20 }
 0x2a0   : > { %2168 = vmatpush.bf16.msra.mxu3 %v7284_v32 }
 0x2a7   : > { %1936 = vmatmul.bf16.vlgmr.msrb.gmra.mxu3 %v1810_v51  ;;  %v6485_v51 = vld [vmem:[%s8841_s4 + $0x2d4] sm:$0xf] }
 0x2a8   : > { %5265 = vmatmul.msk.bf16.vlgmr.msra.gmra.mxu0 %vm1242_vm1, %v6455_v3  ;;  %v5424_v53 = vor.u32 %v6485_v51, %v5421_v52  ;;  %v5416_v3 = vor.u32 %v6483_v45, %v5413_v56  ;;  %v5388_v51 = vor.u32 %v6478_v49, %v5387_v48  ;;  %v6507_v45 = vld [vmem:[%s8841_s4 + $0x374] sm:$0xf]  ;;  %v5531_v56 = vld [vmem:[%s8841_s4 + $0x378] sm:$0xf0] }
 0x2aa   : > { %2300 = vmatpush.bf16.msrb.mxu1 %v5424_v53  ;;  %v5379_v53 = vld [vmem:[%s8841_s4 + $0x280] sm:$0xf] }
 0x2ab   : > { %v5380_v1 = vor.u32 %v6476_v63, %v5379_v53 }
 0x2ae   : > { %2301 = vmatpush.bf16.msrb.mxu1 %v5416_v3  ;;  %v5534_v3 = vor.u32 %v6507_v45, %v5531_v56  ;;  %v5451_v56 = vld [vmem:[%s8840_s3 + $0x68] sm:$0xf] }
 0x2b2   : > { %2302 = vmatpush.bf16.msrb.mxu1 %v5408_v46 }
 0x2b6   : > { %2303 = vmatpush.bf16.msrb.mxu1 %v5400_v19  ;;  %v6499_v19 = vld [vmem:[%s8841_s4 + $0x334] sm:$0xf] }
 0x2b7   : > { %1941 = vmatmul.bf16.gmra.mxu3 %v1811_v2  ;;  %v7853_v2 = vpop.f32.mrf.mxu0 }
 0x2b8   : > { %5266 = vmatmul.msk.bf16.gmra.mxu0 %vm1242_vm1, %v5264_v13  ;;  %v5428_v13 = vor.u32 %v6488_v12, %v5427_v4 }
 0x2ba   : > { %2280 = vmatpush.bf16.msrb.mxu0 %v5428_v13 }
 0x2be   : > { %2281 = vmatpush.bf16.msrb.mxu0 %v5420_v18 }
 0x2c7   : > { %5359 = vmatmul.msk.bf16.vlgmr.msra.gmra.mxu3 %vm1242_vm1, %v6473_v6 }
 0x2d7   : > { %5360 = vmatmul.msk.bf16.gmra.mxu3 %vm1242_vm1, %v5358_v33  ;;  %v5412_v33 = vor.u32 %v6484_v29, %v5411_v43  ;;  %v5510_v43 = vor.u32 %v6501_v54, %v5507_v15  ;;  %v5499_v29 = vld [vmem:[%s8841_s4 + $0x338] sm:$0xf0]  ;;  %v5505_v15 = vld [vmem:[%s8841_s4 + $0x340] sm:$0xf] }
 0x2d9   : > { %2282 = vmatpush.bf16.msrb.mxu0 %v5412_v33  ;;  %v5502_v33 = vor.u32 %v6499_v19, %v5499_v29  ;;  %v5497_v29 = vld [vmem:[%s8841_s4 + $0x330] sm:$0xf] }
 0x2dd   : > { %2283 = vmatpush.bf16.msrb.mxu0 %v5404_v59  ;;  %v6495_v59 = vld [vmem:[%s8841_s4 + $0x314] sm:$0xf] }
 0x2de   : > { %v5486_v62 = vor.u32 %v6495_v59, %v5483_v30  ;;  %v5481_v30 = vld [vmem:[%s8841_s4 + $0x310] sm:$0xf] }
 0x305   : > { %v1752_v36 = vpop.f32.mrf.mxu0  ;;  %v1918_v6 = vpop.f32.mrf.mxu2 }
 0x306   : > { %v7891_v11 = vadd.f32 %v1752_v36, %v7717_v7  ;;  %v5392_v7 = vor.u32 %v6477_v21, %v5389_v44  ;;  %v6497_v44 = vld [vmem:[%s8841_s4 + $0x324] sm:$0xf] }
 0x308   : > { %2304 = vmatpush.bf16.msrb.mxu1 %v5392_v7 }
 0x30a   : > { %v1733_v50 = vpop.f32.mrf.mxu3 }
 0x30b   : > { %v1762_v22 = vadd.f32 %v1733_v50, %v7707_v55  ;;  %v5395_v55 = vld [vmem:[%s8841_s4 + $0x2a0] sm:$0xf]  ;;  %v5491_v50 = vld [vmem:[%s8841_s4 + $0x328] sm:$0xf0] }
 0x30c   : > { %v5396_v38 = vor.u32 %v6480_v37, %v5395_v55  ;;  %2305 = vmatpush.bf16.msrb.mxu1 %v5384_v8  ;;  %v5494_v58 = vor.u32 %v6497_v44, %v5491_v50  ;;  %v5475_v55 = vld [vmem:[%s8841_s4 + $0x308] sm:$0xf0] }
 0x30d   : > { %v7909_v27 = vpop.f32.mrf.mxu0  ;;  %v7911_v10 = vadd.f32 %v1918_v6, %v1762_v22  ;;  %v7925_v39 = vpop.f32.mrf.mxu2 }
 0x30e   : > { %2284 = vmatpush.bf16.msrb.mxu0 %v5396_v38 }
 0x312   : > { %v7927_v47 = vpop.f32.mrf.mxu3  ;;  %2285 = vmatpush.bf16.msrb.mxu0 %v5388_v51 }
 0x315   : > { %v1757_v52 = vpop.f32.mrf.mxu0  ;;  %v1923_v12 = vpop.f32.mrf.mxu2 }
 0x316   : > { %v1767_v0 = vadd.f32 %v1757_v52, %v7741_v41  ;;  %2286 = vmatpush.bf16.msrb.mxu0 %v5380_v1  ;;  %v6505_v41 = vld [vmem:[%s8841_s4 + $0x364] sm:$0xf] }
 0x317   : > { %v5526_v17 = vor.u32 %v6505_v41, %v5523_v16  ;;  %v5521_v16 = vld [vmem:[%s8841_s4 + $0x360] sm:$0xf] }
 0x31a   : > { %v1738_v4 = vpop.f32.mrf.mxu3  ;;  %2483 = vmatpush.bf16.msra.mxu0 %v5534_v3  ;;  %v6492_v3 = vld [vmem:[%s8840_s3 + $0x68] sm:$0x10] }
 0x31b   : > { %v1766_v13 = vadd.f32 %v1738_v4, %v7737_v60  ;;  %v5515_v60 = vld [vmem:[%s8841_s4 + $0x358] sm:$0xf0] }
 0x31c   : > { %v5518_v18 = vor.u32 %v6503_v5, %v5515_v60  ;;  %v5513_v60 = vld [vmem:[%s8841_s4 + $0x350] sm:$0xf] }
 0x31d   : > { %v7955_v46 = vpop.f32.mrf.mxu0  ;;  %v7957_v57 = vadd.f32 %v1923_v12, %v1766_v13  ;;  %v5452_v12 = vor.u32 %v6492_v3, %v5451_v56  ;;  %v8066_v19 = vpop.f32.mrf.mxu2  ;;  %v5625_v56 = vld [vmem:[%s8841_s4 + $0x3f8] sm:$0xf0] }
 0x31e   : > { %2484 = vmatpush.bf16.msra.mxu0 %v5526_v17  ;;  %v6506_v17 = vld [vmem:[%s8841_s4 + $0x364] sm:$0xf0] }
 0x31f   : > { %v5522_v5 = vor.u32 %v6506_v17, %v5521_v16  ;;  %v5609_v16 = vld [vmem:[%s8841_s4 + $0x3d8] sm:$0xf0] }
 0x322   : > { %v7965_v36 = vpop.f32.mrf.mxu3  ;;  %2485 = vmatpush.bf16.msra.mxu0 %v5518_v18  ;;  %v6504_v18 = vld [vmem:[%s8841_s4 + $0x354] sm:$0xf0] }
 0x323   : > { %v5514_v54 = vor.u32 %v6504_v18, %v5513_v60  ;;  %v6520_v60 = vld [vmem:[%s8841_s4 + $0x3c4] sm:$0xf0] }
 0x325   : > { %v1985_v6 = vpop.f32.mrf.mxu0 }
 0x326   : > { %2486 = vmatpush.bf16.msra.mxu0 %v5510_v43  ;;  %v6502_v43 = vld [vmem:[%s8841_s4 + $0x344] sm:$0xf0] }
 0x32a   : > { %v1937_v21 = vpop.f32.mrf.mxu3  ;;  %2487 = vmatpush.bf16.msra.mxu0 %v5502_v33  ;;  %v6500_v33 = vld [vmem:[%s8841_s4 + $0x334] sm:$0xf0] }
 0x32b   : > { %v7986_v7 = vadd.f32 %v1937_v21, %v7891_v11  ;;  %v6493_v11 = vld [vmem:[%s8841_s4 + $0x304] sm:$0xf]  ;;  %v5498_v44 = vor.u32 %v6500_v33, %v5497_v29  ;;  %v5591_v29 = vld [vmem:[%s8841_s4 + $0x3b0] sm:$0xf]  ;;  %v6518_v33 = vld [vmem:[%s8841_s4 + $0x3b4] sm:$0xf0] }
 0x32c   : > { %v5478_v37 = vor.u32 %v6493_v11, %v5475_v55 }
 0x32d   : > { %v1987_v34 = vpop.f32.mrf.mxu0 }
 0x32e   : > { %v1995_v22 = vpack.c.bf16 %v1987_v34, %v1985_v6  ;;  %2488 = vmatpush.bf16.msra.mxu0 %v5494_v58  ;;  %v5506_v6 = vor.u32 %v6502_v43, %v5505_v15  ;;  %v5489_v58 = vld [vmem:[%s8841_s4 + $0x320] sm:$0xf]  ;;  %v6498_v34 = vld [vmem:[%s8841_s4 + $0x324] sm:$0xf0]  ;;  %v5601_v15 = vld [vmem:[%s8841_s4 + $0x3c8] sm:$0xf0] }
 0x330   : > { %2102 = vmatmul.bf16.vlgmr.msra.gmra.mxu1 %v1995_v22  ;;  %2121 = vmatmul.bf16.vlgmr.msra.gmra.mxu2 %v1995_v22  ;;  %v5490_v22 = vor.u32 %v6498_v34, %v5489_v58  ;;  %v5593_v58 = vld [vmem:[%s8841_s4 + $0x3b8] sm:$0xf0] }
 0x331   : > { %2532 = vmatpush.bf16.msra.mxu1 %v7230_v14 }
 0x332   : > { %v7995_v8 = vpop.f32.mrf.mxu3  ;;  %2489 = vmatpush.bf16.msra.mxu0 %v5486_v62 }
 0x335   : > { %2533 = vmatpush.bf16.msra.mxu1 %v7240_v23  ;;  %v1990_v38 = vpop.f32.mrf.mxu0 }
 0x336   : > { %2490 = vmatpush.bf16.msra.mxu0 %v5478_v37  ;;  %v5473_v37 = vld [vmem:[%s8841_s4 + $0x300] sm:$0xf] }
 0x339   : > { %2534 = vmatpush.bf16.msra.mxu1 %v7251_v25 }
 0x33a   : > { %v1942_v48 = vpop.f32.mrf.mxu3 }
 0x33b   : > { %v8005_v49 = vadd.f32 %v1942_v48, %v1767_v0  ;;  %v6491_v0 = vld [vmem:[%s8840_s3 + $0x60] sm:$0xff] }
 0x33d   : > { %2535 = vmatpush.bf16.msra.mxu1 %v7259_v9  ;;  %v1992_v51 = vpop.f32.mrf.mxu0 }
 0x33e   : > { %v1996_v52 = vpack.c.bf16 %v1992_v51, %v1990_v38  ;;  %v6494_v38 = vld [vmem:[%s8841_s4 + $0x304] sm:$0xf0] }
 0x33f   : > { %v5474_v48 = vor.u32 %v6494_v38, %v5473_v37  ;;  %v5585_v38 = vld [vmem:[%s8841_s4 + $0x3a8] sm:$0xf0] }
 0x340   : > { %2107 = vmatmul.bf16.gmra.mxu1 %v1996_v52  ;;  %2126 = vmatmul.bf16.gmra.mxu2 %v1996_v52 }
 0x341   : > { %2536 = vmatpush.bf16.msra.mxu1 %v7266_v28 }
 0x342   : > { %v8009_v53 = vpop.f32.mrf.mxu3 }
 0x345   : > { %2537 = vmatpush.bf16.msra.mxu1 %v7272_v20 }
 0x349   : > { %2538 = vmatpush.bf16.msra.mxu1 %v7284_v32 }
 0x34a   : > { %v2170_v63 = vpop.f32.mrf.mxu3 }
 0x350   : > { %5453 = vmatmul.msk.bf16.vlgmr.msrb.gmra.mxu2 %vm1242_vm1, %v6491_v0  ;;  %v6525_v0 = vld [vmem:[%s8841_s4 + $0x3f4] sm:$0xf] }
 0x351   : > { %v5628_v3 = vor.u32 %v6525_v0, %v5625_v56  ;;  %v6513_v56 = vld [vmem:[%s8841_s4 + $0x394] sm:$0xf] }
 0x352   : > { %v2172_v1 = vpop.f32.mrf.mxu3 }
 0x353   : > { %v2180_v45 = vpack.c.bf16 %v2172_v1, %v2170_v63  ;;  %v6526_v63 = vld [vmem:[%s8841_s4 + $0x3f4] sm:$0xf0] }
 0x355   : > { %2287 = vmatmul.bf16.vlgmr.msrb.gmra.mxu0 %v2180_v45  ;;  %2306 = vmatmul.bf16.vlgmr.msrb.gmra.mxu1 %v2180_v45 }
 0x356   : > { %2717 = vmatpush.bf16.msrb.mxu0 %v7230_v14 }
 0x35a   : > { %2718 = vmatpush.bf16.msrb.mxu0 %v7240_v23  ;;  %v2175_v4 = vpop.f32.mrf.mxu3  ;;  %v6509_v23 = vld [vmem:[%s8840_s3 + $0x70] sm:$0xff] }
 0x35e   : > { %2719 = vmatpush.bf16.msrb.mxu0 %v7251_v25  ;;  %v5545_v25 = vld [vmem:[%s8840_s3 + $0x78] sm:$0xf] }
 0x360   : > { %5454 = vmatmul.msk.bf16.gmra.mxu2 %vm1242_vm1, %v5452_v12  ;;  %v6524_v12 = vld [vmem:[%s8841_s4 + $0x3e4] sm:$0xf0] }
 0x362   : > { %2720 = vmatpush.bf16.msrb.mxu0 %v7259_v9  ;;  %v2177_v13 = vpop.f32.mrf.mxu3  ;;  %v6510_v9 = vld [vmem:[%s8840_s3 + $0x78] sm:$0x10] }
 0x363   : > { %v2181_v14 = vpack.c.bf16 %v2177_v13, %v2175_v4  ;;  %v5546_v41 = vor.u32 %v6510_v9, %v5545_v25  ;;  %v5615_v4 = vld [vmem:[%s8841_s4 + $0x3e0] sm:$0xf]  ;;  %v5607_v9 = vld [vmem:[%s8841_s4 + $0x3d0] sm:$0xf] }
 0x364   : > { %v5616_v13 = vor.u32 %v6524_v12, %v5615_v4 }
 0x365   : > { %2292 = vmatmul.bf16.gmra.mxu0 %v2181_v14  ;;  %2311 = vmatmul.bf16.gmra.mxu1 %v2181_v14  ;;  %v5617_v14 = vld [vmem:[%s8841_s4 + $0x3e8] sm:$0xf0] }
 0x366   : > { %2721 = vmatpush.bf16.msrb.mxu0 %v7266_v28  ;;  %v5529_v28 = vld [vmem:[%s8841_s4 + $0x370] sm:$0xf] }
 0x36a   : > { %2722 = vmatpush.bf16.msrb.mxu0 %v7272_v20  ;;  %v6508_v20 = vld [vmem:[%s8841_s4 + $0x374] sm:$0xf0] }
 0x36e   : > { %2723 = vmatpush.bf16.msrb.mxu0 %v7284_v32  ;;  %v5530_v32 = vor.u32 %v6508_v20, %v5529_v28  ;;  %v6521_v28 = vld [vmem:[%s8841_s4 + $0x3d4] sm:$0xf] }
 0x36f   : > { %v5612_v17 = vor.u32 %v6521_v28, %v5609_v16 }
 0x370   : > { %2464 = vmatpush.bf16.msrb.mxu3 %v5530_v32 }
 0x374   : > { %2465 = vmatpush.bf16.msrb.mxu3 %v5522_v5  ;;  %v5599_v5 = vld [vmem:[%s8841_s4 + $0x3c0] sm:$0xf] }
 0x375   : > { %5547 = vmatmul.msk.bf16.vlgmr.msra.gmra.mxu1 %vm1242_vm1, %v6509_v23 }
 0x378   : > { %2466 = vmatpush.bf16.msrb.mxu3 %v5514_v54  ;;  %v5600_v54 = vor.u32 %v6520_v60, %v5599_v5 }
 0x37c   : > { %2467 = vmatpush.bf16.msrb.mxu3 %v5506_v6 }
 0x380   : > { %2468 = vmatpush.bf16.msrb.mxu3 %v5498_v44  ;;  %v5592_v44 = vor.u32 %v6518_v33, %v5591_v29  ;;  %v6527_v33 = vld [vmem:[%s8840_s3 + $0x80] sm:$0xff] }
 0x384   : > { %2469 = vmatpush.bf16.msrb.mxu3 %v5490_v22  ;;  %v5583_v22 = vld [vmem:[%s8841_s4 + $0x3a0] sm:$0xf] }
 0x385   : > { %5548 = vmatmul.msk.bf16.gmra.mxu1 %vm1242_vm1, %v5546_v41  ;;  %v6522_v41 = vld [vmem:[%s8841_s4 + $0x3d4] sm:$0xf0] }
 0x386   : > { %v5608_v32 = vor.u32 %v6522_v41, %v5607_v9 }
 0x3ad   : > { %v2103_v21 = vpop.f32.mrf.mxu1 }
 0x3ae   : > { %v8075_v50 = vadd.f32 %v2103_v21, %v7911_v10  ;;  %v6496_v10 = vld [vmem:[%s8841_s4 + $0x314] sm:$0xf0]  ;;  %v6517_v21 = vld [vmem:[%s8841_s4 + $0x3b4] sm:$0xf] }
 0x3af   : > { %v5482_v11 = vor.u32 %v6496_v10, %v5481_v30  ;;  %v5596_v34 = vor.u32 %v6517_v21, %v5593_v58  ;;  %v6515_v30 = vld [vmem:[%s8841_s4 + $0x3a4] sm:$0xf] }
 0x3b1   : > { %2470 = vmatpush.bf16.msrb.mxu3 %v5482_v11 }
 0x3b3   : > { %v2122_v59 = vpop.f32.mrf.mxu2 }
 0x3b4   : > { %v8090_v62 = vadd.f32 %v2122_v59, %v7986_v7  ;;  %v5623_v7 = vld [vmem:[%s8841_s4 + $0x3f0] sm:$0xf]  ;;  %v6516_v59 = vld [vmem:[%s8841_s4 + $0x3a4] sm:$0xf0] }
 0x3b5   : > { %v8092_v55 = vpop.f32.mrf.mxu1  ;;  %2471 = vmatpush.bf16.msrb.mxu3 %v5474_v48  ;;  %v5624_v45 = vor.u32 %v6526_v63, %v5623_v7  ;;  %v5584_v37 = vor.u32 %v6516_v59, %v5583_v22  ;;  %v5575_v48 = vld [vmem:[%s8841_s4 + $0x390] sm:$0xf] }
 0x3b6   : > { %v5717_v59 = vld [vmem:[%s8841_s4 + $0x470] sm:$0xf] }
 0x3b7   : > { %2649 = vmatpush.bf16.msra.mxu2 %v5624_v45  ;;  %v5588_v45 = vor.u32 %v6515_v30, %v5585_v38  ;;  %v6544_v30 = vld [vmem:[%s8841_s4 + $0x474] sm:$0xf0] }
 0x3b9   : > { %2668 = vmatpush.bf16.msra.mxu3 %v5628_v3  ;;  %v5577_v3 = vld [vmem:[%s8841_s4 + $0x398] sm:$0xf0] }
 0x3ba   : > { %v5580_v12 = vor.u32 %v6513_v56, %v5577_v3  ;;  %v5711_v56 = vld [vmem:[%s8841_s4 + $0x468] sm:$0xf0] }
 0x3bb   : > { %v8100_v51 = vpop.f32.mrf.mxu2  ;;  %2650 = vmatpush.bf16.msra.mxu2 %v5616_v13 }
 0x3bd   : > { %v2108_v52 = vpop.f32.mrf.mxu1 }
 0x3be   : > { %v8112_v1 = vadd.f32 %v2108_v52, %v7957_v57  ;;  %v6523_v57 = vld [vmem:[%s8841_s4 + $0x3e4] sm:$0xf]  ;;  %v6514_v52 = vld [vmem:[%s8841_s4 + $0x394] sm:$0xf0] }
 0x3bf   : > { %v5620_v25 = vor.u32 %v6523_v57, %v5617_v14  ;;  %2651 = vmatpush.bf16.msra.mxu2 %v5608_v32  ;;  %v5576_v4 = vor.u32 %v6514_v52, %v5575_v48  ;;  %v6511_v57 = vld [vmem:[%s8841_s4 + $0x384] sm:$0xf]  ;;  %v5709_v48 = vld [vmem:[%s8841_s4 + $0x460] sm:$0xf]  ;;  %v6542_v52 = vld [vmem:[%s8841_s4 + $0x464] sm:$0xf0] }
 0x3c1   : > { %2669 = vmatpush.bf16.msra.mxu3 %v5620_v25  ;;  %v5569_v25 = vld [vmem:[%s8841_s4 + $0x388] sm:$0xf0] }
 0x3c2   : > { %v5572_v41 = vor.u32 %v6511_v57, %v5569_v25  ;;  %v5703_v57 = vld [vmem:[%s8841_s4 + $0x458] sm:$0xf0]  ;;  %v5693_v25 = vld [vmem:[%s8841_s4 + $0x440] sm:$0xf] }
 0x3c3   : > { %v2127_v23 = vpop.f32.mrf.mxu2  ;;  %2652 = vmatpush.bf16.msra.mxu2 %v5600_v54 }
 0x3c4   : > { %v8139_v20 = vadd.f32 %v2127_v23, %v8005_v49  ;;  %v6519_v49 = vld [vmem:[%s8841_s4 + $0x3c4] sm:$0xf] }
 0x3c5   : > { %2670 = vmatpush.bf16.msra.mxu3 %v5612_v17  ;;  %v8153_v18 = vpop.f32.mrf.mxu1  ;;  %v5604_v6 = vor.u32 %v6519_v49, %v5601_v15 }
 0x3c7   : > { %2653 = vmatpush.bf16.msra.mxu2 %v5592_v44  ;;  %v6528_v44 = vld [vmem:[%s8840_s3 + $0x88] sm:$0x10] }
 0x3c9   : > { %2671 = vmatpush.bf16.msra.mxu3 %v5604_v6 }
 0x3cb   : > { %v8158_v43 = vpop.f32.mrf.mxu2  ;;  %2654 = vmatpush.bf16.msra.mxu2 %v5584_v37  ;;  %v5719_v37 = vld [vmem:[%s8841_s4 + $0x478] sm:$0xf0] }
 0x3cd   : > { %2672 = vmatpush.bf16.msra.mxu3 %v5596_v34 }
 0x3cf   : > { %2655 = vmatpush.bf16.msra.mxu2 %v5576_v4  ;;  %v5701_v4 = vld [vmem:[%s8841_s4 + $0x450] sm:$0xf] }
 0x3d1   : > { %2673 = vmatpush.bf16.msra.mxu3 %v5588_v45  ;;  %v5710_v45 = vor.u32 %v6542_v52, %v5709_v48  ;;  %v5671_v48 = vld [vmem:[%s8841_s4 + $0x418] sm:$0xf0] }
 0x3d2   : > { %v2288_v10 = vpop.f32.mrf.mxu0  ;;  %v2307_v11 = vpop.f32.mrf.mxu1 }
 0x3d3   : > { %v8191_v7 = vadd.f32 %v2288_v10, %v8075_v50  ;;  %v8194_v63 = vadd.f32 %v2307_v11, %v8090_v62  ;;  %v2355_v0 = vpop.f32.mrf.mxu2  ;;  %v5567_v50 = vld [vmem:[%s8841_s4 + $0x380] sm:$0xf]  ;;  %v6512_v62 = vld [vmem:[%s8841_s4 + $0x384] sm:$0xf0]  ;;  %v6543_v10 = vld [vmem:[%s8841_s4 + $0x474] sm:$0xf]  ;;  %v5718_v11 = vor.u32 %v6544_v30, %v5717_v59 }
 0x3d4   : > { %v5568_v23 = vor.u32 %v6512_v62, %v5567_v50  ;;  %v5722_v38 = vor.u32 %v6543_v10, %v5719_v37  ;;  %v6539_v50 = vld [vmem:[%s8841_s4 + $0x454] sm:$0xf]  ;;  %v5669_v30 = vld [vmem:[%s8841_s4 + $0x410] sm:$0xf]  ;;  %v6532_v10 = vld [vmem:[%s8841_s4 + $0x414] sm:$0xf0] }
 0x3d5   : > { %2674 = vmatpush.bf16.msra.mxu3 %v5580_v12  ;;  %2834 = vmatpush.bf16.msrb.mxu1 %v5718_v11  ;;  %v6540_v12 = vld [vmem:[%s8841_s4 + $0x454] sm:$0xf0]  ;;  %v6531_v11 = vld [vmem:[%s8841_s4 + $0x414] sm:$0xf] }
 0x3d6   : > { %2656 = vmatpush.bf16.msra.mxu2 %v5568_v23  ;;  %v5702_v62 = vor.u32 %v6540_v12, %v5701_v4  ;;  %v5706_v23 = vor.u32 %v6539_v50, %v5703_v57  ;;  %v5674_v52 = vor.u32 %v6531_v11, %v5671_v48  ;;  %v6555_v11 = vld [vmem:[%s8843_s6 + $0x50] sm:$0xff]  ;;  %v6554_v48 = vld [vmem:[%s8843_s6 + $0x48] sm:$0xff] }
 0x3d9   : > { %2675 = vmatpush.bf16.msra.mxu3 %v5572_v41  ;;  %2835 = vmatpush.bf16.msrb.mxu1 %v5710_v45  ;;  %v6537_v41 = vld [vmem:[%s8841_s4 + $0x444] sm:$0xf]  ;;  %v6530_v45 = vld [vmem:[%s8841_s4 + $0x404] sm:$0xf0] }
 0x3da   : > { %v8211_v13 = vpop.f32.mrf.mxu0  ;;  %v8213_v14 = vpop.f32.mrf.mxu1  ;;  %2853 = vmatpush.bf16.msrb.mxu2 %v5722_v38  ;;  %v5670_v38 = vor.u32 %v6532_v10, %v5669_v30  ;;  %v6546_v30 = vld [vmem:[%s8843_s6 + $0x8] sm:$0xff] }
 0x3db   : > { %v2357_v9 = vpop.f32.mrf.mxu2 }
 0x3dc   : > { %v2365_v28 = vpack.c.bf16 %v2357_v9, %v2355_v0  ;;  %v6541_v0 = vld [vmem:[%s8841_s4 + $0x464] sm:$0xf]  ;;  %v6538_v9 = vld [vmem:[%s8841_s4 + $0x444] sm:$0xf0] }
 0x3dd   : > { %v5714_v3 = vor.u32 %v6541_v0, %v5711_v56  ;;  %2836 = vmatpush.bf16.msrb.mxu1 %v5702_v62  ;;  %v5661_v0 = vld [vmem:[%s8841_s4 + $0x400] sm:$0xf] }
 0x3de   : > { %2472 = vmatmul.bf16.vlgmr.msrb.gmra.mxu3 %v2365_v28  ;;  %2491 = vmatmul.bf16.vlgmr.msra.gmra.mxu0 %v2365_v28  ;;  %v5694_v28 = vor.u32 %v6538_v9, %v5693_v25  ;;  %v5662_v56 = vor.u32 %v6530_v45, %v5661_v0  ;;  %v6560_v25 = vld [vmem:[%s8843_s6 + $0x78] sm:$0xff]  ;;  %v6553_v0 = vld [vmem:[%s8843_s6 + $0x40] sm:$0xff] }
 0x3df   : > { %2854 = vmatpush.bf16.msrb.mxu2 %v5714_v3  ;;  %v5663_v3 = vld [vmem:[%s8841_s4 + $0x408] sm:$0xf0]  ;;  %3057 = vmatpush.bf16.msra.mxu0 %v6560_v25 }
 0x3e1   : > { %2837 = vmatpush.bf16.msrb.mxu1 %v5694_v28  ;;  %v6550_v28 = vld [vmem:[%s8843_s6 + $0x28] sm:$0xff] }
 0x3e2   : > { %v2293_v32 = vpop.f32.mrf.mxu0  ;;  %v2312_v16 = vpop.f32.mrf.mxu1 }
 0x3e3   : > { %v8219_v17 = vadd.f32 %v2293_v32, %v8112_v1  ;;  %v8222_v5 = vadd.f32 %v2312_v16, %v8139_v20  ;;  %v2360_v60 = vpop.f32.mrf.mxu2  ;;  %v5639_v20 = vld [vmem:[%s8840_s3 + $0x88] sm:$0xf]  ;;  %2855 = vmatpush.bf16.msrb.mxu2 %v5706_v23  ;;  %v5695_v32 = vld [vmem:[%s8841_s4 + $0x448] sm:$0xf0]  ;;  %v6552_v23 = vld [vmem:[%s8843_s6 + $0x38] sm:$0xff] }
 0x3e4   : > { %v5640_v34 = vor.u32 %v6528_v44, %v5639_v20  ;;  %v6534_v20 = vld [vmem:[%s8841_s4 + $0x424] sm:$0xf0]  ;;  %v6533_v44 = vld [vmem:[%s8841_s4 + $0x424] sm:$0xf]  ;;  %3038 = vmatpush.bf16.msrb.mxu3 %v6552_v23 }
 0x3ea   : > { %v8224_v49 = vpop.f32.mrf.mxu1  ;;  %v8285_v16 = vpop.f32.mrf.mxu0 }
 0x3eb   : > { %v2362_v54 = vpop.f32.mrf.mxu2 }
 0x3ec   : > { %v2366_v15 = vpack.c.bf16 %v2362_v54, %v2360_v60  ;;  %v5698_v60 = vor.u32 %v6537_v41, %v5695_v32  ;;  %v5685_v54 = vld [vmem:[%s8841_s4 + $0x430] sm:$0xf] }
 0x3ed   : > { %v6551_v41 = vld [vmem:[%s8843_s6 + $0x30] sm:$0xff] }
 0x3ee   : > { %2477 = vmatmul.bf16.gmra.mxu3 %v2366_v15  ;;  %2496 = vmatmul.bf16.gmra.mxu0 %v2366_v15  ;;  %v6536_v15 = vld [vmem:[%s8841_s4 + $0x434] sm:$0xf0] }
 0x3ef   : > { %2856 = vmatpush.bf16.msrb.mxu2 %v5698_v60  ;;  %3039 = vmatpush.bf16.msrb.mxu3 %v6551_v41 }
 0x3f2   : > { %v2540_v6 = vpop.f32.mrf.mxu1 }
 0x3f3   : > { %3040 = vmatpush.bf16.msrb.mxu3 %v6550_v28 }
 0x3fa   : > { %v2542_v29 = vpop.f32.mrf.mxu1 }
 0x3fb   : > { %v2550_v21 = vpack.c.bf16 %v2542_v29, %v2540_v6  ;;  %v6535_v6 = vld [vmem:[%s8841_s4 + $0x434] sm:$0xf]  ;;  %v5686_v29 = vor.u32 %v6536_v15, %v5685_v54  ;;  %v6549_v54 = vld [vmem:[%s8843_s6 + $0x20] sm:$0xff] }
 0x3fc   : > { %3041 = vmatpush.bf16.msrb.mxu3 %v6549_v54 }
 0x3fd   : > { %2657 = vmatmul.bf16.vlgmr.msra.gmra.mxu2 %v2550_v21  ;;  %2838 = vmatpush.bf16.msrb.mxu1 %v5686_v29 }
 0x3fe   : > { %2676 = vmatmul.bf16.vlgmr.msra.gmra.mxu3 %v2550_v21  ;;  %5641 = vmatmul.msk.bf16.vlgmr.msrb.gmra.mxu0 %vm1242_vm1, %v6527_v33  ;;  %v5687_v33 = vld [vmem:[%s8841_s4 + $0x438] sm:$0xf0] }
 0x3ff   : > { %v5690_v21 = vor.u32 %v6535_v6, %v5687_v33 }
 0x401   : > { %2857 = vmatpush.bf16.msrb.mxu2 %v5690_v21 }
 0x402   : > { %v2545_v1 = vpop.f32.mrf.mxu1 }
 0x40a   : > { %v2547_v58 = vpop.f32.mrf.mxu1 }
 0x40b   : > { %v2551_v22 = vpack.c.bf16 %v2547_v58, %v2545_v1  ;;  %v5677_v1 = vld [vmem:[%s8841_s4 + $0x420] sm:$0xf] }
 0x40c   : > { %v5678_v58 = vor.u32 %v6534_v20, %v5677_v1  ;;  %v6558_v1 = vld [vmem:[%s8843_s6 + $0x68] sm:$0xff] }
 0x40d   : > { %2662 = vmatmul.bf16.gmra.mxu2 %v2551_v22 }
 0x40e   : > { %2681 = vmatmul.bf16.gmra.mxu3 %v2551_v22  ;;  %5642 = vmatmul.msk.bf16.gmra.mxu0 %vm1242_vm1, %v5640_v34  ;;  %v5679_v34 = vld [vmem:[%s8841_s4 + $0x428] sm:$0xf0] }
 0x40f   : > { %v5682_v59 = vor.u32 %v6533_v44, %v5679_v34  ;;  %2839 = vmatpush.bf16.msrb.mxu1 %v5678_v58  ;;  %v6548_v44 = vld [vmem:[%s8843_s6 + $0x18] sm:$0xff]  ;;  %v6557_v58 = vld [vmem:[%s8843_s6 + $0x60] sm:$0xff]  ;;  %v6547_v34 = vld [vmem:[%s8843_s6 + $0x10] sm:$0xff] }
 0x410   : > { %3042 = vmatpush.bf16.msrb.mxu3 %v6548_v44 }
 0x411   : > { %2858 = vmatpush.bf16.msrb.mxu2 %v5682_v59 }
 0x413   : > { %2840 = vmatpush.bf16.msrb.mxu1 %v5670_v38  ;;  %v6545_v38 = vld [vmem:[%s8843_s6] sm:$0xff] }
 0x414   : > { %3043 = vmatpush.bf16.msrb.mxu3 %v6547_v34 }
 0x415   : > { %2859 = vmatpush.bf16.msrb.mxu2 %v5674_v52 }
 0x417   : > { %2841 = vmatpush.bf16.msrb.mxu1 %v5662_v56 }
 0x418   : > { %3044 = vmatpush.bf16.msrb.mxu3 %v6546_v30 }
 0x41c   : > { %3045 = vmatpush.bf16.msrb.mxu3 %v6545_v38 }
 0x45b   : > { %v2492_v22 = vpop.f32.mrf.mxu0 }
 0x45c   : > { %v8321_v37 = vadd.f32 %v2492_v22, %v8194_v63  ;;  %v6529_v63 = vld [vmem:[%s8841_s4 + $0x404] sm:$0xf]  ;;  %v6556_v22 = vld [vmem:[%s8843_s6 + $0x58] sm:$0xff] }
 0x45d   : > { %v5666_v12 = vor.u32 %v6529_v63, %v5663_v3  ;;  %v1559_v63 = vadd.f32 %v7719_v26, %v7727_v61 }
 0x45f   : > { %2860 = vmatpush.bf16.msrb.mxu2 %v5666_v12  ;;  %v1764_v56 = vadd.f32 %v7927_v47, %v1559_v63  ;;  %v2880_v12 = vld [vmem:[%s8842_s5] sm:$0x3] }
 0x460   : > { %v8403_v41 = vperm.slane %v2880_v12, 0 }
 0x461   : > { %v2473_v33 = vpop.f32.mrf.mxu3  ;;  %v1949_v25 = vadd.f32 %v7925_v39, %v1764_v56 }
 0x463   : > { %v8338_v4 = vpop.f32.mrf.mxu0  ;;  %v2134_v26 = vadd.f32 %v8092_v55, %v1949_v25  ;;  %v8419_v55 = vperm.slane %v2880_v12, 1 }
 0x469   : > { %v2475_v21 = vpop.f32.mrf.mxu3 }
 0x46b   : > { %v2497_v50 = vpop.f32.mrf.mxu0 }
 0x46c   : > { %v8341_v62 = vadd.f32 %v2497_v50, %v8222_v5  ;;  %v6559_v5 = vld [vmem:[%s8843_s6 + $0x70] sm:$0xff]  ;;  %v2502_v50 = vadd.f32 %v2473_v33, %v8191_v7 }
 0x46d   : > { %3058 = vmatpush.bf16.msra.mxu0 %v6559_v5  ;;  %v1578_v5 = vadd.f32 %v7709_v24, %v7735_v31 }
 0x46f   : > { %v1765_v47 = vadd.f32 %v7909_v27, %v1578_v5 }
 0x471   : > { %3059 = vmatpush.bf16.msra.mxu0 %v6558_v1  ;;  %v2478_v59 = vpop.f32.mrf.mxu3 }
 0x473   : > { %v8343_v57 = vpop.f32.mrf.mxu0 }
 0x475   : > { %3060 = vmatpush.bf16.msra.mxu0 %v6557_v58  ;;  %v2506_v58 = vadd.f32 %v2478_v59, %v8219_v17 }
 0x479   : > { %3061 = vmatpush.bf16.msra.mxu0 %v6556_v22  ;;  %v8390_v52 = vpop.f32.mrf.mxu3 }
 0x47b   : > { %v2725_v9 = vpop.f32.mrf.mxu0 }
 0x47d   : > { %3062 = vmatpush.bf16.msra.mxu0 %v6555_v11 }
 0x480   : > { %v2658_v20 = vpop.f32.mrf.mxu2 }
 0x481   : > { %3063 = vmatpush.bf16.msra.mxu0 %v6554_v48  ;;  %v2677_v3 = vpop.f32.mrf.mxu3 }
 0x482   : > { %v2688_v31 = vadd.f32 %v2677_v3, %v8321_v37 }
 0x483   : > { %v2727_v32 = vpop.f32.mrf.mxu0 }
 0x484   : > { %v2735_v60 = vpack.c.bf16 %v2727_v32, %v2725_v9  ;;  %v2687_v9 = vadd.f32 %v2658_v20, %v2502_v50  ;;  %v2319_v32 = vadd.f32 %v8211_v13, %v2134_v26 }
 0x485   : > { %3064 = vmatpush.bf16.msra.mxu0 %v6553_v0 }
 0x486   : > { %2842 = vmatmul.bf16.vlgmr.msrb.gmra.mxu1 %v2735_v60  ;;  %2861 = vmatmul.bf16.vlgmr.msrb.gmra.mxu2 %v2735_v60  ;;  %v1950_v60 = vadd.f32 %v7995_v8, %v1765_v47  ;;  %v2504_v24 = vadd.f32 %v2475_v21, %v2319_v32 }
 0x488   : > { %v2660_v10 = vpop.f32.mrf.mxu2  ;;  %v2135_v13 = vadd.f32 %v8100_v51, %v1950_v60 }
 0x489   : > { %v2679_v54 = vpop.f32.mrf.mxu3 }
 0x48a   : > { %v2320_v33 = vadd.f32 %v8213_v14, %v2135_v13 }
 0x48b   : > { %v2730_v15 = vpop.f32.mrf.mxu0 }
 0x48c   : > { %v2505_v20 = vadd.f32 %v8338_v4, %v2320_v33 }
 0x48e   : > { %v2690_v34 = vadd.f32 %v2679_v54, %v2505_v20  ;;  %v6705_v54 = vld [vmem:[%s8844_s7] ss:$0 sm:$0xff] }
 0x490   : > { %v2663_v45 = vpop.f32.mrf.mxu2 }
 0x491   : > { %v2682_v4 = vpop.f32.mrf.mxu3 }
 0x493   : > { %v2732_v6 = vpop.f32.mrf.mxu0 }
 0x494   : > { %v2736_v29 = vpack.c.bf16 %v2732_v6, %v2730_v15  ;;  %v2689_v15 = vadd.f32 %v2660_v10, %v2504_v24 }
 0x496   : > { %2847 = vmatmul.bf16.gmra.mxu1 %v2736_v29  ;;  %2866 = vmatmul.bf16.gmra.mxu2 %v2736_v29  ;;  %v1564_v29 = vadd.f32 %v7853_v2, %v7743_v42  ;;  %v2691_v2 = vadd.f32 %v2663_v45, %v2506_v58 }
 0x498   : > { %v2665_v23 = vpop.f32.mrf.mxu2  ;;  %v1768_v1 = vadd.f32 %v7965_v36, %v1564_v29  ;;  %v1583_v36 = vadd.f32 %v7739_v40, %v7873_v35  ;;  %v2692_v35 = vadd.f32 %v2682_v4, %v8341_v62  ;;  %v5877_v4 = vld [vmem:[%s8845_s8 + $0x18] sm:$0xf] }
 0x499   : > { %v2684_v62 = vpop.f32.mrf.mxu3 }
 0x49a   : > { %v1953_v42 = vadd.f32 %v8066_v19, %v1768_v1  ;;  %v1769_v48 = vadd.f32 %v7955_v46, %v1583_v36  ;;  %v6561_v36 = vld [vmem:[%s8845_s8] sm:$0x10] }
 0x49c   : > { %v2138_v38 = vadd.f32 %v8153_v18, %v1953_v42  ;;  %v1954_v63 = vadd.f32 %v8009_v53, %v1769_v48 }
 0x49e   : > { %v2323_v19 = vadd.f32 %v8285_v16, %v2138_v38  ;;  %v2139_v12 = vadd.f32 %v8158_v43, %v1954_v63  ;;  %v6586_v63 = vld [vmem:[%s8845_s8 + $0x28] sm:$0x10] }
 0x4a0   : > { %v2508_v40 = vadd.f32 %v8390_v52, %v2323_v19  ;;  %v2324_v25 = vadd.f32 %v8224_v49, %v2139_v12  ;;  %v5845_v19 = vld [vmem:[%s8845_s8 + $0x10] sm:$0xf]  ;;  %v6596_v12 = vld [vmem:[%s8845_s8 + $0x38] sm:$0x10] }
 0x4a2   : > { %v2693_v50 = vadd.f32 %v2665_v23, %v2508_v40 }
 0x503   : > { %v2843_v28 = vpop.f32.mrf.mxu1 }
 0x504   : > { %v2872_v61 = vadd.f32 %v2843_v28, %v2687_v9  ;;  %v2509_v9 = vadd.f32 %v8343_v57, %v2324_v25  ;;  %v5973_v25 = vld [vmem:[%s8845_s8 + $0x30] sm:$0xf] }
 0x506   : > { %v2886_v7 = vadd.f32 %v8403_v41, %v2872_v61  ;;  %v2694_v26 = vadd.f32 %v2684_v62, %v2509_v9  ;;  %v6037_v62 = vld [vmem:[%s8845_s8 + $0x40] sm:$0xf]  ;;  %v6601_v9 = vld [vmem:[%s8845_s8 + $0x40] sm:$0x10] }
 0x508   : > { %v2894_v39 = vmax.f32 %v2886_v7, 0.0 }
 0x509   : > { %v2862_v27 = vpop.f32.mrf.mxu2 }
 0x50a   : > { %4505 = vst [vmem:[%s8416_s19] sm:$0xff] %v2894_v39  ;;  %v2873_v8 = vadd.f32 %v2862_v27, %v2688_v31 }
 0x50b   : > { %v2845_v6 = vpop.f32.mrf.mxu1 }
 0x50c   : > { %v2887_v37 = vadd.f32 %v8419_v55, %v2873_v8  ;;  %v2874_v21 = vadd.f32 %v2845_v6, %v2689_v15 }
 0x50e   : > { %v2895_v44 = vmax.f32 %v2887_v37, 0.0  ;;  %v2888_v51 = vadd.f32 %v8403_v41, %v2874_v21  ;;  %v6809_v37 = vmov 65535  }
 0x50f   : > { %v3095_v21 = vsel %vm3093_vm2, 4294967295, %v6809_v37  ;;  %v6585_v37 = vld [vmem:[%s8846_s9 + $0x98] sm:$0xff] }
 0x510   : > { %4506 = vst [vmem:[%s8416_s19 + $0x8] sm:$0xff] %v2895_v44  ;;  %v2896_v22 = vmax.f32 %v2888_v51, 0.0  ;;  %v8458_v58 = vsel %vm3094_vm3, %v3095_v21, 0 }
 0x511   : > { %v2864_v30 = vpop.f32.mrf.mxu2 }
 0x512   : > { %v2902_v14 = vpack.c.bf16 %v2896_v22, %v2894_v39  ;;  %4507 = vst [vmem:[%s8416_s19 + $0x10] sm:$0xff] %v2896_v22  ;;  %v2875_v10 = vadd.f32 %v2864_v30, %v2690_v34 }
 0x513   : > { %v2848_v11 = vpop.f32.mrf.mxu1 }
 0x514   : > { %v2889_v17 = vadd.f32 %v8419_v55, %v2875_v10  ;;  %v2876_v59 = vadd.f32 %v2848_v11, %v2691_v2  ;;  %3046 = vmatmul.bf16.vlgmr.msrb.gmra.mxu3 %v2902_v14  ;;  %v5796_v2 = vld [vmem:[%s8845_s8 + $0x8] sm:$0xf]  ;;  %v6566_v14 = vld [vmem:[%s8845_s8 + $0x8] sm:$0x10]  ;;  %v5789_v10 = vld [vmem:[%s8845_s8] sm:$0xf] }
 0x515   : > { %v6576_v11 = vld [vmem:[%s8845_s8 + $0x18] sm:$0x10] }
 0x516   : > { %v2897_v0 = vmax.f32 %v2889_v17, 0.0  ;;  %v2890_v45 = vadd.f32 %v8403_v41, %v2876_v59  ;;  %v5797_v17 = vor.u32 %v6566_v14, %v5796_v2  ;;  %v5790_v59 = vor.u32 %v6561_v36, %v5789_v10  ;;  %v6582_v2 = vld [vmem:[%s8846_s9 + $0x80] sm:$0xff]  ;;  %v6599_v14 = vld [vmem:[%s8846_s9 + $0xf0] sm:$0xff]  ;;  %v6595_v36 = vld [vmem:[%s8846_s9 + $0xd8] sm:$0xff] }
 0x517   : > { %v5878_v48 = vor.u32 %v6576_v11, %v5877_v4 }
 0x518   : > { %v2903_v56 = vpack.c.bf16 %v2897_v0, %v2895_v44  ;;  %4508 = vst [vmem:[%s8416_s19 + $0x18] sm:$0xff] %v2897_v0  ;;  %v2898_v18 = vmax.f32 %v2890_v45, 0.0  ;;  %v6571_v0 = vld [vmem:[%s8845_s8 + $0x10] sm:$0x10]  ;;  %v5941_v45 = vld [vmem:[%s8845_s8 + $0x28] sm:$0xf] }
 0x519   : > { %v2867_v3 = vpop.f32.mrf.mxu2  ;;  %v5846_v40 = vor.u32 %v6571_v0, %v5845_v19  ;;  %v6593_v19 = vld [vmem:[%s8846_s9 + $0xc8] sm:$0xff] }
 0x51a   : > { %4509 = vst [vmem:[%s8416_s19 + $0x20] sm:$0xff] %v2898_v18  ;;  %v2877_v46 = vadd.f32 %v2867_v3, %v2692_v35  ;;  %3065 = vmatmul.bf16.vlgmr.msra.gmra.mxu0 %v2903_v56  ;;  %v5942_v35 = vor.u32 %v6586_v63, %v5941_v45  ;;  %v5909_v56 = vld [vmem:[%s8845_s8 + $0x20] sm:$0xf]  ;;  %v6005_v3 = vld [vmem:[%s8845_s8 + $0x38] sm:$0xf] }
 0x51b   : > { %v2850_v16 = vpop.f32.mrf.mxu1  ;;  %v6592_v45 = vld [vmem:[%s8846_s9 + $0xc0] sm:$0xff] }
 0x51c   : > { %v2891_v53 = vadd.f32 %v8419_v55, %v2877_v46  ;;  %v2878_v52 = vadd.f32 %v2850_v16, %v2693_v50  ;;  %v6006_v46 = vor.u32 %v6596_v12, %v6005_v3  ;;  %v6570_v16 = vld [vmem:[%s8846_s9 + $0x38] sm:$0xff] }
 0x51d   : > { %3190 = vmatpush.bf16.msra.mxu3 %v6570_v16  ;;  %v6602_v16 = vld [vmem:[%s8846_s9 + $0x100] sm:$0xff] }
 0x51e   : > { %v2899_v5 = vmax.f32 %v2891_v53, 0.0  ;;  %v2892_v28 = vadd.f32 %v8403_v41, %v2878_v52  ;;  %v6591_v53 = vld [vmem:[%s8845_s8 + $0x30] sm:$0x10] }
 0x51f   : > { %v5974_v52 = vor.u32 %v6591_v53, %v5973_v25 }
 0x520   : > { %4510 = vst [vmem:[%s8416_s19 + $0x28] sm:$0xff] %v2899_v5  ;;  %v2900_v43 = vmax.f32 %v2892_v28, 0.0  ;;  %v6569_v28 = vld [vmem:[%s8846_s9 + $0x30] sm:$0xff] }
 0x521   : > { %v2869_v23 = vpop.f32.mrf.mxu2  ;;  %3191 = vmatpush.bf16.msra.mxu3 %v6569_v28 }
 0x522   : > { %4511 = vst [vmem:[%s8416_s19 + $0x30] sm:$0x1] %v2900_v43  ;;  %v2879_v61 = vadd.f32 %v2869_v23, %v2694_v26  ;;  %v2904_v47 = vpack.c.bf16 %v2900_v43, %v2898_v18  ;;  %v6581_v18 = vld [vmem:[%s8845_s8 + $0x20] sm:$0x10]  ;;  %v6565_v26 = vld [vmem:[%s8846_s9 + $0x18] sm:$0xff]  ;;  %v6568_v43 = vld [vmem:[%s8846_s9 + $0x28] sm:$0xff] }
 0x523   : > { %v5910_v50 = vor.u32 %v6581_v18, %v5909_v56  ;;  %v6564_v23 = vld [vmem:[%s8846_s9 + $0x10] sm:$0xff] }
 0x524   : > { %v2893_v32 = vadd.f32 %v8419_v55, %v2879_v61  ;;  %3051 = vmatmul.bf16.gmra.mxu3 %v2904_v47  ;;  %v6567_v61 = vld [vmem:[%s8846_s9 + $0x20] sm:$0xff]  ;;  %v6563_v47 = vld [vmem:[%s8846_s9 + $0x8] sm:$0xff]  ;;  %v6604_v18 = vld [vmem:[%s8846_s9 + $0x110] sm:$0xff] }
 0x525   : > { %3192 = vmatpush.bf16.msra.mxu3 %v6568_v43 }
 0x526   : > { %v2901_v49 = vmax.f32 %v2893_v32, 0.0  ;;  %v6575_v32 = vld [vmem:[%s8846_s9 + $0x58] sm:$0xff] }
 0x528   : > { %4512 = vst [vmem:[%s8416_s19 + $0x38] sm:$0x1] %v2901_v49  ;;  %v2905_v7 = vpack.c.bf16 %v2901_v49, %v2899_v5  ;;  %v6038_v5 = vor.u32 %v6601_v9, %v6037_v62  ;;  %v6562_v49 = vld [vmem:[%s8846_s9] sm:$0xff] }
 0x529   : > { %3193 = vmatpush.bf16.msra.mxu3 %v6567_v61  ;;  %v6613_v61 = vld [vmem:[%s8848_s11 + $0x38] sm:$0xff] }
 0x52a   : > { %3070 = vmatmul.bf16.gmra.mxu0 %v2905_v7  ;;  %v6574_v7 = vld [vmem:[%s8846_s9 + $0x50] sm:$0xff] }
 0x52d   : > { %3307 = vmatpush.bf16.msrb.mxu3 %v6575_v32 }
 0x531   : > { %3308 = vmatpush.bf16.msrb.mxu3 %v6574_v7  ;;  %v6611_v7 = vld [vmem:[%s8848_s11 + $0x28] sm:$0xff] }
 0x597   : > { %v3047_v60 = vpop.f32.mrf.mxu3  ;;  %v3066_v24 = vpop.f32.mrf.mxu0 }
 0x598   : > { %v3048_v6 = vadd.f32 %v6705_v54, %v3047_v60  ;;  %v6580_v60 = vld [vmem:[%s8846_s9 + $0x78] sm:$0xff] }
 0x59a   : > { %v3067_v51 = vadd.f32 %v3066_v24, %v3048_v6  ;;  %v6573_v24 = vld [vmem:[%s8846_s9 + $0x48] sm:$0xff] }
 0x59b   : > { %3309 = vmatpush.bf16.msrb.mxu3 %v6573_v24 }
 0x59c   : > { %v3076_v42 = vmax.f32 %v3067_v51, 0.0 }
 0x59f   : > { %v3049_v57 = vpop.f32.mrf.mxu3  ;;  %v3068_v31 = vpop.f32.mrf.mxu0 }
 0x5a0   : > { %v3050_v15 = vadd.f32 %v6705_v54, %v3049_v57  ;;  %v6579_v57 = vld [vmem:[%s8846_s9 + $0x70] sm:$0xff] }
 0x5a2   : > { %v3069_v1 = vadd.f32 %v3068_v31, %v3050_v15  ;;  %v6572_v31 = vld [vmem:[%s8846_s9 + $0x40] sm:$0xff] }
 0x5a3   : > { %3310 = vmatpush.bf16.msrb.mxu3 %v6572_v31  ;;  %v6609_v31 = vld [vmem:[%s8848_s11 + $0x18] sm:$0xff] }
 0x5a4   : > { %v3077_v22 = vmax.f32 %v3069_v1, 0.0  ;;  %v6588_v1 = vld [vmem:[%s8846_s9 + $0xa8] sm:$0xff] }
 0x5a6   : > { %v3080_v38 = vpack.c.bf16 %v3077_v22, %v3076_v42  ;;  %v6600_v42 = vld [vmem:[%s8846_s9 + $0xf8] sm:$0xff] }
 0x5a7   : > { %v3052_v39 = vpop.f32.mrf.mxu3  ;;  %v3071_v41 = vpop.f32.mrf.mxu0 }
 0x5a8   : > { %v3053_v27 = vadd.f32 %v6705_v54, %v3052_v39  ;;  %v6578_v39 = vld [vmem:[%s8846_s9 + $0x68] sm:$0xff] }
 0x5aa   : > { %v3072_v55 = vadd.f32 %v3071_v41, %v3053_v27 }
 0x5ac   : > { %v3078_v20 = vmax.f32 %v3072_v55, 0.0  ;;  %v6590_v55 = vld [vmem:[%s8846_s9 + $0xb8] sm:$0xff] }
 0x5af   : > { %v3054_v13 = vpop.f32.mrf.mxu3  ;;  %v3073_v29 = vpop.f32.mrf.mxu0 }
 0x5b0   : > { %v3055_v8 = vadd.f32 %v6705_v54, %v3054_v13  ;;  %v6577_v54 = vld [vmem:[%s8846_s9 + $0x60] sm:$0xff] }
 0x5b2   : > { %v3074_v33 = vadd.f32 %v3073_v29, %v3055_v8  ;;  %v6589_v29 = vld [vmem:[%s8846_s9 + $0xb0] sm:$0xff] }
 0x5b4   : > { %v3079_v44 = vmax.f32 %v3074_v33, 0.0 }
 0x5b6   : > { %v3081_v34 = vpack.c.bf16 %v3079_v44, %v3078_v20  ;;  %v6584_v20 = vld [vmem:[%s8846_s9 + $0x90] sm:$0xff]  ;;  %v6587_v44 = vld [vmem:[%s8846_s9 + $0xa0] sm:$0xff] }
 0x5b8   : > { %v3098_v30 = vand.u32 %v8458_v58, %v3081_v34  ;;  %v6583_v34 = vld [vmem:[%s8846_s9 + $0x88] sm:$0xff] }
 0x5ba   : > { %3106 = vmatpush.bf16.msra.mxu1 %v3098_v30  ;;  %3140 = vmatpush.bf16.msra.mxu2 %v3098_v30 }
 0x5bb   : > { %3336 = vmatpush.bf16.msrb.mxu0 %v3098_v30 }
 0x5be   : > { %3107 = vmatpush.bf16.msra.mxu1 %v3080_v38  ;;  %3141 = vmatpush.bf16.msra.mxu2 %v3080_v38 }
 0x5bf   : > { %3337 = vmatpush.bf16.msrb.mxu0 %v3080_v38 }
 0x5c1   : > { %5798 = vmatmul.msk.bf16.vlgmr.msra.gmra.mxu2 %vm3089_vm4, %v5797_v17  ;;  %5791 = vmatmul.msk.bf16.vlgmr.msra.gmra.mxu1 %vm3089_vm4, %v5790_v59  ;;  %v6594_v17 = vld [vmem:[%s8846_s9 + $0xd0] sm:$0xff]  ;;  %v6597_v59 = vld [vmem:[%s8846_s9 + $0xe0] sm:$0xff] }
 0x5c2   : > { %3258 = vmatpush.bf16.msrb.mxu2 %v3098_v30  ;;  %5879 = vmatmul.msk.bf16.vlgmr.msrb.gmra.mxu0 %vm3089_vm4, %v5878_v48 }
 0x5c3   : > { %3492 = vmatpush.bf16.msra.mxu0 %v3098_v30  ;;  %3231 = vmatpush.bf16.msrb.mxu1 %v6565_v26 }
 0x5c6   : > { %3259 = vmatpush.bf16.msrb.mxu2 %v3080_v38 }
 0x5c7   : > { %3493 = vmatpush.bf16.msra.mxu0 %v3080_v38  ;;  %3232 = vmatpush.bf16.msrb.mxu1 %v6564_v23 }
 0x5ca   : > { %3414 = vmatpush.bf16.msra.mxu2 %v3098_v30 }
 0x5cb   : > { %3648 = vmatpush.bf16.msrb.mxu0 %v3098_v30  ;;  %3233 = vmatpush.bf16.msrb.mxu1 %v6563_v47  ;;  %v6612_v47 = vld [vmem:[%s8848_s11 + $0x30] sm:$0xff] }
 0x5ce   : > { %3415 = vmatpush.bf16.msra.mxu2 %v3080_v38 }
 0x5cf   : > { %3649 = vmatpush.bf16.msrb.mxu0 %v3080_v38  ;;  %3234 = vmatpush.bf16.msrb.mxu1 %v6562_v49 }
 0x5d1   : > { %5847 = vmatmul.msk.bf16.vlgmr.msrb.gmra.mxu2 %vm3089_vm4, %v5846_v40 }
 0x5d2   : > { %3570 = vmatpush.bf16.msrb.mxu2 %v3098_v30  ;;  %5943 = vmatmul.msk.bf16.vlgmr.msra.gmra.mxu0 %vm3089_vm4, %v5942_v35  ;;  %v6605_v35 = vld [vmem:[%s8846_s9 + $0x118] sm:$0xff] }
 0x5d3   : > { %3385 = vmatpush.bf16.msra.mxu1 %v6580_v60  ;;  %3864 = vmatpush.bf16.msra.mxu0 %v6613_v61  ;;  %v6610_v60 = vld [vmem:[%s8848_s11 + $0x20] sm:$0xff]  ;;  %v6617_v61 = vld [vmem:[%s8851_s14 + $0x18] sm:$0xff] }
 0x5d6   : > { %3571 = vmatpush.bf16.msrb.mxu2 %v3080_v38 }
 0x5d7   : > { %3386 = vmatpush.bf16.msra.mxu1 %v6579_v57  ;;  %3865 = vmatpush.bf16.msra.mxu0 %v6612_v47  ;;  %v6616_v47 = vld [vmem:[%s8851_s14 + $0x10] sm:$0xff] }
 0x5db   : > { %3387 = vmatpush.bf16.msra.mxu1 %v6578_v39  ;;  %3866 = vmatpush.bf16.msra.mxu0 %v6611_v7  ;;  %v6608_v39 = vld [vmem:[%s8848_s11 + $0x10] sm:$0xff]  ;;  %v6625_v7 = vld [vmem:[%s8851_s14 + $0x58] sm:$0xff] }
 0x5df   : > { %3388 = vmatpush.bf16.msra.mxu1 %v6577_v54  ;;  %3867 = vmatpush.bf16.msra.mxu0 %v6610_v60  ;;  %v6614_v60 = vld [vmem:[%s8851_s14] sm:$0xff] }
 0x5e1   : > { %5911 = vmatmul.msk.bf16.vlgmr.msra.gmra.mxu2 %vm3089_vm4, %v5910_v50  ;;  %v6603_v50 = vld [vmem:[%s8846_s9 + $0x108] sm:$0xff] }
 0x5e2   : > { %3726 = vmatpush.bf16.msra.mxu2 %v3098_v30  ;;  %6007 = vmatmul.msk.bf16.vlgmr.msrb.gmra.mxu0 %vm3089_vm4, %v6006_v46 }
 0x5e3   : > { %3868 = vmatpush.bf16.msra.mxu0 %v6609_v31  ;;  %v6629_v31 = vld [vmem:[%s8851_s14 + $0x78] sm:$0xff] }
 0x5e6   : > { %3727 = vmatpush.bf16.msra.mxu2 %v3080_v38  ;;  %v6598_v38 = vld [vmem:[%s8846_s9 + $0xe8] sm:$0xff] }
 0x5e7   : > { %3869 = vmatpush.bf16.msra.mxu0 %v6608_v39  ;;  %v6622_v39 = vld [vmem:[%s8851_s14 + $0x40] sm:$0xff] }
 0x5f1   : > { %5975 = vmatmul.msk.bf16.vlgmr.msrb.gmra.mxu2 %vm3089_vm4, %v5974_v52 }
 0x601   : > { %6039 = vmatmul.msk.bf16.vlgmr.msra.gmra.mxu2 %vm3089_vm4, %v6038_v5 }
 0x63e   : > { %v3109_v41 = vpop.f32.mrf.mxu1 }
 0x63f   : > { %v3339_v27 = vpop.f32.mrf.mxu0 }
 0x644   : > { %v3143_v13 = vpop.f32.mrf.mxu2 }
 0x646   : > { %v3111_v15 = vpop.f32.mrf.mxu1 }
 0x647   : > { %v3114_v8 = vpack.c.bf16 %v3111_v15, %v3109_v41  ;;  %v3341_v6 = vpop.f32.mrf.mxu0  ;;  %v6606_v15 = vld [vmem:[%s8848_s11] sm:$0xff] }
 0x648   : > { %v3344_v30 = vpack.c.bf16 %v3341_v6, %v3339_v27  ;;  %v6607_v27 = vld [vmem:[%s8848_s11 + $0x8] sm:$0xff] }
 0x649   : > { %5840 = vmatmul.msk.bf16.vlgmr.msrb.gmra.mxu1 %vm3182_vm5, %v3114_v8  ;;  %3870 = vmatpush.bf16.msra.mxu0 %v6607_v27  ;;  %v6626_v27 = vld [vmem:[%s8851_s14 + $0x60] sm:$0xff] }
 0x64a   : > { %3541 = vmatpush.bf16.msrb.mxu1 %v6590_v55 }
 0x64c   : > { %v3145_v33 = vpop.f32.mrf.mxu2 }
 0x64d   : > { %v3148_v21 = vpack.c.bf16 %v3145_v33, %v3143_v13  ;;  %3871 = vmatpush.bf16.msra.mxu0 %v6606_v15 }
 0x64e   : > { %3542 = vmatpush.bf16.msrb.mxu1 %v6589_v29 }
 0x64f   : > { %5823 = vmatmul.msk.bf16.vlgmr.msra.gmra.mxu3 %vm3182_vm5, %v3148_v21  ;;  %v3495_v22 = vpop.f32.mrf.mxu0 }
 0x650   : > { %3463 = vmatpush.bf16.msra.mxu3 %v6585_v37 }
 0x652   : > { %3543 = vmatpush.bf16.msrb.mxu1 %v6588_v1 }
 0x654   : > { %v3261_v51 = vpop.f32.mrf.mxu2  ;;  %3464 = vmatpush.bf16.msra.mxu3 %v6584_v20 }
 0x656   : > { %3544 = vmatpush.bf16.msrb.mxu1 %v6587_v44 }
 0x657   : > { %v3497_v11 = vpop.f32.mrf.mxu0 }
 0x658   : > { %3465 = vmatpush.bf16.msra.mxu3 %v6583_v34  ;;  %v3500_v0 = vpack.c.bf16 %v3497_v11, %v3495_v22 }
 0x659   : > { %5904 = vmatmul.msk.bf16.vlgmr.msra.gmra.mxu1 %vm3182_vm5, %v3344_v30 }
 0x65a   : > { %3697 = vmatpush.bf16.msra.mxu1 %v6600_v42  ;;  %v6706_v42 = vld [vmem:[%s8847_s10] ss:$0 sm:$0xff] }
 0x65c   : > { %v3263_v10 = vpop.f32.mrf.mxu2  ;;  %3466 = vmatpush.bf16.msra.mxu3 %v6582_v2 }
 0x65d   : > { %v3266_v4 = vpack.c.bf16 %v3263_v10, %v3261_v51 }
 0x65e   : > { %3698 = vmatpush.bf16.msra.mxu1 %v6599_v14 }
 0x65f   : > { %5872 = vmatmul.msk.bf16.vlgmr.msrb.gmra.mxu3 %vm3182_vm5, %v3266_v4  ;;  %v3651_v63 = vpop.f32.mrf.mxu0 }
 0x660   : > { %3619 = vmatpush.bf16.msrb.mxu3 %v6595_v36 }
 0x662   : > { %3699 = vmatpush.bf16.msra.mxu1 %v6598_v38 }
 0x664   : > { %v3417_v48 = vpop.f32.mrf.mxu2  ;;  %3620 = vmatpush.bf16.msrb.mxu3 %v6594_v17 }
 0x666   : > { %3700 = vmatpush.bf16.msra.mxu1 %v6597_v59 }
 0x667   : > { %v3653_v3 = vpop.f32.mrf.mxu0 }
 0x668   : > { %3621 = vmatpush.bf16.msrb.mxu3 %v6593_v19  ;;  %v3656_v46 = vpack.c.bf16 %v3653_v3, %v3651_v63 }
 0x669   : > { %5968 = vmatmul.msk.bf16.vlgmr.msrb.gmra.mxu1 %vm3182_vm5, %v3500_v0 }
 0x66c   : > { %v3419_v40 = vpop.f32.mrf.mxu2  ;;  %3622 = vmatpush.bf16.msrb.mxu3 %v6592_v45 }
 0x66d   : > { %v3422_v56 = vpack.c.bf16 %v3419_v40, %v3417_v48  ;;  %v6707_v40 = vld [vmem:[%s8849_s12] ss:$0 sm:$0xff] }
 0x66f   : > { %5936 = vmatmul.msk.bf16.vlgmr.msra.gmra.mxu3 %vm3182_vm5, %v3422_v56 }
 0x670   : > { %3775 = vmatpush.bf16.msra.mxu3 %v6605_v35 }
 0x674   : > { %v3573_v12 = vpop.f32.mrf.mxu2  ;;  %3776 = vmatpush.bf16.msra.mxu3 %v6604_v18 }
 0x678   : > { %3777 = vmatpush.bf16.msra.mxu3 %v6603_v50 }
 0x679   : > { %6032 = vmatmul.msk.bf16.vlgmr.msra.gmra.mxu1 %vm3182_vm5, %v3656_v46 }
 0x67c   : > { %v3575_v25 = vpop.f32.mrf.mxu2  ;;  %3778 = vmatpush.bf16.msra.mxu3 %v6602_v16  ;;  %v3912_v16 = vld [vmem:[#allocation2 + $0x1] sm:$0x1] }
 0x67d   : > { %v3578_v53 = vpack.c.bf16 %v3575_v25, %v3573_v12  ;;  %v3881_v25 = vld [vmem:[#allocation2] sm:$0x1] }
 0x67f   : > { %6000 = vmatmul.msk.bf16.vlgmr.msrb.gmra.mxu3 %vm3182_vm5, %v3578_v53  ;;  %v4089_v53 = vld [vmem:[#allocation2 + $0x3] sm:$0x1] }
 0x684   : > { %v3729_v52 = vpop.f32.mrf.mxu2 }
 0x68c   : > { %v3731_v62 = vpop.f32.mrf.mxu2 }
 0x68d   : > { %v3734_v9 = vpack.c.bf16 %v3731_v62, %v3729_v52  ;;  %v4020_v52 = vld [vmem:[#allocation2 + $0x2] sm:$0x1]  ;;  %v4227_v62 = vld [vmem:[#allocation2 + $0x5] sm:$0x1] }
 0x68f   : > { %6064 = vmatmul.msk.bf16.vlgmr.msra.gmra.mxu3 %vm3182_vm5, %v3734_v9  ;;  %v4365_v9 = vld [vmem:[#allocation2 + $0x7] sm:$0x1] }
 0x6c6   : > { %v3236_v28 = vpop.f32.mrf.mxu1 }
 0x6ce   : > { %v3238_v43 = vpop.f32.mrf.mxu1 }
 0x6d2   : > { %v3195_v5 = vpop.f32.mrf.mxu3 }
 0x6d3   : > { %v3237_v13 = vadd.f32 %v3236_v28, %v3195_v5  ;;  %v6621_v5 = vld [vmem:[%s8851_s14 + $0x38] sm:$0xff]  ;;  %v6620_v28 = vld [vmem:[%s8851_s14 + $0x30] sm:$0xff] }
 0x6d4   : > { %3970 = vmatpush.bf16.msrb.mxu3 %v6621_v5 }
 0x6d6   : > { %v3390_v32 = vpop.f32.mrf.mxu1 }
 0x6d8   : > { %3971 = vmatpush.bf16.msrb.mxu3 %v6620_v28 }
 0x6da   : > { %v3197_v26 = vpop.f32.mrf.mxu3 }
 0x6db   : > { %v3239_v33 = vadd.f32 %v3238_v43, %v3197_v26  ;;  %v6619_v26 = vld [vmem:[%s8851_s14 + $0x28] sm:$0xff]  ;;  %v4296_v43 = vld [vmem:[#allocation2 + $0x6] sm:$0x1] }
 0x6dc   : > { %3972 = vmatpush.bf16.msrb.mxu3 %v6619_v26 }
 0x6de   : > { %v3392_v24 = vpop.f32.mrf.mxu1 }
 0x6e2   : > { %v3312_v23 = vpop.f32.mrf.mxu3 }
 0x6e3   : > { %v3317_v55 = vadd.f32 %v3312_v23, %v3237_v13  ;;  %v4434_v23 = vld [vmem:[#allocation2 + $0x8] sm:$0x1] }
 0x6e5   : > { %v3395_v29 = vadd.f32 %v3390_v32, %v3317_v55  ;;  %v6618_v32 = vld [vmem:[%s8851_s14 + $0x20] sm:$0xff] }
 0x6e6   : > { %v3546_v54 = vpop.f32.mrf.mxu1  ;;  %3973 = vmatpush.bf16.msrb.mxu3 %v6618_v32 }
 0x6ea   : > { %v3314_v49 = vpop.f32.mrf.mxu3  ;;  %4078 = vmatpush.bf16.msra.mxu3 %v6625_v7 }
 0x6eb   : > { %v3318_v21 = vadd.f32 %v3314_v49, %v3239_v33  ;;  %v6615_v49 = vld [vmem:[%s8851_s14 + $0x8] sm:$0xff]  ;;  %v6633_v33 = vld [vmem:[%s8851_s14 + $0x98] sm:$0xff] }
 0x6ed   : > { %v3396_v44 = vadd.f32 %v3392_v24, %v3318_v21  ;;  %v6624_v24 = vld [vmem:[%s8851_s14 + $0x50] sm:$0xff] }
 0x6ee   : > { %v3548_v6 = vpop.f32.mrf.mxu1  ;;  %4079 = vmatpush.bf16.msra.mxu3 %v6624_v24 }
 0x6f2   : > { %v3468_v57 = vpop.f32.mrf.mxu3 }
 0x6f3   : > { %v3473_v37 = vadd.f32 %v3468_v57, %v3395_v29  ;;  %v6623_v57 = vld [vmem:[%s8851_s14 + $0x48] sm:$0xff] }
 0x6f4   : > { %4080 = vmatpush.bf16.msra.mxu3 %v6623_v57 }
 0x6f5   : > { %v3551_v20 = vadd.f32 %v3546_v54, %v3473_v37  ;;  %v6627_v54 = vld [vmem:[%s8851_s14 + $0x68] sm:$0xff] }
 0x6f6   : > { %v3702_v34 = vpop.f32.mrf.mxu1 }
 0x6f8   : > { %4081 = vmatpush.bf16.msra.mxu3 %v6622_v39 }
 0x6fa   : > { %v3470_v41 = vpop.f32.mrf.mxu3 }
 0x6fb   : > { %v3474_v22 = vadd.f32 %v3470_v41, %v3396_v44  ;;  %v6628_v41 = vld [vmem:[%s8851_s14 + $0x70] sm:$0xff] }
 0x6fc   : > { %v6632_v44 = vld [vmem:[%s8851_s14 + $0x90] sm:$0xff] }
 0x6fd   : > { %v3552_v14 = vadd.f32 %v3548_v6, %v3474_v22  ;;  %v6636_v6 = vld [vmem:[%s8851_s14 + $0xb0] sm:$0xff]  ;;  %v6631_v22 = vld [vmem:[%s8851_s14 + $0x88] sm:$0xff] }
 0x6fe   : > { %v3704_v38 = vpop.f32.mrf.mxu1 }
 0x702   : > { %v3624_v8 = vpop.f32.mrf.mxu3 }
 0x703   : > { %v3629_v51 = vadd.f32 %v3624_v8, %v3551_v20  ;;  %v6637_v8 = vld [vmem:[%s8851_s14 + $0xb8] sm:$0xff]  ;;  %v6635_v20 = vld [vmem:[%s8851_s14 + $0xa8] sm:$0xff] }
 0x705   : > { %v3707_v30 = vadd.f32 %v3702_v34, %v3629_v51  ;;  %v6634_v51 = vld [vmem:[%s8851_s14 + $0xa0] sm:$0xff] }
 0x70a   : > { %v3626_v1 = vpop.f32.mrf.mxu3 }
 0x70b   : > { %v3630_v36 = vadd.f32 %v3626_v1, %v3552_v14  ;;  %v6630_v14 = vld [vmem:[%s8851_s14 + $0x80] sm:$0xff] }
 0x70d   : > { %v3708_v17 = vadd.f32 %v3704_v38, %v3630_v36 }
 0x712   : > { %v3780_v2 = vpop.f32.mrf.mxu3 }
 0x713   : > { %v3785_v10 = vadd.f32 %v3780_v2, %v3707_v30  ;;  %v6645_v2 = vld [vmem:[%s8851_s14 + $0xf8] sm:$0xff] }
 0x715   : > { %v3791_v4 = vadd.f32 %v6706_v42, %v3785_v10  ;;  %v6644_v10 = vld [vmem:[%s8851_s14 + $0xf0] sm:$0xff] }
 0x717   : > { %v3793_v11 = vmax.f32 %v3791_v4, 0.0  ;;  %v6641_v4 = vld [vmem:[%s8851_s14 + $0xd8] sm:$0xff] }
 0x719   : > { %4513 = vst [vmem:[%s614_s24] sm:$0xff] %v3793_v11 }
 0x71a   : > { %v3782_v59 = vpop.f32.mrf.mxu3 }
 0x71b   : > { %v3786_v48 = vadd.f32 %v3782_v59, %v3708_v17  ;;  %v6643_v17 = vld [vmem:[%s8851_s14 + $0xe8] sm:$0xff]  ;;  %v6640_v59 = vld [vmem:[%s8851_s14 + $0xd0] sm:$0xff] }
 0x71d   : > { %v3792_v19 = vadd.f32 %v6706_v42, %v3786_v48  ;;  %v6642_v48 = vld [vmem:[%s8851_s14 + $0xe0] sm:$0xff] }
 0x71f   : > { %v3794_v0 = vmax.f32 %v3792_v19, 0.0 }
 0x721   : > { %v3795_v45 = vpack.c.bf16 %v3794_v0, %v3793_v11  ;;  %4514 = vst [vmem:[%s614_s24 + $0x8] sm:$0x1] %v3794_v0  ;;  %v6639_v0 = vld [vmem:[%s8851_s14 + $0xc8] sm:$0xff]  ;;  %s4543_s24 = sshll.u32 %s599_s29, 4  ;;  %s4544_s24 = int_to_ptr.vmem [resolvable:$true] %s4543_s24 }
 0x723   : > { %3872 = vmatmul.bf16.vlgmr.msra.gmra.mxu0 %v3795_v45 }
 0x7a0   : > { %v3873_v63 = vpop.f32.mrf.mxu0 }
 0x7a1   : > { %v3874_v35 = vadd.f32 %v6707_v40, %v3873_v63 }
 0x7a3   : > { %v3878_v3 = vmax.f32 %v3874_v35, 0.0 }
 0x7a8   : > { %v3875_v56 = vpop.f32.mrf.mxu0 }
 0x7a9   : > { %v3876_v18 = vadd.f32 %v6707_v40, %v3875_v56  ;;  %v6638_v40 = vld [vmem:[%s8851_s14 + $0xc0] sm:$0xff]  ;;  %v6649_v56 = vld [vmem:[%s8851_s14 + $0x118] sm:$0xff] }
 0x7ab   : > { %v3879_v12 = vmax.f32 %v3876_v18, 0.0 }
 0x7ad   : > { %v3880_v50 = vpack.c.bf16 %v3879_v12, %v3878_v3  ;;  %v6648_v12 = vld [vmem:[%s8851_s14 + $0x110] sm:$0xff] }
 0x7af   : > { %v3887_v46 = vand.u32 %v3880_v50, %v8458_v58  ;;  %v4158_v58 = vld [vmem:[#allocation2 + $0x4] sm:$0x1] }
 0x7b1   : > { %3896 = vmatpush.bf16.msrb.mxu1 %v3887_v46  ;;  %3923 = vmatpush.bf16.msrb.mxu2 %v3887_v46 }
 0x7b2   : > { %4100 = vmatpush.bf16.msrb.mxu0 %v3887_v46 }
 0x7b4   : > { %6098 = vmatmul.msk.bf16.vlgmr.msrb.gmra.mxu2 %vm3882_vm6, %v3912_v16  ;;  %6097 = vmatmul.msk.bf16.vlgmr.msrb.gmra.mxu1 %vm3882_vm6, %v3881_v25  ;;  %v6646_v25 = vld [vmem:[%s8851_s14 + $0x100] sm:$0xff] }
 0x7b5   : > { %4031 = vmatpush.bf16.msra.mxu2 %v3887_v46  ;;  %6167 = vmatmul.msk.bf16.vlgmr.msrb.gmra.mxu0 %vm3882_vm6, %v4089_v53 }
 0x7b6   : > { %4238 = vmatpush.bf16.msra.mxu0 %v3887_v46  ;;  %4010 = vmatpush.bf16.msra.mxu1 %v6617_v61 }
 0x7b9   : > { %4169 = vmatpush.bf16.msrb.mxu2 %v3887_v46 }
 0x7ba   : > { %4376 = vmatpush.bf16.msrb.mxu0 %v3887_v46  ;;  %4011 = vmatpush.bf16.msra.mxu1 %v6616_v47 }
 0x7be   : > { %4012 = vmatpush.bf16.msra.mxu1 %v6615_v49 }
 0x7c2   : > { %4013 = vmatpush.bf16.msra.mxu1 %v6614_v60 }
 0x7c4   : > { %6141 = vmatmul.msk.bf16.vlgmr.msra.gmra.mxu2 %vm3882_vm6, %v4020_v52 }
 0x7c5   : > { %4307 = vmatpush.bf16.msra.mxu2 %v3887_v46  ;;  %6219 = vmatmul.msk.bf16.vlgmr.msra.gmra.mxu0 %vm3882_vm6, %v4227_v62 }
 0x7c6   : > { %4147 = vmatpush.bf16.msrb.mxu1 %v6629_v31 }
 0x7ca   : > { %4148 = vmatpush.bf16.msrb.mxu1 %v6628_v41 }
 0x7ce   : > { %4149 = vmatpush.bf16.msrb.mxu1 %v6627_v54 }
 0x7d2   : > { %4150 = vmatpush.bf16.msrb.mxu1 %v6626_v27 }
 0x7d4   : > { %6193 = vmatmul.msk.bf16.vlgmr.msrb.gmra.mxu2 %vm3882_vm6, %v4158_v58 }
 0x7d5   : > { %4445 = vmatpush.bf16.msrb.mxu2 %v3887_v46  ;;  %6271 = vmatmul.msk.bf16.vlgmr.msrb.gmra.mxu0 %vm3882_vm6, %v4365_v9  ;;  %v6647_v46 = vld [vmem:[%s8851_s14 + $0x108] sm:$0xff] }
 0x7e4   : > { %6245 = vmatmul.msk.bf16.vlgmr.msra.gmra.mxu2 %vm3882_vm6, %v4296_v43 }
 0x7f4   : > { %6297 = vmatmul.msk.bf16.vlgmr.msrb.gmra.mxu2 %vm3882_vm6, %v4434_v23 }
 0x831   : > { %v3898_v13 = vpop.f32.mrf.mxu1 }
 0x832   : > { %v3902_v15 = vpack.c.bf16 %v3898_v13, %v3898_v13  ;;  %v4102_v55 = vpop.f32.mrf.mxu0 }
 0x833   : > { %v4106_v30 = vpack.c.bf16 %v4102_v55, %v4102_v55 }
 0x834   : > { %6140 = vmatmul.msk.bf16.vlgmr.msra.gmra.mxu1 %vm3182_vm5, %v3902_v15 }
 0x835   : > { %4285 = vmatpush.bf16.msra.mxu1 %v6637_v8 }
 0x837   : > { %v3925_v29 = vpop.f32.mrf.mxu2 }
 0x838   : > { %v3929_v37 = vpack.c.bf16 %v3925_v29, %v3925_v29 }
 0x839   : > { %4286 = vmatpush.bf16.msra.mxu1 %v6636_v6  ;;  %v3900_v21 = vpop.f32.mrf.mxu1 }
 0x83a   : > { %6123 = vmatmul.msk.bf16.vlgmr.msrb.gmra.mxu3 %vm3182_vm5, %v3929_v37  ;;  %v4104_v1 = vpop.f32.mrf.mxu0  ;;  %v4502_v37 = vld [vmem:[%s8883_s2] sm:$0x1] }
 0x83b   : > { %4216 = vmatpush.bf16.msrb.mxu3 %v6633_v33 }
 0x83d   : > { %4287 = vmatpush.bf16.msra.mxu1 %v6635_v20 }
 0x83f   : > { %v3927_v34 = vpop.f32.mrf.mxu2  ;;  %4217 = vmatpush.bf16.msrb.mxu3 %v6632_v44 }
 0x841   : > { %4288 = vmatpush.bf16.msra.mxu1 %v6634_v51 }
 0x842   : > { %v4240_v42 = vpop.f32.mrf.mxu0 }
 0x843   : > { %4218 = vmatpush.bf16.msrb.mxu3 %v6631_v22  ;;  %v4244_v45 = vpack.c.bf16 %v4240_v42, %v4240_v42 }
 0x844   : > { %6192 = vmatmul.msk.bf16.vlgmr.msrb.gmra.mxu1 %vm3182_vm5, %v4106_v30 }
 0x845   : > { %4423 = vmatpush.bf16.msrb.mxu1 %v6645_v2 }
 0x847   : > { %v4033_v36 = vpop.f32.mrf.mxu2  ;;  %4219 = vmatpush.bf16.msrb.mxu3 %v6630_v14 }
 0x848   : > { %v4037_v11 = vpack.c.bf16 %v4033_v36, %v4033_v36 }
 0x849   : > { %4424 = vmatpush.bf16.msrb.mxu1 %v6644_v10 }
 0x84a   : > { %6166 = vmatmul.msk.bf16.vlgmr.msra.gmra.mxu3 %vm3182_vm5, %v4037_v11  ;;  %v4242_v38 = vpop.f32.mrf.mxu0 }
 0x84b   : > { %4354 = vmatpush.bf16.msra.mxu3 %v6641_v4 }
 0x84d   : > { %4425 = vmatpush.bf16.msrb.mxu1 %v6643_v17 }
 0x84f   : > { %v4035_v19 = vpop.f32.mrf.mxu2  ;;  %4355 = vmatpush.bf16.msra.mxu3 %v6640_v59 }
 0x851   : > { %4426 = vmatpush.bf16.msrb.mxu1 %v6642_v48 }
 0x852   : > { %v4378_v63 = vpop.f32.mrf.mxu0 }
 0x853   : > { %4356 = vmatpush.bf16.msra.mxu3 %v6639_v0  ;;  %v4382_v16 = vpack.c.bf16 %v4378_v63, %v4378_v63 }
 0x854   : > { %6244 = vmatmul.msk.bf16.vlgmr.msra.gmra.mxu1 %vm3182_vm5, %v4244_v45 }
 0x857   : > { %v4171_v35 = vpop.f32.mrf.mxu2  ;;  %4357 = vmatpush.bf16.msra.mxu3 %v6638_v40 }
 0x858   : > { %v4175_v18 = vpack.c.bf16 %v4171_v35, %v4171_v35 }
 0x85a   : > { %6218 = vmatmul.msk.bf16.vlgmr.msrb.gmra.mxu3 %vm3182_vm5, %v4175_v18  ;;  %v4380_v3 = vpop.f32.mrf.mxu0 }
 0x85b   : > { %4492 = vmatpush.bf16.msrb.mxu3 %v6649_v56 }
 0x85f   : > { %v4173_v50 = vpop.f32.mrf.mxu2  ;;  %4493 = vmatpush.bf16.msrb.mxu3 %v6648_v12 }
 0x863   : > { %4494 = vmatpush.bf16.msrb.mxu3 %v6647_v46 }
 0x864   : > { %6296 = vmatmul.msk.bf16.vlgmr.msrb.gmra.mxu1 %vm3182_vm5, %v4382_v16 }
 0x867   : > { %v4309_v53 = vpop.f32.mrf.mxu2  ;;  %4495 = vmatpush.bf16.msrb.mxu3 %v6646_v25 }
 0x868   : > { %v4313_v52 = vpack.c.bf16 %v4309_v53, %v4309_v53 }
 0x86a   : > { %6270 = vmatmul.msk.bf16.vlgmr.msra.gmra.mxu3 %vm3182_vm5, %v4313_v52 }
 0x86f   : > { %v4311_v62 = vpop.f32.mrf.mxu2 }
 0x877   : > { %v4447_v58 = vpop.f32.mrf.mxu2 }
 0x878   : > { %v4451_v9 = vpack.c.bf16 %v4447_v58, %v4447_v58 }
 0x87a   : > { %6322 = vmatmul.msk.bf16.vlgmr.msrb.gmra.mxu3 %vm3182_vm5, %v4451_v9 }
 0x87f   : > { %v4449_v5 = vpop.f32.mrf.mxu2 }
 0x8b1   : > { %v4015_v28 = vpop.f32.mrf.mxu1 }
 0x8b9   : > { %v4017_v26 = vpop.f32.mrf.mxu1 }
 0x8bd   : > { %v3975_v43 = vpop.f32.mrf.mxu3 }
 0x8be   : > { %v4016_v41 = vadd.f32 %v4015_v28, %v3975_v43 }
 0x8c1   : > { %v4152_v23 = vpop.f32.mrf.mxu1 }
 0x8c5   : > { %v3977_v61 = vpop.f32.mrf.mxu3 }
 0x8c9   : > { %v4154_v47 = vpop.f32.mrf.mxu1 }
 0x8cd   : > { %v4083_v32 = vpop.f32.mrf.mxu3 }
 0x8ce   : > { %v4087_v54 = vadd.f32 %v4083_v32, %v4016_v41 }
 0x8d0   : > { %v4156_v13 = vadd.f32 %v4152_v23, %v4087_v54 }
 0x8d1   : > { %v4290_v49 = vpop.f32.mrf.mxu1 }
 0x8d5   : > { %v4085_v7 = vpop.f32.mrf.mxu3 }
 0x8d9   : > { %v4292_v60 = vpop.f32.mrf.mxu1 }
 0x8dd   : > { %v4221_v24 = vpop.f32.mrf.mxu3 }
 0x8de   : > { %v4225_v15 = vadd.f32 %v4221_v24, %v4156_v13 }
 0x8e0   : > { %v4294_v8 = vadd.f32 %v4290_v49, %v4225_v15 }
 0x8e1   : > { %v4428_v57 = vpop.f32.mrf.mxu1 }
 0x8e5   : > { %v4223_v31 = vpop.f32.mrf.mxu3 }
 0x8e9   : > { %v4430_v39 = vpop.f32.mrf.mxu1 }
 0x8ed   : > { %v4359_v27 = vpop.f32.mrf.mxu3 }
 0x8ee   : > { %v4363_v6 = vadd.f32 %v4359_v27, %v4294_v8 }
 0x8f0   : > { %v4432_v29 = vadd.f32 %v4428_v57, %v4363_v6 }
 0x8f5   : > { %v4361_v55 = vpop.f32.mrf.mxu3 }
 0x8fd   : > { %v4497_v33 = vpop.f32.mrf.mxu3 }
 0x8fe   : > { %v4501_v21 = vadd.f32 %v4497_v33, %v4432_v29 }
 0x900   : > { %v4503_v1 = vadd.f32 %v4502_v37, %v4501_v21 }
 0x902   : > { %v4504_v20 = vmax.f32 %v4503_v1, 0.0 }
 0x904   : > { %4515 = vst [vmem:[%s599_s29] sm:$0x1] %v4504_v20 }
 0x905   : > { %v4499_v44 = vpop.f32.mrf.mxu3 }
 0x906   : > { %6765 = shalt.err (!%p6762_p8)
}
 0x907   : > { %6655 = dma.vmem_to_hbm [thread:$0]  (%p6943_p5), %s4544_s24, 16, %s4546_s22, %s4527_s13  }
 0x908 PF: > { %s8885_s27 = sld [smem:[#allocation10_spill]] }
 0x909   : > { %s8886_s30 = sld [smem:[#allocation8_spill]] }
 0x90e   : > { %p6667_p9 = scmp.ge.s32.totalorder %s8885_s27, 2 }
 0x90f   : > { %s4573_s29 = sand.u32 1, %s8886_s30  }
 0x910   : > { %p6662_p10 = pnand %p6667_p9, %p6947_p6  ;;  %s4574_s23 = scalar_lea.sflag [#allocation4], %s4573_s29 }
 0x912   : > { %p6663_p11 = pneg %p6662_p10 }
 0x914   : > { %6787 = dma.done.wait (%p6663_p11), %s4574_s23, 16  }
 0x915   : > { %6789 = vsyncadd (%p6663_p11), %s4574_s23, 4294967280  ;;  %s8888_s30 = sld [smem:[#allocation11_spill]]  ;;  %s8891_s27 = smov %s6796_s28 }
 0x916   : > { %s8889_s1 = sld [smem:[#allocation9_spill]] }
 0x917   : > { %s8890_s29 = sld [smem:[#allocation12_spill]] }
 0x91b   : > { %p30_p12 = scmp.ge.s32.totalorder %s8888_s30, 4  }
 0x91c   : > { %s8892_s28 = smov %s8889_s1 }
 0x91d   :  { %32 = sbr.rel (!%p30_p12) target bundleno = 10 (0xa), region = 196 }
 0x922   :  { %4579 = vsyncpa [#allocation3], 1 }
 0x923   :  { %4581 = vsyncpa [#allocation3 + $0x1], 1 }
 0x924   :  { %4582 = vsyncpa [#allocation4], 1 }
 0x925   :  { %4584 = vsyncpa [#allocation4 + $0x1], 1 }

</bundles_post_ra>
